<compile_context>
chip_gen: v7x
topology: tpu7x:2x2x1
jax: 0.10.0
libtpu: 0.0.40
codegen_flags: <defaults>
</compile_context>

<pallas_src>
import jax
import jax.numpy as jnp
from jax.experimental import pallas as pl
from jax.experimental.pallas import tpu as pltpu

# ----- hyperparameters consistent with EEGPhonemeSeq2Seq.__init__/forward -----
INPUT_SIZE = 4        # EEG channels (input_size)
HIDDEN = 32           # hidden_size
OUTPUT_SIZE = 8       # output vocabulary size
MAX_OUT_LEN = 6       # max_output_length
BATCH = 2
SEQ_LEN = 16

H = HIDDEN
G = 3 * HIDDEN        # GRU gate width (r|z|n)
BP = 8                # batch padded to one sublane tile
PACK_W = 256          # packed-weight width = two 128-lane tiles

# ----- packed-weight row layout (static offsets shared by packer & kernel) ----
ROW_WIH   = 0         # rows 0:4     cols [0:96]=W_ih_fwd, [128:224]=W_ih_bwd
ROW_WHH_F = 8         # rows 8:40    cols 0:96   encoder W_hh forward
ROW_WHH_B = 40        # rows 40:72   cols 0:96   encoder W_hh backward
ROW_WATT  = 72        # rows 72:136  cols 0:64   attention Linear(2H, 2H)
ROW_WDC   = 136       # rows 136:200 cols 0:96   decoder W_ih (context rows)
ROW_WDEC  = 200       # rows 200:232 cols 0:256  fused decoder weight
ROW_BIH   = 232       # cols [0:96]=b_ih_fwd, [128:224]=b_ih_bwd
ROW_BHH_F = 233       # cols 0:96
ROW_BHH_B = 234       # cols 0:96
ROW_BATT  = 235       # cols 0:64
ROW_BIHD  = 236       # cols 0:96   decoder GRU b_ih
ROW_BDEC  = 237       # cols [0:96]=b_hh_dec, [96:104]=b_fc, [128:224]=b_chain
PACK_ROWS = 240


def seq2seq_kernel(x_ref, pk_ref, out_ref, hs_ref, gi_s, enc_s):
    """Fused encoder + attention + decoder.

    x_ref : (T*BP, C)  time-major rows (row t*BP + b), batch padded to BP
    pk_ref: (PACK_ROWS, PACK_W) packed weights/biases (static layout above)
    out_ref: (B, L, O)   hs_ref: (B, L, H)
    gi_s  : VMEM scratch (T*BP, 256) — staged encoder input projection
    enc_s : VMEM scratch (T*BP, 2H)  — encoder outputs [fwd | bwd]
    """
    T, L, B = SEQ_LEN, MAX_OUT_LEN, BATCH

    # -------- encoder input projection: one (T*BP, C) @ (C, 256) matmul ------
    # fwd gates land in lanes 0:96, bwd gates in lanes 128:224 (tile-aligned).
    wih = pk_ref[ROW_WIH:ROW_WIH + INPUT_SIZE, :]
    bih = pk_ref[ROW_BIH:ROW_BIH + 1, :]
    gi_s[...] = (jnp.dot(x_ref[...], wih, preferred_element_type=jnp.float32)
                 + bih)

    # -------- bidirectional GRU: fwd & bwd interleaved, fully unrolled -------
    whh_f = pk_ref[ROW_WHH_F:ROW_WHH_F + H, 0:G]
    whh_b = pk_ref[ROW_WHH_B:ROW_WHH_B + H, 0:G]
    bhh_f = jnp.broadcast_to(pk_ref[ROW_BHH_F:ROW_BHH_F + 1, 0:G], (BP, G))
    bhh_b = jnp.broadcast_to(pk_ref[ROW_BHH_B:ROW_BHH_B + 1, 0:G], (BP, G))

    h_f = jnp.zeros((BP, H), jnp.float32)
    h_b = jnp.zeros((BP, H), jnp.float32)
    for i in range(T):
        tf, tb = i, T - 1 - i
        gi_f = gi_s[tf * BP:(tf + 1) * BP, 0:G]            # aligned sublane tile
        gi_b = gi_s[tb * BP:(tb + 1) * BP, 128:128 + G]    # aligned lane tile
        gh_f = jnp.dot(h_f, whh_f, preferred_element_type=jnp.float32) + bhh_f
        gh_b = jnp.dot(h_b, whh_b, preferred_element_type=jnp.float32) + bhh_b

        rz_f = jax.nn.sigmoid(gi_f[:, 0:2 * H] + gh_f[:, 0:2 * H])
        n_f = jnp.tanh(gi_f[:, 2 * H:G] + rz_f[:, 0:H] * gh_f[:, 2 * H:G])
        h_f = (1.0 - rz_f[:, H:2 * H]) * n_f + rz_f[:, H:2 * H] * h_f

        rz_b = jax.nn.sigmoid(gi_b[:, 0:2 * H] + gh_b[:, 0:2 * H])
        n_b = jnp.tanh(gi_b[:, 2 * H:G] + rz_b[:, 0:H] * gh_b[:, 2 * H:G])
        h_b = (1.0 - rz_b[:, H:2 * H]) * n_b + rz_b[:, H:2 * H] * h_b

        enc_s[tf * BP:(tf + 1) * BP, 0:H] = h_f            # off the dep chain
        enc_s[tb * BP:(tb + 1) * BP, H:2 * H] = h_b

    # -------- attention context (loop-invariant across decode steps) ---------
    # Reference softmax is over dim=1 == TIME; context = bmm(W^T, E).mean(1)
    # == sum_t mean_i(softmax_T(scores)[t, b, i]) * E[t, b, :].
    watt = pk_ref[ROW_WATT:ROW_WATT + 2 * H, 0:2 * H]
    batt = pk_ref[ROW_BATT:ROW_BATT + 1, 0:2 * H]
    sc = jnp.dot(enc_s[...], watt, preferred_element_type=jnp.float32) + batt

    m = sc[0:BP, :]
    for t in range(1, T):
        m = jnp.maximum(m, sc[t * BP:(t + 1) * BP, :])
    ex = [jnp.exp(sc[t * BP:(t + 1) * BP, :] - m) for t in range(T)]
    denom = ex[0]
    for t in range(1, T):
        denom = denom + ex[t]
    inv_denom = 1.0 / denom
    inv_feat = 1.0 / (2.0 * H)
    ctx = jnp.zeros((BP, 2 * H), jnp.float32)
    for t in range(T):
        wbar = jnp.sum(ex[t] * inv_denom, axis=1, keepdims=True) * inv_feat
        ctx = ctx + wbar * enc_s[t * BP:(t + 1) * BP, :]

    # -------- decoder: ONE dependent matmul per decode step ------------------
    wdc = pk_ref[ROW_WDC:ROW_WDC + 2 * H, 0:G]
    bihd = pk_ref[ROW_BIHD:ROW_BIHD + 1, 0:G]
    gi_ctx = jnp.dot(ctx, wdc, preferred_element_type=jnp.float32) + bihd

    wdec = pk_ref[ROW_WDEC:ROW_WDEC + H, :]                       # (H, 256)
    bdec = jnp.broadcast_to(pk_ref[ROW_BDEC:ROW_BDEC + 1, :], (BP, PACK_W))

    h = h_f + h_b                        # hidden.view(nl, 2, B, H).sum(dim=1)
    combo = jnp.dot(h, wdec, preferred_element_type=jnp.float32) + bdec
    gh = combo[:, 0:G]                   # W_hh part for step 0
    gi_dd = jnp.zeros((BP, G), jnp.float32)   # decoder_input starts at zero
    for t in range(L):
        gi = gi_ctx + gi_dd
        rz = jax.nn.sigmoid(gi[:, 0:2 * H] + gh[:, 0:2 * H])
        n = jnp.tanh(gi[:, 2 * H:G] + rz[:, 0:H] * gh[:, 2 * H:G])
        h = (1.0 - rz[:, H:2 * H]) * n + rz[:, H:2 * H] * h
        # fused: next step's gh | this step's logits | next step's input-gate
        combo = jnp.dot(h, wdec, preferred_element_type=jnp.float32) + bdec
        gh = combo[:, 0:G]
        logits = combo[:, G:G + OUTPUT_SIZE]
        gi_dd = combo[:, 128:128 + G]
        hs_ref[:, t:t + 1, :] = h[0:B, None, :]
        out_ref[:, t:t + 1, :] = logits[0:B, None, :]
        # TODO(synk): PyTorch breaks out early when argmax(logits)==EOS for all
        # batch rows (data-dependent output length); kernel always emits L steps.


def init_params(key):
    """Deterministic synthetic parameters (PyTorch default-ish uniform init).
    GRU/Linear weights are stored pre-transposed (in_features, out_features)."""
    k = jax.random.split(key, 18)

    def u(kk, shape, bound):
        return jax.random.uniform(kk, shape, jnp.float32, -bound, bound)

    bg = 1.0 / (H ** 0.5)
    ba = 1.0 / ((2 * H) ** 0.5)
    bf = 1.0 / (H ** 0.5)
    bo = 1.0 / (OUTPUT_SIZE ** 0.5)
    return dict(
        # encoder GRU forward / backward directions (gate order r, z, n)
        wih_f=u(k[0], (INPUT_SIZE, G), bg), whh_f=u(k[1], (H, G), bg),
        bih_f=u(k[2], (1, G), bg),          bhh_f=u(k[3], (1, G), bg),
        wih_b=u(k[4], (INPUT_SIZE, G), bg), whh_b=u(k[5], (H, G), bg),
        bih_b=u(k[6], (1, G), bg),          bhh_b=u(k[7], (1, G), bg),
        # attention Linear(2H -> 2H)
        watt=u(k[8], (2 * H, 2 * H), ba),   batt=u(k[9], (1, 2 * H), ba),
        # decoder GRU (input = [context(2H) | decoder_input(H)])
        wih_d=u(k[10], (3 * H, G), bg),     whh_d=u(k[11], (H, G), bg),
        bih_d=u(k[12], (1, G), bg),         bhh_d=u(k[13], (1, G), bg),
        # fc: Linear(H -> output_size)
        wfc=u(k[14], (H, OUTPUT_SIZE), bf), bfc=u(k[15], (1, OUTPUT_SIZE), bf),
        # output_to_decoder_input: Linear(output_size -> H)
        wo2d=u(k[16], (OUTPUT_SIZE, H), bo), bo2d=u(k[17], (1, H), bo),
    )


def pack_params(p):
    """Pack all weights/biases into ONE (PACK_ROWS, PACK_W) array. Run once."""
    pk = jnp.zeros((PACK_ROWS, PACK_W), jnp.float32)
    pk = pk.at[ROW_WIH:ROW_WIH + INPUT_SIZE, 0:G].set(p['wih_f'])
    pk = pk.at[ROW_WIH:ROW_WIH + INPUT_SIZE, 128:128 + G].set(p['wih_b'])
    pk = pk.at[ROW_WHH_F:ROW_WHH_F + H, 0:G].set(p['whh_f'])
    pk = pk.at[ROW_WHH_B:ROW_WHH_B + H, 0:G].set(p['whh_b'])
    pk = pk.at[ROW_WATT:ROW_WATT + 2 * H, 0:2 * H].set(p['watt'])
    pk = pk.at[ROW_WDC:ROW_WDC + 2 * H, 0:G].set(p['wih_d'][0:2 * H, :])
    # fused decoder weight: [W_hh | W_fc | pad | W_fc @ W_o2d @ W_ih_dec | pad]
    wih_dd = p['wih_d'][2 * H:, :]                        # (H, G)
    w_chain = p['wfc'] @ p['wo2d'] @ wih_dd               # (H, G)
    b_chain = (p['bfc'] @ p['wo2d'] + p['bo2d']) @ wih_dd  # (1, G)
    pk = pk.at[ROW_WDEC:ROW_WDEC + H, 0:G].set(p['whh_d'])
    pk = pk.at[ROW_WDEC:ROW_WDEC + H, G:G + OUTPUT_SIZE].set(p['wfc'])
    pk = pk.at[ROW_WDEC:ROW_WDEC + H, 128:128 + G].set(w_chain)
    # bias rows
    pk = pk.at[ROW_BIH, 0:G].set(p['bih_f'][0])
    pk = pk.at[ROW_BIH, 128:128 + G].set(p['bih_b'][0])
    pk = pk.at[ROW_BHH_F, 0:G].set(p['bhh_f'][0])
    pk = pk.at[ROW_BHH_B, 0:G].set(p['bhh_b'][0])
    pk = pk.at[ROW_BATT, 0:2 * H].set(p['batt'][0])
    pk = pk.at[ROW_BIHD, 0:G].set(p['bih_d'][0])
    pk = pk.at[ROW_BDEC, 0:G].set(p['bhh_d'][0])
    pk = pk.at[ROW_BDEC, G:G + OUTPUT_SIZE].set(p['bfc'][0])
    pk = pk.at[ROW_BDEC, 128:128 + G].set(b_chain[0])
    return pk


@jax.jit
def eeg_phoneme_seq2seq_forward(x, packed):
    """x: (B, C, T) EEG; packed: pre-packed weights. Returns (outputs, hiddens)."""
    B, C, T = x.shape
    # x.permute(0, 2, 1) of the reference, arranged time-major and batch-padded
    # to a full sublane tile so every per-step slice in the kernel is aligned.
    xt = jnp.transpose(x, (2, 0, 1)).astype(jnp.float32)          # (T, B, C)
    xp = jnp.pad(xt, ((0, 0), (0, BP - B), (0, 0)))               # (T, BP, C)
    x2d = xp.reshape(T * BP, C)

    vmem = pl.BlockSpec(memory_space=pltpu.MemorySpace.VMEM)
    outputs, hidden_states = pl.pallas_call(
        seq2seq_kernel,
        out_shape=(
            jax.ShapeDtypeStruct((B, MAX_OUT_LEN, OUTPUT_SIZE), jnp.float32),
            jax.ShapeDtypeStruct((B, MAX_OUT_LEN, HIDDEN), jnp.float32),
        ),
        in_specs=[vmem, vmem],
        out_specs=(vmem, vmem),
        scratch_shapes=[
            pltpu.VMEM((SEQ_LEN * BP, PACK_W), jnp.float32),      # input proj
            pltpu.VMEM((SEQ_LEN * BP, 2 * HIDDEN), jnp.float32),  # enc outputs
        ],
    )(x2d, packed)
    return outputs, hidden_states


if __name__ == "__main__":
    key = jax.random.PRNGKey(0)
    kx, kp = jax.random.split(key)
    x = jax.random.normal(kx, (BATCH, INPUT_SIZE, SEQ_LEN), jnp.float32)
    params = init_params(kp)
    # One-time packing (outside the per-call jit): the forward only ever sees
    # two arrays -> two input DMAs, no per-call weight glue.
    packed = jax.block_until_ready(pack_params(params))

    outputs, hidden_states = eeg_phoneme_seq2seq_forward(x, packed)
    jax.block_until_ready((outputs, hidden_states))

    assert outputs.shape == (BATCH, MAX_OUT_LEN, OUTPUT_SIZE), outputs.shape
    assert hidden_states.shape == (BATCH, MAX_OUT_LEN, HIDDEN), hidden_states.shape
    assert bool(jnp.all(jnp.isfinite(outputs)))
    assert bool(jnp.all(jnp.isfinite(hidden_states)))
    print("KERNEL_OK")
</pallas_src>

<mosaic_0001>
module attributes {stable_mosaic.version = 11 : i64} {
  func.func @seq2seq_kernel(%arg0: memref<128x4xf32, #tpu.memory_space<vmem>>, %arg1: memref<240x256xf32, #tpu.memory_space<vmem>>, %arg2: memref<2x6x8xf32, #tpu.memory_space<vmem>>, %arg3: memref<2x6x32xf32, #tpu.memory_space<vmem>>, %arg4: memref<128x256xf32, #tpu.memory_space<vmem>>, %arg5: memref<128x64xf32, #tpu.memory_space<vmem>>) attributes {dimension_semantics = [], scalar_prefetch = 0 : i64, scratch_operands = 2 : i64, tpu.core_type = #tpu.core_type<tc>} {
    %c0 = arith.constant 0 : index
    %c0_0 = arith.constant 0 : index
    %0 = vector.load %arg1[%c0, %c0_0] : memref<240x256xf32, #tpu.memory_space<vmem>>, vector<4x256xf32>
    %c232 = arith.constant 232 : index
    %c0_1 = arith.constant 0 : index
    %1 = vector.load %arg1[%c232, %c0_1] : memref<240x256xf32, #tpu.memory_space<vmem>>, vector<1x256xf32>
    %c0_2 = arith.constant 0 : index
    %c0_3 = arith.constant 0 : index
    %2 = vector.load %arg0[%c0_2, %c0_3] : memref<128x4xf32, #tpu.memory_space<vmem>>, vector<128x4xf32>
    %cst = arith.constant dense<0.000000e+00> : vector<128x256xf32>
    %3 = tpu.matmul %2, %0, %cst {dimension_numbers = #tpu.dot_dimension_numbers<[1], [0], [0], [1], [0, 0, 1, 1], [], []>} : vector<128x4xf32>, vector<4x256xf32>, vector<128x256xf32> -> vector<128x256xf32>
    %4 = vector.broadcast %1 : vector<1x256xf32> to vector<128x256xf32>
    %5 = arith.addf %3, %4 : vector<128x256xf32>
    %c0_4 = arith.constant 0 : index
    %c0_5 = arith.constant 0 : index
    %6 = vector.load %arg4[%c0_4, %c0_5] : memref<128x256xf32, #tpu.memory_space<vmem>>, vector<128x256xf32>
    tpu.vector_store %arg4[%c0_4, %c0_5], %5 {strides = array<i32>} : memref<128x256xf32, #tpu.memory_space<vmem>>, vector<128x256xf32>,
    %c8 = arith.constant 8 : index
    %c0_6 = arith.constant 0 : index
    %7 = vector.load %arg1[%c8, %c0_6] : memref<240x256xf32, #tpu.memory_space<vmem>>, vector<32x96xf32>
    %c40 = arith.constant 40 : index
    %c0_7 = arith.constant 0 : index
    %8 = vector.load %arg1[%c40, %c0_7] : memref<240x256xf32, #tpu.memory_space<vmem>>, vector<32x96xf32>
    %c233 = arith.constant 233 : index
    %c0_8 = arith.constant 0 : index
    %9 = vector.load %arg1[%c233, %c0_8] : memref<240x256xf32, #tpu.memory_space<vmem>>, vector<1x96xf32>
    %10 = vector.shape_cast %9 : vector<1x96xf32> to vector<1x96xf32>
    %11 = vector.broadcast %10 : vector<1x96xf32> to vector<8x96xf32>
    %c234 = arith.constant 234 : index
    %c0_9 = arith.constant 0 : index
    %12 = vector.load %arg1[%c234, %c0_9] : memref<240x256xf32, #tpu.memory_space<vmem>>, vector<1x96xf32>
    %13 = vector.shape_cast %12 : vector<1x96xf32> to vector<1x96xf32>
    %14 = vector.broadcast %13 : vector<1x96xf32> to vector<8x96xf32>
    %cst_10 = arith.constant 0.000000e+00 : f32
    %15 = vector.broadcast %cst_10 : f32 to vector<8x32xf32>
    %cst_11 = arith.constant 0.000000e+00 : f32
    %16 = vector.broadcast %cst_11 : f32 to vector<8x32xf32>
    %c0_12 = arith.constant 0 : index
    %c0_13 = arith.constant 0 : index
    %17 = vector.load %arg4[%c0_12, %c0_13] : memref<128x256xf32, #tpu.memory_space<vmem>>, vector<8x96xf32>
    %c120 = arith.constant 120 : index
    %c128 = arith.constant 128 : index
    %18 = vector.load %arg4[%c120, %c128] : memref<128x256xf32, #tpu.memory_space<vmem>>, vector<8x96xf32>
    %cst_14 = arith.constant dense<0.000000e+00> : vector<8x96xf32>
    %19 = tpu.matmul %15, %7, %cst_14 {dimension_numbers = #tpu.dot_dimension_numbers<[1], [0], [0], [1], [0, 0, 1, 1], [], []>} : vector<8x32xf32>, vector<32x96xf32>, vector<8x96xf32> -> vector<8x96xf32>
    %20 = arith.addf %19, %11 : vector<8x96xf32>
    %cst_15 = arith.constant dense<0.000000e+00> : vector<8x96xf32>
    %21 = tpu.matmul %16, %8, %cst_15 {dimension_numbers = #tpu.dot_dimension_numbers<[1], [0], [0], [1], [0, 0, 1, 1], [], []>} : vector<8x32xf32>, vector<32x96xf32>, vector<8x96xf32> -> vector<8x96xf32>
    %22 = arith.addf %21, %14 : vector<8x96xf32>
    %23 = vector.extract_strided_slice %17 {offsets = [0, 0], sizes = [8, 64], strides = [1, 1]} : vector<8x96xf32> to vector<8x64xf32>
    %24 = vector.extract_strided_slice %20 {offsets = [0, 0], sizes = [8, 64], strides = [1, 1]} : vector<8x96xf32> to vector<8x64xf32>
    %25 = arith.addf %23, %24 : vector<8x64xf32>
    %26 = arith.negf %25 : vector<8x64xf32>
    %27 = math.exp %26 : vector<8x64xf32>
    %cst_16 = arith.constant 1.000000e+00 : f32
    %28 = vector.broadcast %cst_16 : f32 to vector<8x64xf32>
    %29 = arith.addf %28, %27 : vector<8x64xf32>
    %30 = arith.divf %28, %29 : vector<8x64xf32>
    %31 = vector.extract_strided_slice %17 {offsets = [0, 64], sizes = [8, 32], strides = [1, 1]} : vector<8x96xf32> to vector<8x32xf32>
    %32 = vector.extract_strided_slice %30 {offsets = [0, 0], sizes = [8, 32], strides = [1, 1]} : vector<8x64xf32> to vector<8x32xf32>
    %33 = vector.extract_strided_slice %20 {offsets = [0, 64], sizes = [8, 32], strides = [1, 1]} : vector<8x96xf32> to vector<8x32xf32>
    %34 = arith.mulf %32, %33 : vector<8x32xf32>
    %35 = arith.addf %31, %34 : vector<8x32xf32>
    %36 = math.tanh %35 : vector<8x32xf32>
    %37 = vector.extract_strided_slice %30 {offsets = [0, 32], sizes = [8, 32], strides = [1, 1]} : vector<8x64xf32> to vector<8x32xf32>
    %cst_17 = arith.constant 1.000000e+00 : f32
    %38 = vector.broadcast %cst_17 : f32 to vector<8x32xf32>
    %39 = arith.subf %38, %37 : vector<8x32xf32>
    %40 = arith.mulf %39, %36 : vector<8x32xf32>
    %41 = vector.extract_strided_slice %30 {offsets = [0, 32], sizes = [8, 32], strides = [1, 1]} : vector<8x64xf32> to vector<8x32xf32>
    %42 = arith.mulf %41, %15 : vector<8x32xf32>
    %43 = arith.addf %40, %42 : vector<8x32xf32>
    %44 = vector.extract_strided_slice %18 {offsets = [0, 0], sizes = [8, 64], strides = [1, 1]} : vector<8x96xf32> to vector<8x64xf32>
    %45 = vector.extract_strided_slice %22 {offsets = [0, 0], sizes = [8, 64], strides = [1, 1]} : vector<8x96xf32> to vector<8x64xf32>
    %46 = arith.addf %44, %45 : vector<8x64xf32>
    %47 = arith.negf %46 : vector<8x64xf32>
    %48 = math.exp %47 : vector<8x64xf32>
    %cst_18 = arith.constant 1.000000e+00 : f32
    %49 = vector.broadcast %cst_18 : f32 to vector<8x64xf32>
    %50 = arith.addf %49, %48 : vector<8x64xf32>
    %51 = arith.divf %49, %50 : vector<8x64xf32>
    %52 = vector.extract_strided_slice %18 {offsets = [0, 64], sizes = [8, 32], strides = [1, 1]} : vector<8x96xf32> to vector<8x32xf32>
    %53 = vector.extract_strided_slice %51 {offsets = [0, 0], sizes = [8, 32], strides = [1, 1]} : vector<8x64xf32> to vector<8x32xf32>
    %54 = vector.extract_strided_slice %22 {offsets = [0, 64], sizes = [8, 32], strides = [1, 1]} : vector<8x96xf32> to vector<8x32xf32>
    %55 = arith.mulf %53, %54 : vector<8x32xf32>
    %56 = arith.addf %52, %55 : vector<8x32xf32>
    %57 = math.tanh %56 : vector<8x32xf32>
    %58 = vector.extract_strided_slice %51 {offsets = [0, 32], sizes = [8, 32], strides = [1, 1]} : vector<8x64xf32> to vector<8x32xf32>
    %cst_19 = arith.constant 1.000000e+00 : f32
    %59 = vector.broadcast %cst_19 : f32 to vector<8x32xf32>
    %60 = arith.subf %59, %58 : vector<8x32xf32>
    %61 = arith.mulf %60, %57 : vector<8x32xf32>
    %62 = vector.extract_strided_slice %51 {offsets = [0, 32], sizes = [8, 32], strides = [1, 1]} : vector<8x64xf32> to vector<8x32xf32>
    %63 = arith.mulf %62, %16 : vector<8x32xf32>
    %64 = arith.addf %61, %63 : vector<8x32xf32>
    %c0_20 = arith.constant 0 : index
    %c0_21 = arith.constant 0 : index
    %65 = vector.load %arg5[%c0_20, %c0_21] : memref<128x64xf32, #tpu.memory_space<vmem>>, vector<8x32xf32>
    tpu.vector_store %arg5[%c0_20, %c0_21], %43 {strides = array<i32>} : memref<128x64xf32, #tpu.memory_space<vmem>>, vector<8x32xf32>,
    %c120_22 = arith.constant 120 : index
    %c32 = arith.constant 32 : index
    %66 = vector.load %arg5[%c120_22, %c32] : memref<128x64xf32, #tpu.memory_space<vmem>>, vector<8x32xf32>
    tpu.vector_store %arg5[%c120_22, %c32], %64 {strides = array<i32>} : memref<128x64xf32, #tpu.memory_space<vmem>>, vector<8x32xf32>,
    %c8_23 = arith.constant 8 : index
    %c0_24 = arith.constant 0 : index
    %67 = vector.load %arg4[%c8_23, %c0_24] : memref<128x256xf32, #tpu.memory_space<vmem>>, vector<8x96xf32>
    %c112 = arith.constant 112 : index
    %c128_25 = arith.constant 128 : index
    %68 = vector.load %arg4[%c112, %c128_25] : memref<128x256xf32, #tpu.memory_space<vmem>>, vector<8x96xf32>
    %cst_26 = arith.constant dense<0.000000e+00> : vector<8x96xf32>
    %69 = tpu.matmul %43, %7, %cst_26 {dimension_numbers = #tpu.dot_dimension_numbers<[1], [0], [0], [1], [0, 0, 1, 1], [], []>} : vector<8x32xf32>, vector<32x96xf32>, vector<8x96xf32> -> vector<8x96xf32>
    %70 = arith.addf %69, %11 : vector<8x96xf32>
    %cst_27 = arith.constant dense<0.000000e+00> : vector<8x96xf32>
    %71 = tpu.matmul %64, %8, %cst_27 {dimension_numbers = #tpu.dot_dimension_numbers<[1], [0], [0], [1], [0, 0, 1, 1], [], []>} : vector<8x32xf32>, vector<32x96xf32>, vector<8x96xf32> -> vector<8x96xf32>
    %72 = arith.addf %71, %14 : vector<8x96xf32>
    %73 = vector.extract_strided_slice %67 {offsets = [0, 0], sizes = [8, 64], strides = [1, 1]} : vector<8x96xf32> to vector<8x64xf32>
    %74 = vector.extract_strided_slice %70 {offsets = [0, 0], sizes = [8, 64], strides = [1, 1]} : vector<8x96xf32> to vector<8x64xf32>
    %75 = arith.addf %73, %74 : vector<8x64xf32>
    %76 = arith.negf %75 : vector<8x64xf32>
    %77 = math.exp %76 : vector<8x64xf32>
    %cst_28 = arith.constant 1.000000e+00 : f32
    %78 = vector.broadcast %cst_28 : f32 to vector<8x64xf32>
    %79 = arith.addf %78, %77 : vector<8x64xf32>
    %80 = arith.divf %78, %79 : vector<8x64xf32>
    %81 = vector.extract_strided_slice %67 {offsets = [0, 64], sizes = [8, 32], strides = [1, 1]} : vector<8x96xf32> to vector<8x32xf32>
    %82 = vector.extract_strided_slice %80 {offsets = [0, 0], sizes = [8, 32], strides = [1, 1]} : vector<8x64xf32> to vector<8x32xf32>
    %83 = vector.extract_strided_slice %70 {offsets = [0, 64], sizes = [8, 32], strides = [1, 1]} : vector<8x96xf32> to vector<8x32xf32>
    %84 = arith.mulf %82, %83 : vector<8x32xf32>
    %85 = arith.addf %81, %84 : vector<8x32xf32>
    %86 = math.tanh %85 : vector<8x32xf32>
    %87 = vector.extract_strided_slice %80 {offsets = [0, 32], sizes = [8, 32], strides = [1, 1]} : vector<8x64xf32> to vector<8x32xf32>
    %cst_29 = arith.constant 1.000000e+00 : f32
    %88 = vector.broadcast %cst_29 : f32 to vector<8x32xf32>
    %89 = arith.subf %88, %87 : vector<8x32xf32>
    %90 = arith.mulf %89, %86 : vector<8x32xf32>
    %91 = vector.extract_strided_slice %80 {offsets = [0, 32], sizes = [8, 32], strides = [1, 1]} : vector<8x64xf32> to vector<8x32xf32>
    %92 = arith.mulf %91, %43 : vector<8x32xf32>
    %93 = arith.addf %90, %92 : vector<8x32xf32>
    %94 = vector.extract_strided_slice %68 {offsets = [0, 0], sizes = [8, 64], strides = [1, 1]} : vector<8x96xf32> to vector<8x64xf32>
    %95 = vector.extract_strided_slice %72 {offsets = [0, 0], sizes = [8, 64], strides = [1, 1]} : vector<8x96xf32> to vector<8x64xf32>
    %96 = arith.addf %94, %95 : vector<8x64xf32>
    %97 = arith.negf %96 : vector<8x64xf32>
    %98 = math.exp %97 : vector<8x64xf32>
    %cst_30 = arith.constant 1.000000e+00 : f32
    %99 = vector.broadcast %cst_30 : f32 to vector<8x64xf32>
    %100 = arith.addf %99, %98 : vector<8x64xf32>
    %101 = arith.divf %99, %100 : vector<8x64xf32>
    %102 = vector.extract_strided_slice %68 {offsets = [0, 64], sizes = [8, 32], strides = [1, 1]} : vector<8x96xf32> to vector<8x32xf32>
    %103 = vector.extract_strided_slice %101 {offsets = [0, 0], sizes = [8, 32], strides = [1, 1]} : vector<8x64xf32> to vector<8x32xf32>
    %104 = vector.extract_strided_slice %72 {offsets = [0, 64], sizes = [8, 32], strides = [1, 1]} : vector<8x96xf32> to vector<8x32xf32>
    %105 = arith.mulf %103, %104 : vector<8x32xf32>
    %106 = arith.addf %102, %105 : vector<8x32xf32>
    %107 = math.tanh %106 : vector<8x32xf32>
    %108 = vector.extract_strided_slice %101 {offsets = [0, 32], sizes = [8, 32], strides = [1, 1]} : vector<8x64xf32> to vector<8x32xf32>
    %cst_31 = arith.constant 1.000000e+00 : f32
    %109 = vector.broadcast %cst_31 : f32 to vector<8x32xf32>
    %110 = arith.subf %109, %108 : vector<8x32xf32>
    %111 = arith.mulf %110, %107 : vector<8x32xf32>
    %112 = vector.extract_strided_slice %101 {offsets = [0, 32], sizes = [8, 32], strides = [1, 1]} : vector<8x64xf32> to vector<8x32xf32>
    %113 = arith.mulf %112, %64 : vector<8x32xf32>
    %114 = arith.addf %111, %113 : vector<8x32xf32>
    %c8_32 = arith.constant 8 : index
    %c0_33 = arith.constant 0 : index
    %115 = vector.load %arg5[%c8_32, %c0_33] : memref<128x64xf32, #tpu.memory_space<vmem>>, vector<8x32xf32>
    tpu.vector_store %arg5[%c8_32, %c0_33], %93 {strides = array<i32>} : memref<128x64xf32, #tpu.memory_space<vmem>>, vector<8x32xf32>,
    %c112_34 = arith.constant 112 : index
    %c32_35 = arith.constant 32 : index
    %116 = vector.load %arg5[%c112_34, %c32_35] : memref<128x64xf32, #tpu.memory_space<vmem>>, vector<8x32xf32>
    tpu.vector_store %arg5[%c112_34, %c32_35], %114 {strides = array<i32>} : memref<128x64xf32, #tpu.memory_space<vmem>>, vector<8x32xf32>,
    %c16 = arith.constant 16 : index
    %c0_36 = arith.constant 0 : index
    %117 = vector.load %arg4[%c16, %c0_36] : memref<128x256xf32, #tpu.memory_space<vmem>>, vector<8x96xf32>
    %c104 = arith.constant 104 : index
    %c128_37 = arith.constant 128 : index
    %118 = vector.load %arg4[%c104, %c128_37] : memref<128x256xf32, #tpu.memory_space<vmem>>, vector<8x96xf32>
    %cst_38 = arith.constant dense<0.000000e+00> : vector<8x96xf32>
    %119 = tpu.matmul %93, %7, %cst_38 {dimension_numbers = #tpu.dot_dimension_numbers<[1], [0], [0], [1], [0, 0, 1, 1], [], []>} : vector<8x32xf32>, vector<32x96xf32>, vector<8x96xf32> -> vector<8x96xf32>
    %120 = arith.addf %119, %11 : vector<8x96xf32>
    %cst_39 = arith.constant dense<0.000000e+00> : vector<8x96xf32>
    %121 = tpu.matmul %114, %8, %cst_39 {dimension_numbers = #tpu.dot_dimension_numbers<[1], [0], [0], [1], [0, 0, 1, 1], [], []>} : vector<8x32xf32>, vector<32x96xf32>, vector<8x96xf32> -> vector<8x96xf32>
    %122 = arith.addf %121, %14 : vector<8x96xf32>
    %123 = vector.extract_strided_slice %117 {offsets = [0, 0], sizes = [8, 64], strides = [1, 1]} : vector<8x96xf32> to vector<8x64xf32>
    %124 = vector.extract_strided_slice %120 {offsets = [0, 0], sizes = [8, 64], strides = [1, 1]} : vector<8x96xf32> to vector<8x64xf32>
    %125 = arith.addf %123, %124 : vector<8x64xf32>
    %126 = arith.negf %125 : vector<8x64xf32>
    %127 = math.exp %126 : vector<8x64xf32>
    %cst_40 = arith.constant 1.000000e+00 : f32
    %128 = vector.broadcast %cst_40 : f32 to vector<8x64xf32>
    %129 = arith.addf %128, %127 : vector<8x64xf32>
    %130 = arith.divf %128, %129 : vector<8x64xf32>
    %131 = vector.extract_strided_slice %117 {offsets = [0, 64], sizes = [8, 32], strides = [1, 1]} : vector<8x96xf32> to vector<8x32xf32>
    %132 = vector.extract_strided_slice %130 {offsets = [0, 0], sizes = [8, 32], strides = [1, 1]} : vector<8x64xf32> to vector<8x32xf32>
    %133 = vector.extract_strided_slice %120 {offsets = [0, 64], sizes = [8, 32], strides = [1, 1]} : vector<8x96xf32> to vector<8x32xf32>
    %134 = arith.mulf %132, %133 : vector<8x32xf32>
    %135 = arith.addf %131, %134 : vector<8x32xf32>
    %136 = math.tanh %135 : vector<8x32xf32>
    %137 = vector.extract_strided_slice %130 {offsets = [0, 32], sizes = [8, 32], strides = [1, 1]} : vector<8x64xf32> to vector<8x32xf32>
    %cst_41 = arith.constant 1.000000e+00 : f32
    %138 = vector.broadcast %cst_41 : f32 to vector<8x32xf32>
    %139 = arith.subf %138, %137 : vector<8x32xf32>
    %140 = arith.mulf %139, %136 : vector<8x32xf32>
    %141 = vector.extract_strided_slice %130 {offsets = [0, 32], sizes = [8, 32], strides = [1, 1]} : vector<8x64xf32> to vector<8x32xf32>
    %142 = arith.mulf %141, %93 : vector<8x32xf32>
    %143 = arith.addf %140, %142 : vector<8x32xf32>
    %144 = vector.extract_strided_slice %118 {offsets = [0, 0], sizes = [8, 64], strides = [1, 1]} : vector<8x96xf32> to vector<8x64xf32>
    %145 = vector.extract_strided_slice %122 {offsets = [0, 0], sizes = [8, 64], strides = [1, 1]} : vector<8x96xf32> to vector<8x64xf32>
    %146 = arith.addf %144, %145 : vector<8x64xf32>
    %147 = arith.negf %146 : vector<8x64xf32>
    %148 = math.exp %147 : vector<8x64xf32>
    %cst_42 = arith.constant 1.000000e+00 : f32
    %149 = vector.broadcast %cst_42 : f32 to vector<8x64xf32>
    %150 = arith.addf %149, %148 : vector<8x64xf32>
    %151 = arith.divf %149, %150 : vector<8x64xf32>
    %152 = vector.extract_strided_slice %118 {offsets = [0, 64], sizes = [8, 32], strides = [1, 1]} : vector<8x96xf32> to vector<8x32xf32>
    %153 = vector.extract_strided_slice %151 {offsets = [0, 0], sizes = [8, 32], strides = [1, 1]} : vector<8x64xf32> to vector<8x32xf32>
    %154 = vector.extract_strided_slice %122 {offsets = [0, 64], sizes = [8, 32], strides = [1, 1]} : vector<8x96xf32> to vector<8x32xf32>
    %155 = arith.mulf %153, %154 : vector<8x32xf32>
    %156 = arith.addf %152, %155 : vector<8x32xf32>
    %157 = math.tanh %156 : vector<8x32xf32>
    %158 = vector.extract_strided_slice %151 {offsets = [0, 32], sizes = [8, 32], strides = [1, 1]} : vector<8x64xf32> to vector<8x32xf32>
    %cst_43 = arith.constant 1.000000e+00 : f32
    %159 = vector.broadcast %cst_43 : f32 to vector<8x32xf32>
    %160 = arith.subf %159, %158 : vector<8x32xf32>
    %161 = arith.mulf %160, %157 : vector<8x32xf32>
    %162 = vector.extract_strided_slice %151 {offsets = [0, 32], sizes = [8, 32], strides = [1, 1]} : vector<8x64xf32> to vector<8x32xf32>
    %163 = arith.mulf %162, %114 : vector<8x32xf32>
    %164 = arith.addf %161, %163 : vector<8x32xf32>
    %c16_44 = arith.constant 16 : index
    %c0_45 = arith.constant 0 : index
    %165 = vector.load %arg5[%c16_44, %c0_45] : memref<128x64xf32, #tpu.memory_space<vmem>>, vector<8x32xf32>
    tpu.vector_store %arg5[%c16_44, %c0_45], %143 {strides = array<i32>} : memref<128x64xf32, #tpu.memory_space<vmem>>, vector<8x32xf32>,
    %c104_46 = arith.constant 104 : index
    %c32_47 = arith.constant 32 : index
    %166 = vector.load %arg5[%c104_46, %c32_47] : memref<128x64xf32, #tpu.memory_space<vmem>>, vector<8x32xf32>
    tpu.vector_store %arg5[%c104_46, %c32_47], %164 {strides = array<i32>} : memref<128x64xf32, #tpu.memory_space<vmem>>, vector<8x32xf32>,
    %c24 = arith.constant 24 : index
    %c0_48 = arith.constant 0 : index
    %167 = vector.load %arg4[%c24, %c0_48] : memref<128x256xf32, #tpu.memory_space<vmem>>, vector<8x96xf32>
    %c96 = arith.constant 96 : index
    %c128_49 = arith.constant 128 : index
    %168 = vector.load %arg4[%c96, %c128_49] : memref<128x256xf32, #tpu.memory_space<vmem>>, vector<8x96xf32>
    %cst_50 = arith.constant dense<0.000000e+00> : vector<8x96xf32>
    %169 = tpu.matmul %143, %7, %cst_50 {dimension_numbers = #tpu.dot_dimension_numbers<[1], [0], [0], [1], [0, 0, 1, 1], [], []>} : vector<8x32xf32>, vector<32x96xf32>, vector<8x96xf32> -> vector<8x96xf32>
    %170 = arith.addf %169, %11 : vector<8x96xf32>
    %cst_51 = arith.constant dense<0.000000e+00> : vector<8x96xf32>
    %171 = tpu.matmul %164, %8, %cst_51 {dimension_numbers = #tpu.dot_dimension_numbers<[1], [0], [0], [1], [0, 0, 1, 1], [], []>} : vector<8x32xf32>, vector<32x96xf32>, vector<8x96xf32> -> vector<8x96xf32>
    %172 = arith.addf %171, %14 : vector<8x96xf32>
    %173 = vector.extract_strided_slice %167 {offsets = [0, 0], sizes = [8, 64], strides = [1, 1]} : vector<8x96xf32> to vector<8x64xf32>
    %174 = vector.extract_strided_slice %170 {offsets = [0, 0], sizes = [8, 64], strides = [1, 1]} : vector<8x96xf32> to vector<8x64xf32>
    %175 = arith.addf %173, %174 : vector<8x64xf32>
    %176 = arith.negf %175 : vector<8x64xf32>
    %177 = math.exp %176 : vector<8x64xf32>
    %cst_52 = arith.constant 1.000000e+00 : f32
    %178 = vector.broadcast %cst_52 : f32 to vector<8x64xf32>
    %179 = arith.addf %178, %177 : vector<8x64xf32>
    %180 = arith.divf %178, %179 : vector<8x64xf32>
    %181 = vector.extract_strided_slice %167 {offsets = [0, 64], sizes = [8, 32], strides = [1, 1]} : vector<8x96xf32> to vector<8x32xf32>
    %182 = vector.extract_strided_slice %180 {offsets = [0, 0], sizes = [8, 32], strides = [1, 1]} : vector<8x64xf32> to vector<8x32xf32>
    %183 = vector.extract_strided_slice %170 {offsets = [0, 64], sizes = [8, 32], strides = [1, 1]} : vector<8x96xf32> to vector<8x32xf32>
    %184 = arith.mulf %182, %183 : vector<8x32xf32>
    %185 = arith.addf %181, %184 : vector<8x32xf32>
    %186 = math.tanh %185 : vector<8x32xf32>
    %187 = vector.extract_strided_slice %180 {offsets = [0, 32], sizes = [8, 32], strides = [1, 1]} : vector<8x64xf32> to vector<8x32xf32>
    %cst_53 = arith.constant 1.000000e+00 : f32
    %188 = vector.broadcast %cst_53 : f32 to vector<8x32xf32>
    %189 = arith.subf %188, %187 : vector<8x32xf32>
    %190 = arith.mulf %189, %186 : vector<8x32xf32>
    %191 = vector.extract_strided_slice %180 {offsets = [0, 32], sizes = [8, 32], strides = [1, 1]} : vector<8x64xf32> to vector<8x32xf32>
    %192 = arith.mulf %191, %143 : vector<8x32xf32>
    %193 = arith.addf %190, %192 : vector<8x32xf32>
    %194 = vector.extract_strided_slice %168 {offsets = [0, 0], sizes = [8, 64], strides = [1, 1]} : vector<8x96xf32> to vector<8x64xf32>
    %195 = vector.extract_strided_slice %172 {offsets = [0, 0], sizes = [8, 64], strides = [1, 1]} : vector<8x96xf32> to vector<8x64xf32>
    %196 = arith.addf %194, %195 : vector<8x64xf32>
    %197 = arith.negf %196 : vector<8x64xf32>
    %198 = math.exp %197 : vector<8x64xf32>
    %cst_54 = arith.constant 1.000000e+00 : f32
    %199 = vector.broadcast %cst_54 : f32 to vector<8x64xf32>
    %200 = arith.addf %199, %198 : vector<8x64xf32>
    %201 = arith.divf %199, %200 : vector<8x64xf32>
    %202 = vector.extract_strided_slice %168 {offsets = [0, 64], sizes = [8, 32], strides = [1, 1]} : vector<8x96xf32> to vector<8x32xf32>
    %203 = vector.extract_strided_slice %201 {offsets = [0, 0], sizes = [8, 32], strides = [1, 1]} : vector<8x64xf32> to vector<8x32xf32>
    %204 = vector.extract_strided_slice %172 {offsets = [0, 64], sizes = [8, 32], strides = [1, 1]} : vector<8x96xf32> to vector<8x32xf32>
    %205 = arith.mulf %203, %204 : vector<8x32xf32>
    %206 = arith.addf %202, %205 : vector<8x32xf32>
    %207 = math.tanh %206 : vector<8x32xf32>
    %208 = vector.extract_strided_slice %201 {offsets = [0, 32], sizes = [8, 32], strides = [1, 1]} : vector<8x64xf32> to vector<8x32xf32>
    %cst_55 = arith.constant 1.000000e+00 : f32
    %209 = vector.broadcast %cst_55 : f32 to vector<8x32xf32>
    %210 = arith.subf %209, %208 : vector<8x32xf32>
    %211 = arith.mulf %210, %207 : vector<8x32xf32>
    %212 = vector.extract_strided_slice %201 {offsets = [0, 32], sizes = [8, 32], strides = [1, 1]} : vector<8x64xf32> to vector<8x32xf32>
    %213 = arith.mulf %212, %164 : vector<8x32xf32>
    %214 = arith.addf %211, %213 : vector<8x32xf32>
    %c24_56 = arith.constant 24 : index
    %c0_57 = arith.constant 0 : index
    %215 = vector.load %arg5[%c24_56, %c0_57] : memref<128x64xf32, #tpu.memory_space<vmem>>, vector<8x32xf32>
    tpu.vector_store %arg5[%c24_56, %c0_57], %193 {strides = array<i32>} : memref<128x64xf32, #tpu.memory_space<vmem>>, vector<8x32xf32>,
    %c96_58 = arith.constant 96 : index
    %c32_59 = arith.constant 32 : index
    %216 = vector.load %arg5[%c96_58, %c32_59] : memref<128x64xf32, #tpu.memory_space<vmem>>, vector<8x32xf32>
    tpu.vector_store %arg5[%c96_58, %c32_59], %214 {strides = array<i32>} : memref<128x64xf32, #tpu.memory_space<vmem>>, vector<8x32xf32>,
    %c32_60 = arith.constant 32 : index
    %c0_61 = arith.constant 0 : index
    %217 = vector.load %arg4[%c32_60, %c0_61] : memref<128x256xf32, #tpu.memory_space<vmem>>, vector<8x96xf32>
    %c88 = arith.constant 88 : index
    %c128_62 = arith.constant 128 : index
    %218 = vector.load %arg4[%c88, %c128_62] : memref<128x256xf32, #tpu.memory_space<vmem>>, vector<8x96xf32>
    %cst_63 = arith.constant dense<0.000000e+00> : vector<8x96xf32>
    %219 = tpu.matmul %193, %7, %cst_63 {dimension_numbers = #tpu.dot_dimension_numbers<[1], [0], [0], [1], [0, 0, 1, 1], [], []>} : vector<8x32xf32>, vector<32x96xf32>, vector<8x96xf32> -> vector<8x96xf32>
    %220 = arith.addf %219, %11 : vector<8x96xf32>
    %cst_64 = arith.constant dense<0.000000e+00> : vector<8x96xf32>
    %221 = tpu.matmul %214, %8, %cst_64 {dimension_numbers = #tpu.dot_dimension_numbers<[1], [0], [0], [1], [0, 0, 1, 1], [], []>} : vector<8x32xf32>, vector<32x96xf32>, vector<8x96xf32> -> vector<8x96xf32>
    %222 = arith.addf %221, %14 : vector<8x96xf32>
    %223 = vector.extract_strided_slice %217 {offsets = [0, 0], sizes = [8, 64], strides = [1, 1]} : vector<8x96xf32> to vector<8x64xf32>
    %224 = vector.extract_strided_slice %220 {offsets = [0, 0], sizes = [8, 64], strides = [1, 1]} : vector<8x96xf32> to vector<8x64xf32>
    %225 = arith.addf %223, %224 : vector<8x64xf32>
    %226 = arith.negf %225 : vector<8x64xf32>
    %227 = math.exp %226 : vector<8x64xf32>
    %cst_65 = arith.constant 1.000000e+00 : f32
    %228 = vector.broadcast %cst_65 : f32 to vector<8x64xf32>
    %229 = arith.addf %228, %227 : vector<8x64xf32>
    %230 = arith.divf %228, %229 : vector<8x64xf32>
    %231 = vector.extract_strided_slice %217 {offsets = [0, 64], sizes = [8, 32], strides = [1, 1]} : vector<8x96xf32> to vector<8x32xf32>
    %232 = vector.extract_strided_slice %230 {offsets = [0, 0], sizes = [8, 32], strides = [1, 1]} : vector<8x64xf32> to vector<8x32xf32>
    %233 = vector.extract_strided_slice %220 {offsets = [0, 64], sizes = [8, 32], strides = [1, 1]} : vector<8x96xf32> to vector<8x32xf32>
    %234 = arith.mulf %232, %233 : vector<8x32xf32>
    %235 = arith.addf %231, %234 : vector<8x32xf32>
    %236 = math.tanh %235 : vector<8x32xf32>
    %237 = vector.extract_strided_slice %230 {offsets = [0, 32], sizes = [8, 32], strides = [1, 1]} : vector<8x64xf32> to vector<8x32xf32>
    %cst_66 = arith.constant 1.000000e+00 : f32
    %238 = vector.broadcast %cst_66 : f32 to vector<8x32xf32>
    %239 = arith.subf %238, %237 : vector<8x32xf32>
    %240 = arith.mulf %239, %236 : vector<8x32xf32>
    %241 = vector.extract_strided_slice %230 {offsets = [0, 32], sizes = [8, 32], strides = [1, 1]} : vector<8x64xf32> to vector<8x32xf32>
    %242 = arith.mulf %241, %193 : vector<8x32xf32>
    %243 = arith.addf %240, %242 : vector<8x32xf32>
    %244 = vector.extract_strided_slice %218 {offsets = [0, 0], sizes = [8, 64], strides = [1, 1]} : vector<8x96xf32> to vector<8x64xf32>
    %245 = vector.extract_strided_slice %222 {offsets = [0, 0], sizes = [8, 64], strides = [1, 1]} : vector<8x96xf32> to vector<8x64xf32>
    %246 = arith.addf %244, %245 : vector<8x64xf32>
    %247 = arith.negf %246 : vector<8x64xf32>
    %248 = math.exp %247 : vector<8x64xf32>
    %cst_67 = arith.constant 1.000000e+00 : f32
    %249 = vector.broadcast %cst_67 : f32 to vector<8x64xf32>
    %250 = arith.addf %249, %248 : vector<8x64xf32>
    %251 = arith.divf %249, %250 : vector<8x64xf32>
    %252 = vector.extract_strided_slice %218 {offsets = [0, 64], sizes = [8, 32], strides = [1, 1]} : vector<8x96xf32> to vector<8x32xf32>
    %253 = vector.extract_strided_slice %251 {offsets = [0, 0], sizes = [8, 32], strides = [1, 1]} : vector<8x64xf32> to vector<8x32xf32>
    %254 = vector.extract_strided_slice %222 {offsets = [0, 64], sizes = [8, 32], strides = [1, 1]} : vector<8x96xf32> to vector<8x32xf32>
    %255 = arith.mulf %253, %254 : vector<8x32xf32>
    %256 = arith.addf %252, %255 : vector<8x32xf32>
    %257 = math.tanh %256 : vector<8x32xf32>
    %258 = vector.extract_strided_slice %251 {offsets = [0, 32], sizes = [8, 32], strides = [1, 1]} : vector<8x64xf32> to vector<8x32xf32>
    %cst_68 = arith.constant 1.000000e+00 : f32
    %259 = vector.broadcast %cst_68 : f32 to vector<8x32xf32>
    %260 = arith.subf %259, %258 : vector<8x32xf32>
    %261 = arith.mulf %260, %257 : vector<8x32xf32>
    %262 = vector.extract_strided_slice %251 {offsets = [0, 32], sizes = [8, 32], strides = [1, 1]} : vector<8x64xf32> to vector<8x32xf32>
    %263 = arith.mulf %262, %214 : vector<8x32xf32>
    %264 = arith.addf %261, %263 : vector<8x32xf32>
    %c32_69 = arith.constant 32 : index
    %c0_70 = arith.constant 0 : index
    %265 = vector.load %arg5[%c32_69, %c0_70] : memref<128x64xf32, #tpu.memory_space<vmem>>, vector<8x32xf32>
    tpu.vector_store %arg5[%c32_69, %c0_70], %243 {strides = array<i32>} : memref<128x64xf32, #tpu.memory_space<vmem>>, vector<8x32xf32>,
    %c88_71 = arith.constant 88 : index
    %c32_72 = arith.constant 32 : index
    %266 = vector.load %arg5[%c88_71, %c32_72] : memref<128x64xf32, #tpu.memory_space<vmem>>, vector<8x32xf32>
    tpu.vector_store %arg5[%c88_71, %c32_72], %264 {strides = array<i32>} : memref<128x64xf32, #tpu.memory_space<vmem>>, vector<8x32xf32>,
    %c40_73 = arith.constant 40 : index
    %c0_74 = arith.constant 0 : index
    %267 = vector.load %arg4[%c40_73, %c0_74] : memref<128x256xf32, #tpu.memory_space<vmem>>, vector<8x96xf32>
    %c80 = arith.constant 80 : index
    %c128_75 = arith.constant 128 : index
    %268 = vector.load %arg4[%c80, %c128_75] : memref<128x256xf32, #tpu.memory_space<vmem>>, vector<8x96xf32>
    %cst_76 = arith.constant dense<0.000000e+00> : vector<8x96xf32>
    %269 = tpu.matmul %243, %7, %cst_76 {dimension_numbers = #tpu.dot_dimension_numbers<[1], [0], [0], [1], [0, 0, 1, 1], [], []>} : vector<8x32xf32>, vector<32x96xf32>, vector<8x96xf32> -> vector<8x96xf32>
    %270 = arith.addf %269, %11 : vector<8x96xf32>
    %cst_77 = arith.constant dense<0.000000e+00> : vector<8x96xf32>
    %271 = tpu.matmul %264, %8, %cst_77 {dimension_numbers = #tpu.dot_dimension_numbers<[1], [0], [0], [1], [0, 0, 1, 1], [], []>} : vector<8x32xf32>, vector<32x96xf32>, vector<8x96xf32> -> vector<8x96xf32>
    %272 = arith.addf %271, %14 : vector<8x96xf32>
    %273 = vector.extract_strided_slice %267 {offsets = [0, 0], sizes = [8, 64], strides = [1, 1]} : vector<8x96xf32> to vector<8x64xf32>
    %274 = vector.extract_strided_slice %270 {offsets = [0, 0], sizes = [8, 64], strides = [1, 1]} : vector<8x96xf32> to vector<8x64xf32>
    %275 = arith.addf %273, %274 : vector<8x64xf32>
    %276 = arith.negf %275 : vector<8x64xf32>
    %277 = math.exp %276 : vector<8x64xf32>
    %cst_78 = arith.constant 1.000000e+00 : f32
    %278 = vector.broadcast %cst_78 : f32 to vector<8x64xf32>
    %279 = arith.addf %278, %277 : vector<8x64xf32>
    %280 = arith.divf %278, %279 : vector<8x64xf32>
    %281 = vector.extract_strided_slice %267 {offsets = [0, 64], sizes = [8, 32], strides = [1, 1]} : vector<8x96xf32> to vector<8x32xf32>
    %282 = vector.extract_strided_slice %280 {offsets = [0, 0], sizes = [8, 32], strides = [1, 1]} : vector<8x64xf32> to vector<8x32xf32>
    %283 = vector.extract_strided_slice %270 {offsets = [0, 64], sizes = [8, 32], strides = [1, 1]} : vector<8x96xf32> to vector<8x32xf32>
    %284 = arith.mulf %282, %283 : vector<8x32xf32>
    %285 = arith.addf %281, %284 : vector<8x32xf32>
    %286 = math.tanh %285 : vector<8x32xf32>
    %287 = vector.extract_strided_slice %280 {offsets = [0, 32], sizes = [8, 32], strides = [1, 1]} : vector<8x64xf32> to vector<8x32xf32>
    %cst_79 = arith.constant 1.000000e+00 : f32
    %288 = vector.broadcast %cst_79 : f32 to vector<8x32xf32>
    %289 = arith.subf %288, %287 : vector<8x32xf32>
    %290 = arith.mulf %289, %286 : vector<8x32xf32>
    %291 = vector.extract_strided_slice %280 {offsets = [0, 32], sizes = [8, 32], strides = [1, 1]} : vector<8x64xf32> to vector<8x32xf32>
    %292 = arith.mulf %291, %243 : vector<8x32xf32>
    %293 = arith.addf %290, %292 : vector<8x32xf32>
    %294 = vector.extract_strided_slice %268 {offsets = [0, 0], sizes = [8, 64], strides = [1, 1]} : vector<8x96xf32> to vector<8x64xf32>
    %295 = vector.extract_strided_slice %272 {offsets = [0, 0], sizes = [8, 64], strides = [1, 1]} : vector<8x96xf32> to vector<8x64xf32>
    %296 = arith.addf %294, %295 : vector<8x64xf32>
    %297 = arith.negf %296 : vector<8x64xf32>
    %298 = math.exp %297 : vector<8x64xf32>
    %cst_80 = arith.constant 1.000000e+00 : f32
    %299 = vector.broadcast %cst_80 : f32 to vector<8x64xf32>
    %300 = arith.addf %299, %298 : vector<8x64xf32>
    %301 = arith.divf %299, %300 : vector<8x64xf32>
    %302 = vector.extract_strided_slice %268 {offsets = [0, 64], sizes = [8, 32], strides = [1, 1]} : vector<8x96xf32> to vector<8x32xf32>
    %303 = vector.extract_strided_slice %301 {offsets = [0, 0], sizes = [8, 32], strides = [1, 1]} : vector<8x64xf32> to vector<8x32xf32>
    %304 = vector.extract_strided_slice %272 {offsets = [0, 64], sizes = [8, 32], strides = [1, 1]} : vector<8x96xf32> to vector<8x32xf32>
    %305 = arith.mulf %303, %304 : vector<8x32xf32>
    %306 = arith.addf %302, %305 : vector<8x32xf32>
    %307 = math.tanh %306 : vector<8x32xf32>
    %308 = vector.extract_strided_slice %301 {offsets = [0, 32], sizes = [8, 32], strides = [1, 1]} : vector<8x64xf32> to vector<8x32xf32>
    %cst_81 = arith.constant 1.000000e+00 : f32
    %309 = vector.broadcast %cst_81 : f32 to vector<8x32xf32>
    %310 = arith.subf %309, %308 : vector<8x32xf32>
    %311 = arith.mulf %310, %307 : vector<8x32xf32>
    %312 = vector.extract_strided_slice %301 {offsets = [0, 32], sizes = [8, 32], strides = [1, 1]} : vector<8x64xf32> to vector<8x32xf32>
    %313 = arith.mulf %312, %264 : vector<8x32xf32>
    %314 = arith.addf %311, %313 : vector<8x32xf32>
    %c40_82 = arith.constant 40 : index
    %c0_83 = arith.constant 0 : index
    %315 = vector.load %arg5[%c40_82, %c0_83] : memref<128x64xf32, #tpu.memory_space<vmem>>, vector<8x32xf32>
    tpu.vector_store %arg5[%c40_82, %c0_83], %293 {strides = array<i32>} : memref<128x64xf32, #tpu.memory_space<vmem>>, vector<8x32xf32>,
    %c80_84 = arith.constant 80 : index
    %c32_85 = arith.constant 32 : index
    %316 = vector.load %arg5[%c80_84, %c32_85] : memref<128x64xf32, #tpu.memory_space<vmem>>, vector<8x32xf32>
    tpu.vector_store %arg5[%c80_84, %c32_85], %314 {strides = array<i32>} : memref<128x64xf32, #tpu.memory_space<vmem>>, vector<8x32xf32>,
    %c48 = arith.constant 48 : index
    %c0_86 = arith.constant 0 : index
    %317 = vector.load %arg4[%c48, %c0_86] : memref<128x256xf32, #tpu.memory_space<vmem>>, vector<8x96xf32>
    %c72 = arith.constant 72 : index
    %c128_87 = arith.constant 128 : index
    %318 = vector.load %arg4[%c72, %c128_87] : memref<128x256xf32, #tpu.memory_space<vmem>>, vector<8x96xf32>
    %cst_88 = arith.constant dense<0.000000e+00> : vector<8x96xf32>
    %319 = tpu.matmul %293, %7, %cst_88 {dimension_numbers = #tpu.dot_dimension_numbers<[1], [0], [0], [1], [0, 0, 1, 1], [], []>} : vector<8x32xf32>, vector<32x96xf32>, vector<8x96xf32> -> vector<8x96xf32>
    %320 = arith.addf %319, %11 : vector<8x96xf32>
    %cst_89 = arith.constant dense<0.000000e+00> : vector<8x96xf32>
    %321 = tpu.matmul %314, %8, %cst_89 {dimension_numbers = #tpu.dot_dimension_numbers<[1], [0], [0], [1], [0, 0, 1, 1], [], []>} : vector<8x32xf32>, vector<32x96xf32>, vector<8x96xf32> -> vector<8x96xf32>
    %322 = arith.addf %321, %14 : vector<8x96xf32>
    %323 = vector.extract_strided_slice %317 {offsets = [0, 0], sizes = [8, 64], strides = [1, 1]} : vector<8x96xf32> to vector<8x64xf32>
    %324 = vector.extract_strided_slice %320 {offsets = [0, 0], sizes = [8, 64], strides = [1, 1]} : vector<8x96xf32> to vector<8x64xf32>
    %325 = arith.addf %323, %324 : vector<8x64xf32>
    %326 = arith.negf %325 : vector<8x64xf32>
    %327 = math.exp %326 : vector<8x64xf32>
    %cst_90 = arith.constant 1.000000e+00 : f32
    %328 = vector.broadcast %cst_90 : f32 to vector<8x64xf32>
    %329 = arith.addf %328, %327 : vector<8x64xf32>
    %330 = arith.divf %328, %329 : vector<8x64xf32>
    %331 = vector.extract_strided_slice %317 {offsets = [0, 64], sizes = [8, 32], strides = [1, 1]} : vector<8x96xf32> to vector<8x32xf32>
    %332 = vector.extract_strided_slice %330 {offsets = [0, 0], sizes = [8, 32], strides = [1, 1]} : vector<8x64xf32> to vector<8x32xf32>
    %333 = vector.extract_strided_slice %320 {offsets = [0, 64], sizes = [8, 32], strides = [1, 1]} : vector<8x96xf32> to vector<8x32xf32>
    %334 = arith.mulf %332, %333 : vector<8x32xf32>
    %335 = arith.addf %331, %334 : vector<8x32xf32>
    %336 = math.tanh %335 : vector<8x32xf32>
    %337 = vector.extract_strided_slice %330 {offsets = [0, 32], sizes = [8, 32], strides = [1, 1]} : vector<8x64xf32> to vector<8x32xf32>
    %cst_91 = arith.constant 1.000000e+00 : f32
    %338 = vector.broadcast %cst_91 : f32 to vector<8x32xf32>
    %339 = arith.subf %338, %337 : vector<8x32xf32>
    %340 = arith.mulf %339, %336 : vector<8x32xf32>
    %341 = vector.extract_strided_slice %330 {offsets = [0, 32], sizes = [8, 32], strides = [1, 1]} : vector<8x64xf32> to vector<8x32xf32>
    %342 = arith.mulf %341, %293 : vector<8x32xf32>
    %343 = arith.addf %340, %342 : vector<8x32xf32>
    %344 = vector.extract_strided_slice %318 {offsets = [0, 0], sizes = [8, 64], strides = [1, 1]} : vector<8x96xf32> to vector<8x64xf32>
    %345 = vector.extract_strided_slice %322 {offsets = [0, 0], sizes = [8, 64], strides = [1, 1]} : vector<8x96xf32> to vector<8x64xf32>
    %346 = arith.addf %344, %345 : vector<8x64xf32>
    %347 = arith.negf %346 : vector<8x64xf32>
    %348 = math.exp %347 : vector<8x64xf32>
    %cst_92 = arith.constant 1.000000e+00 : f32
    %349 = vector.broadcast %cst_92 : f32 to vector<8x64xf32>
    %350 = arith.addf %349, %348 : vector<8x64xf32>
    %351 = arith.divf %349, %350 : vector<8x64xf32>
    %352 = vector.extract_strided_slice %318 {offsets = [0, 64], sizes = [8, 32], strides = [1, 1]} : vector<8x96xf32> to vector<8x32xf32>
    %353 = vector.extract_strided_slice %351 {offsets = [0, 0], sizes = [8, 32], strides = [1, 1]} : vector<8x64xf32> to vector<8x32xf32>
    %354 = vector.extract_strided_slice %322 {offsets = [0, 64], sizes = [8, 32], strides = [1, 1]} : vector<8x96xf32> to vector<8x32xf32>
    %355 = arith.mulf %353, %354 : vector<8x32xf32>
    %356 = arith.addf %352, %355 : vector<8x32xf32>
    %357 = math.tanh %356 : vector<8x32xf32>
    %358 = vector.extract_strided_slice %351 {offsets = [0, 32], sizes = [8, 32], strides = [1, 1]} : vector<8x64xf32> to vector<8x32xf32>
    %cst_93 = arith.constant 1.000000e+00 : f32
    %359 = vector.broadcast %cst_93 : f32 to vector<8x32xf32>
    %360 = arith.subf %359, %358 : vector<8x32xf32>
    %361 = arith.mulf %360, %357 : vector<8x32xf32>
    %362 = vector.extract_strided_slice %351 {offsets = [0, 32], sizes = [8, 32], strides = [1, 1]} : vector<8x64xf32> to vector<8x32xf32>
    %363 = arith.mulf %362, %314 : vector<8x32xf32>
    %364 = arith.addf %361, %363 : vector<8x32xf32>
    %c48_94 = arith.constant 48 : index
    %c0_95 = arith.constant 0 : index
    %365 = vector.load %arg5[%c48_94, %c0_95] : memref<128x64xf32, #tpu.memory_space<vmem>>, vector<8x32xf32>
    tpu.vector_store %arg5[%c48_94, %c0_95], %343 {strides = array<i32>} : memref<128x64xf32, #tpu.memory_space<vmem>>, vector<8x32xf32>,
    %c72_96 = arith.constant 72 : index
    %c32_97 = arith.constant 32 : index
    %366 = vector.load %arg5[%c72_96, %c32_97] : memref<128x64xf32, #tpu.memory_space<vmem>>, vector<8x32xf32>
    tpu.vector_store %arg5[%c72_96, %c32_97], %364 {strides = array<i32>} : memref<128x64xf32, #tpu.memory_space<vmem>>, vector<8x32xf32>,
    %c56 = arith.constant 56 : index
    %c0_98 = arith.constant 0 : index
    %367 = vector.load %arg4[%c56, %c0_98] : memref<128x256xf32, #tpu.memory_space<vmem>>, vector<8x96xf32>
    %c64 = arith.constant 64 : index
    %c128_99 = arith.constant 128 : index
    %368 = vector.load %arg4[%c64, %c128_99] : memref<128x256xf32, #tpu.memory_space<vmem>>, vector<8x96xf32>
    %cst_100 = arith.constant dense<0.000000e+00> : vector<8x96xf32>
    %369 = tpu.matmul %343, %7, %cst_100 {dimension_numbers = #tpu.dot_dimension_numbers<[1], [0], [0], [1], [0, 0, 1, 1], [], []>} : vector<8x32xf32>, vector<32x96xf32>, vector<8x96xf32> -> vector<8x96xf32>
    %370 = arith.addf %369, %11 : vector<8x96xf32>
    %cst_101 = arith.constant dense<0.000000e+00> : vector<8x96xf32>
    %371 = tpu.matmul %364, %8, %cst_101 {dimension_numbers = #tpu.dot_dimension_numbers<[1], [0], [0], [1], [0, 0, 1, 1], [], []>} : vector<8x32xf32>, vector<32x96xf32>, vector<8x96xf32> -> vector<8x96xf32>
    %372 = arith.addf %371, %14 : vector<8x96xf32>
    %373 = vector.extract_strided_slice %367 {offsets = [0, 0], sizes = [8, 64], strides = [1, 1]} : vector<8x96xf32> to vector<8x64xf32>
    %374 = vector.extract_strided_slice %370 {offsets = [0, 0], sizes = [8, 64], strides = [1, 1]} : vector<8x96xf32> to vector<8x64xf32>
    %375 = arith.addf %373, %374 : vector<8x64xf32>
    %376 = arith.negf %375 : vector<8x64xf32>
    %377 = math.exp %376 : vector<8x64xf32>
    %cst_102 = arith.constant 1.000000e+00 : f32
    %378 = vector.broadcast %cst_102 : f32 to vector<8x64xf32>
    %379 = arith.addf %378, %377 : vector<8x64xf32>
    %380 = arith.divf %378, %379 : vector<8x64xf32>
    %381 = vector.extract_strided_slice %367 {offsets = [0, 64], sizes = [8, 32], strides = [1, 1]} : vector<8x96xf32> to vector<8x32xf32>
    %382 = vector.extract_strided_slice %380 {offsets = [0, 0], sizes = [8, 32], strides = [1, 1]} : vector<8x64xf32> to vector<8x32xf32>
    %383 = vector.extract_strided_slice %370 {offsets = [0, 64], sizes = [8, 32], strides = [1, 1]} : vector<8x96xf32> to vector<8x32xf32>
    %384 = arith.mulf %382, %383 : vector<8x32xf32>
    %385 = arith.addf %381, %384 : vector<8x32xf32>
    %386 = math.tanh %385 : vector<8x32xf32>
    %387 = vector.extract_strided_slice %380 {offsets = [0, 32], sizes = [8, 32], strides = [1, 1]} : vector<8x64xf32> to vector<8x32xf32>
    %cst_103 = arith.constant 1.000000e+00 : f32
    %388 = vector.broadcast %cst_103 : f32 to vector<8x32xf32>
    %389 = arith.subf %388, %387 : vector<8x32xf32>
    %390 = arith.mulf %389, %386 : vector<8x32xf32>
    %391 = vector.extract_strided_slice %380 {offsets = [0, 32], sizes = [8, 32], strides = [1, 1]} : vector<8x64xf32> to vector<8x32xf32>
    %392 = arith.mulf %391, %343 : vector<8x32xf32>
    %393 = arith.addf %390, %392 : vector<8x32xf32>
    %394 = vector.extract_strided_slice %368 {offsets = [0, 0], sizes = [8, 64], strides = [1, 1]} : vector<8x96xf32> to vector<8x64xf32>
    %395 = vector.extract_strided_slice %372 {offsets = [0, 0], sizes = [8, 64], strides = [1, 1]} : vector<8x96xf32> to vector<8x64xf32>
    %396 = arith.addf %394, %395 : vector<8x64xf32>
    %397 = arith.negf %396 : vector<8x64xf32>
    %398 = math.exp %397 : vector<8x64xf32>
    %cst_104 = arith.constant 1.000000e+00 : f32
    %399 = vector.broadcast %cst_104 : f32 to vector<8x64xf32>
    %400 = arith.addf %399, %398 : vector<8x64xf32>
    %401 = arith.divf %399, %400 : vector<8x64xf32>
    %402 = vector.extract_strided_slice %368 {offsets = [0, 64], sizes = [8, 32], strides = [1, 1]} : vector<8x96xf32> to vector<8x32xf32>
    %403 = vector.extract_strided_slice %401 {offsets = [0, 0], sizes = [8, 32], strides = [1, 1]} : vector<8x64xf32> to vector<8x32xf32>
    %404 = vector.extract_strided_slice %372 {offsets = [0, 64], sizes = [8, 32], strides = [1, 1]} : vector<8x96xf32> to vector<8x32xf32>
    %405 = arith.mulf %403, %404 : vector<8x32xf32>
    %406 = arith.addf %402, %405 : vector<8x32xf32>
    %407 = math.tanh %406 : vector<8x32xf32>
    %408 = vector.extract_strided_slice %401 {offsets = [0, 32], sizes = [8, 32], strides = [1, 1]} : vector<8x64xf32> to vector<8x32xf32>
    %cst_105 = arith.constant 1.000000e+00 : f32
    %409 = vector.broadcast %cst_105 : f32 to vector<8x32xf32>
    %410 = arith.subf %409, %408 : vector<8x32xf32>
    %411 = arith.mulf %410, %407 : vector<8x32xf32>
    %412 = vector.extract_strided_slice %401 {offsets = [0, 32], sizes = [8, 32], strides = [1, 1]} : vector<8x64xf32> to vector<8x32xf32>
    %413 = arith.mulf %412, %364 : vector<8x32xf32>
    %414 = arith.addf %411, %413 : vector<8x32xf32>
    %c56_106 = arith.constant 56 : index
    %c0_107 = arith.constant 0 : index
    %415 = vector.load %arg5[%c56_106, %c0_107] : memref<128x64xf32, #tpu.memory_space<vmem>>, vector<8x32xf32>
    tpu.vector_store %arg5[%c56_106, %c0_107], %393 {strides = array<i32>} : memref<128x64xf32, #tpu.memory_space<vmem>>, vector<8x32xf32>,
    %c64_108 = arith.constant 64 : index
    %c32_109 = arith.constant 32 : index
    %416 = vector.load %arg5[%c64_108, %c32_109] : memref<128x64xf32, #tpu.memory_space<vmem>>, vector<8x32xf32>
    tpu.vector_store %arg5[%c64_108, %c32_109], %414 {strides = array<i32>} : memref<128x64xf32, #tpu.memory_space<vmem>>, vector<8x32xf32>,
    %c64_110 = arith.constant 64 : index
    %c0_111 = arith.constant 0 : index
    %417 = vector.load %arg4[%c64_110, %c0_111] : memref<128x256xf32, #tpu.memory_space<vmem>>, vector<8x96xf32>
    %c56_112 = arith.constant 56 : index
    %c128_113 = arith.constant 128 : index
    %418 = vector.load %arg4[%c56_112, %c128_113] : memref<128x256xf32, #tpu.memory_space<vmem>>, vector<8x96xf32>
    %cst_114 = arith.constant dense<0.000000e+00> : vector<8x96xf32>
    %419 = tpu.matmul %393, %7, %cst_114 {dimension_numbers = #tpu.dot_dimension_numbers<[1], [0], [0], [1], [0, 0, 1, 1], [], []>} : vector<8x32xf32>, vector<32x96xf32>, vector<8x96xf32> -> vector<8x96xf32>
    %420 = arith.addf %419, %11 : vector<8x96xf32>
    %cst_115 = arith.constant dense<0.000000e+00> : vector<8x96xf32>
    %421 = tpu.matmul %414, %8, %cst_115 {dimension_numbers = #tpu.dot_dimension_numbers<[1], [0], [0], [1], [0, 0, 1, 1], [], []>} : vector<8x32xf32>, vector<32x96xf32>, vector<8x96xf32> -> vector<8x96xf32>
    %422 = arith.addf %421, %14 : vector<8x96xf32>
    %423 = vector.extract_strided_slice %417 {offsets = [0, 0], sizes = [8, 64], strides = [1, 1]} : vector<8x96xf32> to vector<8x64xf32>
    %424 = vector.extract_strided_slice %420 {offsets = [0, 0], sizes = [8, 64], strides = [1, 1]} : vector<8x96xf32> to vector<8x64xf32>
    %425 = arith.addf %423, %424 : vector<8x64xf32>
    %426 = arith.negf %425 : vector<8x64xf32>
    %427 = math.exp %426 : vector<8x64xf32>
    %cst_116 = arith.constant 1.000000e+00 : f32
    %428 = vector.broadcast %cst_116 : f32 to vector<8x64xf32>
    %429 = arith.addf %428, %427 : vector<8x64xf32>
    %430 = arith.divf %428, %429 : vector<8x64xf32>
    %431 = vector.extract_strided_slice %417 {offsets = [0, 64], sizes = [8, 32], strides = [1, 1]} : vector<8x96xf32> to vector<8x32xf32>
    %432 = vector.extract_strided_slice %430 {offsets = [0, 0], sizes = [8, 32], strides = [1, 1]} : vector<8x64xf32> to vector<8x32xf32>
    %433 = vector.extract_strided_slice %420 {offsets = [0, 64], sizes = [8, 32], strides = [1, 1]} : vector<8x96xf32> to vector<8x32xf32>
    %434 = arith.mulf %432, %433 : vector<8x32xf32>
    %435 = arith.addf %431, %434 : vector<8x32xf32>
    %436 = math.tanh %435 : vector<8x32xf32>
    %437 = vector.extract_strided_slice %430 {offsets = [0, 32], sizes = [8, 32], strides = [1, 1]} : vector<8x64xf32> to vector<8x32xf32>
    %cst_117 = arith.constant 1.000000e+00 : f32
    %438 = vector.broadcast %cst_117 : f32 to vector<8x32xf32>
    %439 = arith.subf %438, %437 : vector<8x32xf32>
    %440 = arith.mulf %439, %436 : vector<8x32xf32>
    %441 = vector.extract_strided_slice %430 {offsets = [0, 32], sizes = [8, 32], strides = [1, 1]} : vector<8x64xf32> to vector<8x32xf32>
    %442 = arith.mulf %441, %393 : vector<8x32xf32>
    %443 = arith.addf %440, %442 : vector<8x32xf32>
    %444 = vector.extract_strided_slice %418 {offsets = [0, 0], sizes = [8, 64], strides = [1, 1]} : vector<8x96xf32> to vector<8x64xf32>
    %445 = vector.extract_strided_slice %422 {offsets = [0, 0], sizes = [8, 64], strides = [1, 1]} : vector<8x96xf32> to vector<8x64xf32>
    %446 = arith.addf %444, %445 : vector<8x64xf32>
    %447 = arith.negf %446 : vector<8x64xf32>
    %448 = math.exp %447 : vector<8x64xf32>
    %cst_118 = arith.constant 1.000000e+00 : f32
    %449 = vector.broadcast %cst_118 : f32 to vector<8x64xf32>
    %450 = arith.addf %449, %448 : vector<8x64xf32>
    %451 = arith.divf %449, %450 : vector<8x64xf32>
    %452 = vector.extract_strided_slice %418 {offsets = [0, 64], sizes = [8, 32], strides = [1, 1]} : vector<8x96xf32> to vector<8x32xf32>
    %453 = vector.extract_strided_slice %451 {offsets = [0, 0], sizes = [8, 32], strides = [1, 1]} : vector<8x64xf32> to vector<8x32xf32>
    %454 = vector.extract_strided_slice %422 {offsets = [0, 64], sizes = [8, 32], strides = [1, 1]} : vector<8x96xf32> to vector<8x32xf32>
    %455 = arith.mulf %453, %454 : vector<8x32xf32>
    %456 = arith.addf %452, %455 : vector<8x32xf32>
    %457 = math.tanh %456 : vector<8x32xf32>
    %458 = vector.extract_strided_slice %451 {offsets = [0, 32], sizes = [8, 32], strides = [1, 1]} : vector<8x64xf32> to vector<8x32xf32>
    %cst_119 = arith.constant 1.000000e+00 : f32
    %459 = vector.broadcast %cst_119 : f32 to vector<8x32xf32>
    %460 = arith.subf %459, %458 : vector<8x32xf32>
    %461 = arith.mulf %460, %457 : vector<8x32xf32>
    %462 = vector.extract_strided_slice %451 {offsets = [0, 32], sizes = [8, 32], strides = [1, 1]} : vector<8x64xf32> to vector<8x32xf32>
    %463 = arith.mulf %462, %414 : vector<8x32xf32>
    %464 = arith.addf %461, %463 : vector<8x32xf32>
    %c64_120 = arith.constant 64 : index
    %c0_121 = arith.constant 0 : index
    %465 = vector.load %arg5[%c64_120, %c0_121] : memref<128x64xf32, #tpu.memory_space<vmem>>, vector<8x32xf32>
    tpu.vector_store %arg5[%c64_120, %c0_121], %443 {strides = array<i32>} : memref<128x64xf32, #tpu.memory_space<vmem>>, vector<8x32xf32>,
    %c56_122 = arith.constant 56 : index
    %c32_123 = arith.constant 32 : index
    %466 = vector.load %arg5[%c56_122, %c32_123] : memref<128x64xf32, #tpu.memory_space<vmem>>, vector<8x32xf32>
    tpu.vector_store %arg5[%c56_122, %c32_123], %464 {strides = array<i32>} : memref<128x64xf32, #tpu.memory_space<vmem>>, vector<8x32xf32>,
    %c72_124 = arith.constant 72 : index
    %c0_125 = arith.constant 0 : index
    %467 = vector.load %arg4[%c72_124, %c0_125] : memref<128x256xf32, #tpu.memory_space<vmem>>, vector<8x96xf32>
    %c48_126 = arith.constant 48 : index
    %c128_127 = arith.constant 128 : index
    %468 = vector.load %arg4[%c48_126, %c128_127] : memref<128x256xf32, #tpu.memory_space<vmem>>, vector<8x96xf32>
    %cst_128 = arith.constant dense<0.000000e+00> : vector<8x96xf32>
    %469 = tpu.matmul %443, %7, %cst_128 {dimension_numbers = #tpu.dot_dimension_numbers<[1], [0], [0], [1], [0, 0, 1, 1], [], []>} : vector<8x32xf32>, vector<32x96xf32>, vector<8x96xf32> -> vector<8x96xf32>
    %470 = arith.addf %469, %11 : vector<8x96xf32>
    %cst_129 = arith.constant dense<0.000000e+00> : vector<8x96xf32>
    %471 = tpu.matmul %464, %8, %cst_129 {dimension_numbers = #tpu.dot_dimension_numbers<[1], [0], [0], [1], [0, 0, 1, 1], [], []>} : vector<8x32xf32>, vector<32x96xf32>, vector<8x96xf32> -> vector<8x96xf32>
    %472 = arith.addf %471, %14 : vector<8x96xf32>
    %473 = vector.extract_strided_slice %467 {offsets = [0, 0], sizes = [8, 64], strides = [1, 1]} : vector<8x96xf32> to vector<8x64xf32>
    %474 = vector.extract_strided_slice %470 {offsets = [0, 0], sizes = [8, 64], strides = [1, 1]} : vector<8x96xf32> to vector<8x64xf32>
    %475 = arith.addf %473, %474 : vector<8x64xf32>
    %476 = arith.negf %475 : vector<8x64xf32>
    %477 = math.exp %476 : vector<8x64xf32>
    %cst_130 = arith.constant 1.000000e+00 : f32
    %478 = vector.broadcast %cst_130 : f32 to vector<8x64xf32>
    %479 = arith.addf %478, %477 : vector<8x64xf32>
    %480 = arith.divf %478, %479 : vector<8x64xf32>
    %481 = vector.extract_strided_slice %467 {offsets = [0, 64], sizes = [8, 32], strides = [1, 1]} : vector<8x96xf32> to vector<8x32xf32>
    %482 = vector.extract_strided_slice %480 {offsets = [0, 0], sizes = [8, 32], strides = [1, 1]} : vector<8x64xf32> to vector<8x32xf32>
    %483 = vector.extract_strided_slice %470 {offsets = [0, 64], sizes = [8, 32], strides = [1, 1]} : vector<8x96xf32> to vector<8x32xf32>
    %484 = arith.mulf %482, %483 : vector<8x32xf32>
    %485 = arith.addf %481, %484 : vector<8x32xf32>
    %486 = math.tanh %485 : vector<8x32xf32>
    %487 = vector.extract_strided_slice %480 {offsets = [0, 32], sizes = [8, 32], strides = [1, 1]} : vector<8x64xf32> to vector<8x32xf32>
    %cst_131 = arith.constant 1.000000e+00 : f32
    %488 = vector.broadcast %cst_131 : f32 to vector<8x32xf32>
    %489 = arith.subf %488, %487 : vector<8x32xf32>
    %490 = arith.mulf %489, %486 : vector<8x32xf32>
    %491 = vector.extract_strided_slice %480 {offsets = [0, 32], sizes = [8, 32], strides = [1, 1]} : vector<8x64xf32> to vector<8x32xf32>
    %492 = arith.mulf %491, %443 : vector<8x32xf32>
    %493 = arith.addf %490, %492 : vector<8x32xf32>
    %494 = vector.extract_strided_slice %468 {offsets = [0, 0], sizes = [8, 64], strides = [1, 1]} : vector<8x96xf32> to vector<8x64xf32>
    %495 = vector.extract_strided_slice %472 {offsets = [0, 0], sizes = [8, 64], strides = [1, 1]} : vector<8x96xf32> to vector<8x64xf32>
    %496 = arith.addf %494, %495 : vector<8x64xf32>
    %497 = arith.negf %496 : vector<8x64xf32>
    %498 = math.exp %497 : vector<8x64xf32>
    %cst_132 = arith.constant 1.000000e+00 : f32
    %499 = vector.broadcast %cst_132 : f32 to vector<8x64xf32>
    %500 = arith.addf %499, %498 : vector<8x64xf32>
    %501 = arith.divf %499, %500 : vector<8x64xf32>
    %502 = vector.extract_strided_slice %468 {offsets = [0, 64], sizes = [8, 32], strides = [1, 1]} : vector<8x96xf32> to vector<8x32xf32>
    %503 = vector.extract_strided_slice %501 {offsets = [0, 0], sizes = [8, 32], strides = [1, 1]} : vector<8x64xf32> to vector<8x32xf32>
    %504 = vector.extract_strided_slice %472 {offsets = [0, 64], sizes = [8, 32], strides = [1, 1]} : vector<8x96xf32> to vector<8x32xf32>
    %505 = arith.mulf %503, %504 : vector<8x32xf32>
    %506 = arith.addf %502, %505 : vector<8x32xf32>
    %507 = math.tanh %506 : vector<8x32xf32>
    %508 = vector.extract_strided_slice %501 {offsets = [0, 32], sizes = [8, 32], strides = [1, 1]} : vector<8x64xf32> to vector<8x32xf32>
    %cst_133 = arith.constant 1.000000e+00 : f32
    %509 = vector.broadcast %cst_133 : f32 to vector<8x32xf32>
    %510 = arith.subf %509, %508 : vector<8x32xf32>
    %511 = arith.mulf %510, %507 : vector<8x32xf32>
    %512 = vector.extract_strided_slice %501 {offsets = [0, 32], sizes = [8, 32], strides = [1, 1]} : vector<8x64xf32> to vector<8x32xf32>
    %513 = arith.mulf %512, %464 : vector<8x32xf32>
    %514 = arith.addf %511, %513 : vector<8x32xf32>
    %c72_134 = arith.constant 72 : index
    %c0_135 = arith.constant 0 : index
    %515 = vector.load %arg5[%c72_134, %c0_135] : memref<128x64xf32, #tpu.memory_space<vmem>>, vector<8x32xf32>
    tpu.vector_store %arg5[%c72_134, %c0_135], %493 {strides = array<i32>} : memref<128x64xf32, #tpu.memory_space<vmem>>, vector<8x32xf32>,
    %c48_136 = arith.constant 48 : index
    %c32_137 = arith.constant 32 : index
    %516 = vector.load %arg5[%c48_136, %c32_137] : memref<128x64xf32, #tpu.memory_space<vmem>>, vector<8x32xf32>
    tpu.vector_store %arg5[%c48_136, %c32_137], %514 {strides = array<i32>} : memref<128x64xf32, #tpu.memory_space<vmem>>, vector<8x32xf32>,
    %c80_138 = arith.constant 80 : index
    %c0_139 = arith.constant 0 : index
    %517 = vector.load %arg4[%c80_138, %c0_139] : memref<128x256xf32, #tpu.memory_space<vmem>>, vector<8x96xf32>
    %c40_140 = arith.constant 40 : index
    %c128_141 = arith.constant 128 : index
    %518 = vector.load %arg4[%c40_140, %c128_141] : memref<128x256xf32, #tpu.memory_space<vmem>>, vector<8x96xf32>
    %cst_142 = arith.constant dense<0.000000e+00> : vector<8x96xf32>
    %519 = tpu.matmul %493, %7, %cst_142 {dimension_numbers = #tpu.dot_dimension_numbers<[1], [0], [0], [1], [0, 0, 1, 1], [], []>} : vector<8x32xf32>, vector<32x96xf32>, vector<8x96xf32> -> vector<8x96xf32>
    %520 = arith.addf %519, %11 : vector<8x96xf32>
    %cst_143 = arith.constant dense<0.000000e+00> : vector<8x96xf32>
    %521 = tpu.matmul %514, %8, %cst_143 {dimension_numbers = #tpu.dot_dimension_numbers<[1], [0], [0], [1], [0, 0, 1, 1], [], []>} : vector<8x32xf32>, vector<32x96xf32>, vector<8x96xf32> -> vector<8x96xf32>
    %522 = arith.addf %521, %14 : vector<8x96xf32>
    %523 = vector.extract_strided_slice %517 {offsets = [0, 0], sizes = [8, 64], strides = [1, 1]} : vector<8x96xf32> to vector<8x64xf32>
    %524 = vector.extract_strided_slice %520 {offsets = [0, 0], sizes = [8, 64], strides = [1, 1]} : vector<8x96xf32> to vector<8x64xf32>
    %525 = arith.addf %523, %524 : vector<8x64xf32>
    %526 = arith.negf %525 : vector<8x64xf32>
    %527 = math.exp %526 : vector<8x64xf32>
    %cst_144 = arith.constant 1.000000e+00 : f32
    %528 = vector.broadcast %cst_144 : f32 to vector<8x64xf32>
    %529 = arith.addf %528, %527 : vector<8x64xf32>
    %530 = arith.divf %528, %529 : vector<8x64xf32>
    %531 = vector.extract_strided_slice %517 {offsets = [0, 64], sizes = [8, 32], strides = [1, 1]} : vector<8x96xf32> to vector<8x32xf32>
    %532 = vector.extract_strided_slice %530 {offsets = [0, 0], sizes = [8, 32], strides = [1, 1]} : vector<8x64xf32> to vector<8x32xf32>
    %533 = vector.extract_strided_slice %520 {offsets = [0, 64], sizes = [8, 32], strides = [1, 1]} : vector<8x96xf32> to vector<8x32xf32>
    %534 = arith.mulf %532, %533 : vector<8x32xf32>
    %535 = arith.addf %531, %534 : vector<8x32xf32>
    %536 = math.tanh %535 : vector<8x32xf32>
    %537 = vector.extract_strided_slice %530 {offsets = [0, 32], sizes = [8, 32], strides = [1, 1]} : vector<8x64xf32> to vector<8x32xf32>
    %cst_145 = arith.constant 1.000000e+00 : f32
    %538 = vector.broadcast %cst_145 : f32 to vector<8x32xf32>
    %539 = arith.subf %538, %537 : vector<8x32xf32>
    %540 = arith.mulf %539, %536 : vector<8x32xf32>
    %541 = vector.extract_strided_slice %530 {offsets = [0, 32], sizes = [8, 32], strides = [1, 1]} : vector<8x64xf32> to vector<8x32xf32>
    %542 = arith.mulf %541, %493 : vector<8x32xf32>
    %543 = arith.addf %540, %542 : vector<8x32xf32>
    %544 = vector.extract_strided_slice %518 {offsets = [0, 0], sizes = [8, 64], strides = [1, 1]} : vector<8x96xf32> to vector<8x64xf32>
    %545 = vector.extract_strided_slice %522 {offsets = [0, 0], sizes = [8, 64], strides = [1, 1]} : vector<8x96xf32> to vector<8x64xf32>
    %546 = arith.addf %544, %545 : vector<8x64xf32>
    %547 = arith.negf %546 : vector<8x64xf32>
    %548 = math.exp %547 : vector<8x64xf32>
    %cst_146 = arith.constant 1.000000e+00 : f32
    %549 = vector.broadcast %cst_146 : f32 to vector<8x64xf32>
    %550 = arith.addf %549, %548 : vector<8x64xf32>
    %551 = arith.divf %549, %550 : vector<8x64xf32>
    %552 = vector.extract_strided_slice %518 {offsets = [0, 64], sizes = [8, 32], strides = [1, 1]} : vector<8x96xf32> to vector<8x32xf32>
    %553 = vector.extract_strided_slice %551 {offsets = [0, 0], sizes = [8, 32], strides = [1, 1]} : vector<8x64xf32> to vector<8x32xf32>
    %554 = vector.extract_strided_slice %522 {offsets = [0, 64], sizes = [8, 32], strides = [1, 1]} : vector<8x96xf32> to vector<8x32xf32>
    %555 = arith.mulf %553, %554 : vector<8x32xf32>
    %556 = arith.addf %552, %555 : vector<8x32xf32>
    %557 = math.tanh %556 : vector<8x32xf32>
    %558 = vector.extract_strided_slice %551 {offsets = [0, 32], sizes = [8, 32], strides = [1, 1]} : vector<8x64xf32> to vector<8x32xf32>
    %cst_147 = arith.constant 1.000000e+00 : f32
    %559 = vector.broadcast %cst_147 : f32 to vector<8x32xf32>
    %560 = arith.subf %559, %558 : vector<8x32xf32>
    %561 = arith.mulf %560, %557 : vector<8x32xf32>
    %562 = vector.extract_strided_slice %551 {offsets = [0, 32], sizes = [8, 32], strides = [1, 1]} : vector<8x64xf32> to vector<8x32xf32>
    %563 = arith.mulf %562, %514 : vector<8x32xf32>
    %564 = arith.addf %561, %563 : vector<8x32xf32>
    %c80_148 = arith.constant 80 : index
    %c0_149 = arith.constant 0 : index
    %565 = vector.load %arg5[%c80_148, %c0_149] : memref<128x64xf32, #tpu.memory_space<vmem>>, vector<8x32xf32>
    tpu.vector_store %arg5[%c80_148, %c0_149], %543 {strides = array<i32>} : memref<128x64xf32, #tpu.memory_space<vmem>>, vector<8x32xf32>,
    %c40_150 = arith.constant 40 : index
    %c32_151 = arith.constant 32 : index
    %566 = vector.load %arg5[%c40_150, %c32_151] : memref<128x64xf32, #tpu.memory_space<vmem>>, vector<8x32xf32>
    tpu.vector_store %arg5[%c40_150, %c32_151], %564 {strides = array<i32>} : memref<128x64xf32, #tpu.memory_space<vmem>>, vector<8x32xf32>,
    %c88_152 = arith.constant 88 : index
    %c0_153 = arith.constant 0 : index
    %567 = vector.load %arg4[%c88_152, %c0_153] : memref<128x256xf32, #tpu.memory_space<vmem>>, vector<8x96xf32>
    %c32_154 = arith.constant 32 : index
    %c128_155 = arith.constant 128 : index
    %568 = vector.load %arg4[%c32_154, %c128_155] : memref<128x256xf32, #tpu.memory_space<vmem>>, vector<8x96xf32>
    %cst_156 = arith.constant dense<0.000000e+00> : vector<8x96xf32>
    %569 = tpu.matmul %543, %7, %cst_156 {dimension_numbers = #tpu.dot_dimension_numbers<[1], [0], [0], [1], [0, 0, 1, 1], [], []>} : vector<8x32xf32>, vector<32x96xf32>, vector<8x96xf32> -> vector<8x96xf32>
    %570 = arith.addf %569, %11 : vector<8x96xf32>
    %cst_157 = arith.constant dense<0.000000e+00> : vector<8x96xf32>
    %571 = tpu.matmul %564, %8, %cst_157 {dimension_numbers = #tpu.dot_dimension_numbers<[1], [0], [0], [1], [0, 0, 1, 1], [], []>} : vector<8x32xf32>, vector<32x96xf32>, vector<8x96xf32> -> vector<8x96xf32>
    %572 = arith.addf %571, %14 : vector<8x96xf32>
    %573 = vector.extract_strided_slice %567 {offsets = [0, 0], sizes = [8, 64], strides = [1, 1]} : vector<8x96xf32> to vector<8x64xf32>
    %574 = vector.extract_strided_slice %570 {offsets = [0, 0], sizes = [8, 64], strides = [1, 1]} : vector<8x96xf32> to vector<8x64xf32>
    %575 = arith.addf %573, %574 : vector<8x64xf32>
    %576 = arith.negf %575 : vector<8x64xf32>
    %577 = math.exp %576 : vector<8x64xf32>
    %cst_158 = arith.constant 1.000000e+00 : f32
    %578 = vector.broadcast %cst_158 : f32 to vector<8x64xf32>
    %579 = arith.addf %578, %577 : vector<8x64xf32>
    %580 = arith.divf %578, %579 : vector<8x64xf32>
    %581 = vector.extract_strided_slice %567 {offsets = [0, 64], sizes = [8, 32], strides = [1, 1]} : vector<8x96xf32> to vector<8x32xf32>
    %582 = vector.extract_strided_slice %580 {offsets = [0, 0], sizes = [8, 32], strides = [1, 1]} : vector<8x64xf32> to vector<8x32xf32>
    %583 = vector.extract_strided_slice %570 {offsets = [0, 64], sizes = [8, 32], strides = [1, 1]} : vector<8x96xf32> to vector<8x32xf32>
    %584 = arith.mulf %582, %583 : vector<8x32xf32>
    %585 = arith.addf %581, %584 : vector<8x32xf32>
    %586 = math.tanh %585 : vector<8x32xf32>
    %587 = vector.extract_strided_slice %580 {offsets = [0, 32], sizes = [8, 32], strides = [1, 1]} : vector<8x64xf32> to vector<8x32xf32>
    %cst_159 = arith.constant 1.000000e+00 : f32
    %588 = vector.broadcast %cst_159 : f32 to vector<8x32xf32>
    %589 = arith.subf %588, %587 : vector<8x32xf32>
    %590 = arith.mulf %589, %586 : vector<8x32xf32>
    %591 = vector.extract_strided_slice %580 {offsets = [0, 32], sizes = [8, 32], strides = [1, 1]} : vector<8x64xf32> to vector<8x32xf32>
    %592 = arith.mulf %591, %543 : vector<8x32xf32>
    %593 = arith.addf %590, %592 : vector<8x32xf32>
    %594 = vector.extract_strided_slice %568 {offsets = [0, 0], sizes = [8, 64], strides = [1, 1]} : vector<8x96xf32> to vector<8x64xf32>
    %595 = vector.extract_strided_slice %572 {offsets = [0, 0], sizes = [8, 64], strides = [1, 1]} : vector<8x96xf32> to vector<8x64xf32>
    %596 = arith.addf %594, %595 : vector<8x64xf32>
    %597 = arith.negf %596 : vector<8x64xf32>
    %598 = math.exp %597 : vector<8x64xf32>
    %cst_160 = arith.constant 1.000000e+00 : f32
    %599 = vector.broadcast %cst_160 : f32 to vector<8x64xf32>
    %600 = arith.addf %599, %598 : vector<8x64xf32>
    %601 = arith.divf %599, %600 : vector<8x64xf32>
    %602 = vector.extract_strided_slice %568 {offsets = [0, 64], sizes = [8, 32], strides = [1, 1]} : vector<8x96xf32> to vector<8x32xf32>
    %603 = vector.extract_strided_slice %601 {offsets = [0, 0], sizes = [8, 32], strides = [1, 1]} : vector<8x64xf32> to vector<8x32xf32>
    %604 = vector.extract_strided_slice %572 {offsets = [0, 64], sizes = [8, 32], strides = [1, 1]} : vector<8x96xf32> to vector<8x32xf32>
    %605 = arith.mulf %603, %604 : vector<8x32xf32>
    %606 = arith.addf %602, %605 : vector<8x32xf32>
    %607 = math.tanh %606 : vector<8x32xf32>
    %608 = vector.extract_strided_slice %601 {offsets = [0, 32], sizes = [8, 32], strides = [1, 1]} : vector<8x64xf32> to vector<8x32xf32>
    %cst_161 = arith.constant 1.000000e+00 : f32
    %609 = vector.broadcast %cst_161 : f32 to vector<8x32xf32>
    %610 = arith.subf %609, %608 : vector<8x32xf32>
    %611 = arith.mulf %610, %607 : vector<8x32xf32>
    %612 = vector.extract_strided_slice %601 {offsets = [0, 32], sizes = [8, 32], strides = [1, 1]} : vector<8x64xf32> to vector<8x32xf32>
    %613 = arith.mulf %612, %564 : vector<8x32xf32>
    %614 = arith.addf %611, %613 : vector<8x32xf32>
    %c88_162 = arith.constant 88 : index
    %c0_163 = arith.constant 0 : index
    %615 = vector.load %arg5[%c88_162, %c0_163] : memref<128x64xf32, #tpu.memory_space<vmem>>, vector<8x32xf32>
    tpu.vector_store %arg5[%c88_162, %c0_163], %593 {strides = array<i32>} : memref<128x64xf32, #tpu.memory_space<vmem>>, vector<8x32xf32>,
    %c32_164 = arith.constant 32 : index
    %c32_165 = arith.constant 32 : index
    %616 = vector.load %arg5[%c32_164, %c32_165] : memref<128x64xf32, #tpu.memory_space<vmem>>, vector<8x32xf32>
    tpu.vector_store %arg5[%c32_164, %c32_165], %614 {strides = array<i32>} : memref<128x64xf32, #tpu.memory_space<vmem>>, vector<8x32xf32>,
    %c96_166 = arith.constant 96 : index
    %c0_167 = arith.constant 0 : index
    %617 = vector.load %arg4[%c96_166, %c0_167] : memref<128x256xf32, #tpu.memory_space<vmem>>, vector<8x96xf32>
    %c24_168 = arith.constant 24 : index
    %c128_169 = arith.constant 128 : index
    %618 = vector.load %arg4[%c24_168, %c128_169] : memref<128x256xf32, #tpu.memory_space<vmem>>, vector<8x96xf32>
    %cst_170 = arith.constant dense<0.000000e+00> : vector<8x96xf32>
    %619 = tpu.matmul %593, %7, %cst_170 {dimension_numbers = #tpu.dot_dimension_numbers<[1], [0], [0], [1], [0, 0, 1, 1], [], []>} : vector<8x32xf32>, vector<32x96xf32>, vector<8x96xf32> -> vector<8x96xf32>
    %620 = arith.addf %619, %11 : vector<8x96xf32>
    %cst_171 = arith.constant dense<0.000000e+00> : vector<8x96xf32>
    %621 = tpu.matmul %614, %8, %cst_171 {dimension_numbers = #tpu.dot_dimension_numbers<[1], [0], [0], [1], [0, 0, 1, 1], [], []>} : vector<8x32xf32>, vector<32x96xf32>, vector<8x96xf32> -> vector<8x96xf32>
    %622 = arith.addf %621, %14 : vector<8x96xf32>
    %623 = vector.extract_strided_slice %617 {offsets = [0, 0], sizes = [8, 64], strides = [1, 1]} : vector<8x96xf32> to vector<8x64xf32>
    %624 = vector.extract_strided_slice %620 {offsets = [0, 0], sizes = [8, 64], strides = [1, 1]} : vector<8x96xf32> to vector<8x64xf32>
    %625 = arith.addf %623, %624 : vector<8x64xf32>
    %626 = arith.negf %625 : vector<8x64xf32>
    %627 = math.exp %626 : vector<8x64xf32>
    %cst_172 = arith.constant 1.000000e+00 : f32
    %628 = vector.broadcast %cst_172 : f32 to vector<8x64xf32>
    %629 = arith.addf %628, %627 : vector<8x64xf32>
    %630 = arith.divf %628, %629 : vector<8x64xf32>
    %631 = vector.extract_strided_slice %617 {offsets = [0, 64], sizes = [8, 32], strides = [1, 1]} : vector<8x96xf32> to vector<8x32xf32>
    %632 = vector.extract_strided_slice %630 {offsets = [0, 0], sizes = [8, 32], strides = [1, 1]} : vector<8x64xf32> to vector<8x32xf32>
    %633 = vector.extract_strided_slice %620 {offsets = [0, 64], sizes = [8, 32], strides = [1, 1]} : vector<8x96xf32> to vector<8x32xf32>
    %634 = arith.mulf %632, %633 : vector<8x32xf32>
    %635 = arith.addf %631, %634 : vector<8x32xf32>
    %636 = math.tanh %635 : vector<8x32xf32>
    %637 = vector.extract_strided_slice %630 {offsets = [0, 32], sizes = [8, 32], strides = [1, 1]} : vector<8x64xf32> to vector<8x32xf32>
    %cst_173 = arith.constant 1.000000e+00 : f32
    %638 = vector.broadcast %cst_173 : f32 to vector<8x32xf32>
    %639 = arith.subf %638, %637 : vector<8x32xf32>
    %640 = arith.mulf %639, %636 : vector<8x32xf32>
    %641 = vector.extract_strided_slice %630 {offsets = [0, 32], sizes = [8, 32], strides = [1, 1]} : vector<8x64xf32> to vector<8x32xf32>
    %642 = arith.mulf %641, %593 : vector<8x32xf32>
    %643 = arith.addf %640, %642 : vector<8x32xf32>
    %644 = vector.extract_strided_slice %618 {offsets = [0, 0], sizes = [8, 64], strides = [1, 1]} : vector<8x96xf32> to vector<8x64xf32>
    %645 = vector.extract_strided_slice %622 {offsets = [0, 0], sizes = [8, 64], strides = [1, 1]} : vector<8x96xf32> to vector<8x64xf32>
    %646 = arith.addf %644, %645 : vector<8x64xf32>
    %647 = arith.negf %646 : vector<8x64xf32>
    %648 = math.exp %647 : vector<8x64xf32>
    %cst_174 = arith.constant 1.000000e+00 : f32
    %649 = vector.broadcast %cst_174 : f32 to vector<8x64xf32>
    %650 = arith.addf %649, %648 : vector<8x64xf32>
    %651 = arith.divf %649, %650 : vector<8x64xf32>
    %652 = vector.extract_strided_slice %618 {offsets = [0, 64], sizes = [8, 32], strides = [1, 1]} : vector<8x96xf32> to vector<8x32xf32>
    %653 = vector.extract_strided_slice %651 {offsets = [0, 0], sizes = [8, 32], strides = [1, 1]} : vector<8x64xf32> to vector<8x32xf32>
    %654 = vector.extract_strided_slice %622 {offsets = [0, 64], sizes = [8, 32], strides = [1, 1]} : vector<8x96xf32> to vector<8x32xf32>
    %655 = arith.mulf %653, %654 : vector<8x32xf32>
    %656 = arith.addf %652, %655 : vector<8x32xf32>
    %657 = math.tanh %656 : vector<8x32xf32>
    %658 = vector.extract_strided_slice %651 {offsets = [0, 32], sizes = [8, 32], strides = [1, 1]} : vector<8x64xf32> to vector<8x32xf32>
    %cst_175 = arith.constant 1.000000e+00 : f32
    %659 = vector.broadcast %cst_175 : f32 to vector<8x32xf32>
    %660 = arith.subf %659, %658 : vector<8x32xf32>
    %661 = arith.mulf %660, %657 : vector<8x32xf32>
    %662 = vector.extract_strided_slice %651 {offsets = [0, 32], sizes = [8, 32], strides = [1, 1]} : vector<8x64xf32> to vector<8x32xf32>
    %663 = arith.mulf %662, %614 : vector<8x32xf32>
    %664 = arith.addf %661, %663 : vector<8x32xf32>
    %c96_176 = arith.constant 96 : index
    %c0_177 = arith.constant 0 : index
    %665 = vector.load %arg5[%c96_176, %c0_177] : memref<128x64xf32, #tpu.memory_space<vmem>>, vector<8x32xf32>
    tpu.vector_store %arg5[%c96_176, %c0_177], %643 {strides = array<i32>} : memref<128x64xf32, #tpu.memory_space<vmem>>, vector<8x32xf32>,
    %c24_178 = arith.constant 24 : index
    %c32_179 = arith.constant 32 : index
    %666 = vector.load %arg5[%c24_178, %c32_179] : memref<128x64xf32, #tpu.memory_space<vmem>>, vector<8x32xf32>
    tpu.vector_store %arg5[%c24_178, %c32_179], %664 {strides = array<i32>} : memref<128x64xf32, #tpu.memory_space<vmem>>, vector<8x32xf32>,
    %c104_180 = arith.constant 104 : index
    %c0_181 = arith.constant 0 : index
    %667 = vector.load %arg4[%c104_180, %c0_181] : memref<128x256xf32, #tpu.memory_space<vmem>>, vector<8x96xf32>
    %c16_182 = arith.constant 16 : index
    %c128_183 = arith.constant 128 : index
    %668 = vector.load %arg4[%c16_182, %c128_183] : memref<128x256xf32, #tpu.memory_space<vmem>>, vector<8x96xf32>
    %cst_184 = arith.constant dense<0.000000e+00> : vector<8x96xf32>
    %669 = tpu.matmul %643, %7, %cst_184 {dimension_numbers = #tpu.dot_dimension_numbers<[1], [0], [0], [1], [0, 0, 1, 1], [], []>} : vector<8x32xf32>, vector<32x96xf32>, vector<8x96xf32> -> vector<8x96xf32>
    %670 = arith.addf %669, %11 : vector<8x96xf32>
    %cst_185 = arith.constant dense<0.000000e+00> : vector<8x96xf32>
    %671 = tpu.matmul %664, %8, %cst_185 {dimension_numbers = #tpu.dot_dimension_numbers<[1], [0], [0], [1], [0, 0, 1, 1], [], []>} : vector<8x32xf32>, vector<32x96xf32>, vector<8x96xf32> -> vector<8x96xf32>
    %672 = arith.addf %671, %14 : vector<8x96xf32>
    %673 = vector.extract_strided_slice %667 {offsets = [0, 0], sizes = [8, 64], strides = [1, 1]} : vector<8x96xf32> to vector<8x64xf32>
    %674 = vector.extract_strided_slice %670 {offsets = [0, 0], sizes = [8, 64], strides = [1, 1]} : vector<8x96xf32> to vector<8x64xf32>
    %675 = arith.addf %673, %674 : vector<8x64xf32>
    %676 = arith.negf %675 : vector<8x64xf32>
    %677 = math.exp %676 : vector<8x64xf32>
    %cst_186 = arith.constant 1.000000e+00 : f32
    %678 = vector.broadcast %cst_186 : f32 to vector<8x64xf32>
    %679 = arith.addf %678, %677 : vector<8x64xf32>
    %680 = arith.divf %678, %679 : vector<8x64xf32>
    %681 = vector.extract_strided_slice %667 {offsets = [0, 64], sizes = [8, 32], strides = [1, 1]} : vector<8x96xf32> to vector<8x32xf32>
    %682 = vector.extract_strided_slice %680 {offsets = [0, 0], sizes = [8, 32], strides = [1, 1]} : vector<8x64xf32> to vector<8x32xf32>
    %683 = vector.extract_strided_slice %670 {offsets = [0, 64], sizes = [8, 32], strides = [1, 1]} : vector<8x96xf32> to vector<8x32xf32>
    %684 = arith.mulf %682, %683 : vector<8x32xf32>
    %685 = arith.addf %681, %684 : vector<8x32xf32>
    %686 = math.tanh %685 : vector<8x32xf32>
    %687 = vector.extract_strided_slice %680 {offsets = [0, 32], sizes = [8, 32], strides = [1, 1]} : vector<8x64xf32> to vector<8x32xf32>
    %cst_187 = arith.constant 1.000000e+00 : f32
    %688 = vector.broadcast %cst_187 : f32 to vector<8x32xf32>
    %689 = arith.subf %688, %687 : vector<8x32xf32>
    %690 = arith.mulf %689, %686 : vector<8x32xf32>
    %691 = vector.extract_strided_slice %680 {offsets = [0, 32], sizes = [8, 32], strides = [1, 1]} : vector<8x64xf32> to vector<8x32xf32>
    %692 = arith.mulf %691, %643 : vector<8x32xf32>
    %693 = arith.addf %690, %692 : vector<8x32xf32>
    %694 = vector.extract_strided_slice %668 {offsets = [0, 0], sizes = [8, 64], strides = [1, 1]} : vector<8x96xf32> to vector<8x64xf32>
    %695 = vector.extract_strided_slice %672 {offsets = [0, 0], sizes = [8, 64], strides = [1, 1]} : vector<8x96xf32> to vector<8x64xf32>
    %696 = arith.addf %694, %695 : vector<8x64xf32>
    %697 = arith.negf %696 : vector<8x64xf32>
    %698 = math.exp %697 : vector<8x64xf32>
    %cst_188 = arith.constant 1.000000e+00 : f32
    %699 = vector.broadcast %cst_188 : f32 to vector<8x64xf32>
    %700 = arith.addf %699, %698 : vector<8x64xf32>
    %701 = arith.divf %699, %700 : vector<8x64xf32>
    %702 = vector.extract_strided_slice %668 {offsets = [0, 64], sizes = [8, 32], strides = [1, 1]} : vector<8x96xf32> to vector<8x32xf32>
    %703 = vector.extract_strided_slice %701 {offsets = [0, 0], sizes = [8, 32], strides = [1, 1]} : vector<8x64xf32> to vector<8x32xf32>
    %704 = vector.extract_strided_slice %672 {offsets = [0, 64], sizes = [8, 32], strides = [1, 1]} : vector<8x96xf32> to vector<8x32xf32>
    %705 = arith.mulf %703, %704 : vector<8x32xf32>
    %706 = arith.addf %702, %705 : vector<8x32xf32>
    %707 = math.tanh %706 : vector<8x32xf32>
    %708 = vector.extract_strided_slice %701 {offsets = [0, 32], sizes = [8, 32], strides = [1, 1]} : vector<8x64xf32> to vector<8x32xf32>
    %cst_189 = arith.constant 1.000000e+00 : f32
    %709 = vector.broadcast %cst_189 : f32 to vector<8x32xf32>
    %710 = arith.subf %709, %708 : vector<8x32xf32>
    %711 = arith.mulf %710, %707 : vector<8x32xf32>
    %712 = vector.extract_strided_slice %701 {offsets = [0, 32], sizes = [8, 32], strides = [1, 1]} : vector<8x64xf32> to vector<8x32xf32>
    %713 = arith.mulf %712, %664 : vector<8x32xf32>
    %714 = arith.addf %711, %713 : vector<8x32xf32>
    %c104_190 = arith.constant 104 : index
    %c0_191 = arith.constant 0 : index
    %715 = vector.load %arg5[%c104_190, %c0_191] : memref<128x64xf32, #tpu.memory_space<vmem>>, vector<8x32xf32>
    tpu.vector_store %arg5[%c104_190, %c0_191], %693 {strides = array<i32>} : memref<128x64xf32, #tpu.memory_space<vmem>>, vector<8x32xf32>,
    %c16_192 = arith.constant 16 : index
    %c32_193 = arith.constant 32 : index
    %716 = vector.load %arg5[%c16_192, %c32_193] : memref<128x64xf32, #tpu.memory_space<vmem>>, vector<8x32xf32>
    tpu.vector_store %arg5[%c16_192, %c32_193], %714 {strides = array<i32>} : memref<128x64xf32, #tpu.memory_space<vmem>>, vector<8x32xf32>,
    %c112_194 = arith.constant 112 : index
    %c0_195 = arith.constant 0 : index
    %717 = vector.load %arg4[%c112_194, %c0_195] : memref<128x256xf32, #tpu.memory_space<vmem>>, vector<8x96xf32>
    %c8_196 = arith.constant 8 : index
    %c128_197 = arith.constant 128 : index
    %718 = vector.load %arg4[%c8_196, %c128_197] : memref<128x256xf32, #tpu.memory_space<vmem>>, vector<8x96xf32>
    %cst_198 = arith.constant dense<0.000000e+00> : vector<8x96xf32>
    %719 = tpu.matmul %693, %7, %cst_198 {dimension_numbers = #tpu.dot_dimension_numbers<[1], [0], [0], [1], [0, 0, 1, 1], [], []>} : vector<8x32xf32>, vector<32x96xf32>, vector<8x96xf32> -> vector<8x96xf32>
    %720 = arith.addf %719, %11 : vector<8x96xf32>
    %cst_199 = arith.constant dense<0.000000e+00> : vector<8x96xf32>
    %721 = tpu.matmul %714, %8, %cst_199 {dimension_numbers = #tpu.dot_dimension_numbers<[1], [0], [0], [1], [0, 0, 1, 1], [], []>} : vector<8x32xf32>, vector<32x96xf32>, vector<8x96xf32> -> vector<8x96xf32>
    %722 = arith.addf %721, %14 : vector<8x96xf32>
    %723 = vector.extract_strided_slice %717 {offsets = [0, 0], sizes = [8, 64], strides = [1, 1]} : vector<8x96xf32> to vector<8x64xf32>
    %724 = vector.extract_strided_slice %720 {offsets = [0, 0], sizes = [8, 64], strides = [1, 1]} : vector<8x96xf32> to vector<8x64xf32>
    %725 = arith.addf %723, %724 : vector<8x64xf32>
    %726 = arith.negf %725 : vector<8x64xf32>
    %727 = math.exp %726 : vector<8x64xf32>
    %cst_200 = arith.constant 1.000000e+00 : f32
    %728 = vector.broadcast %cst_200 : f32 to vector<8x64xf32>
    %729 = arith.addf %728, %727 : vector<8x64xf32>
    %730 = arith.divf %728, %729 : vector<8x64xf32>
    %731 = vector.extract_strided_slice %717 {offsets = [0, 64], sizes = [8, 32], strides = [1, 1]} : vector<8x96xf32> to vector<8x32xf32>
    %732 = vector.extract_strided_slice %730 {offsets = [0, 0], sizes = [8, 32], strides = [1, 1]} : vector<8x64xf32> to vector<8x32xf32>
    %733 = vector.extract_strided_slice %720 {offsets = [0, 64], sizes = [8, 32], strides = [1, 1]} : vector<8x96xf32> to vector<8x32xf32>
    %734 = arith.mulf %732, %733 : vector<8x32xf32>
    %735 = arith.addf %731, %734 : vector<8x32xf32>
    %736 = math.tanh %735 : vector<8x32xf32>
    %737 = vector.extract_strided_slice %730 {offsets = [0, 32], sizes = [8, 32], strides = [1, 1]} : vector<8x64xf32> to vector<8x32xf32>
    %cst_201 = arith.constant 1.000000e+00 : f32
    %738 = vector.broadcast %cst_201 : f32 to vector<8x32xf32>
    %739 = arith.subf %738, %737 : vector<8x32xf32>
    %740 = arith.mulf %739, %736 : vector<8x32xf32>
    %741 = vector.extract_strided_slice %730 {offsets = [0, 32], sizes = [8, 32], strides = [1, 1]} : vector<8x64xf32> to vector<8x32xf32>
    %742 = arith.mulf %741, %693 : vector<8x32xf32>
    %743 = arith.addf %740, %742 : vector<8x32xf32>
    %744 = vector.extract_strided_slice %718 {offsets = [0, 0], sizes = [8, 64], strides = [1, 1]} : vector<8x96xf32> to vector<8x64xf32>
    %745 = vector.extract_strided_slice %722 {offsets = [0, 0], sizes = [8, 64], strides = [1, 1]} : vector<8x96xf32> to vector<8x64xf32>
    %746 = arith.addf %744, %745 : vector<8x64xf32>
    %747 = arith.negf %746 : vector<8x64xf32>
    %748 = math.exp %747 : vector<8x64xf32>
    %cst_202 = arith.constant 1.000000e+00 : f32
    %749 = vector.broadcast %cst_202 : f32 to vector<8x64xf32>
    %750 = arith.addf %749, %748 : vector<8x64xf32>
    %751 = arith.divf %749, %750 : vector<8x64xf32>
    %752 = vector.extract_strided_slice %718 {offsets = [0, 64], sizes = [8, 32], strides = [1, 1]} : vector<8x96xf32> to vector<8x32xf32>
    %753 = vector.extract_strided_slice %751 {offsets = [0, 0], sizes = [8, 32], strides = [1, 1]} : vector<8x64xf32> to vector<8x32xf32>
    %754 = vector.extract_strided_slice %722 {offsets = [0, 64], sizes = [8, 32], strides = [1, 1]} : vector<8x96xf32> to vector<8x32xf32>
    %755 = arith.mulf %753, %754 : vector<8x32xf32>
    %756 = arith.addf %752, %755 : vector<8x32xf32>
    %757 = math.tanh %756 : vector<8x32xf32>
    %758 = vector.extract_strided_slice %751 {offsets = [0, 32], sizes = [8, 32], strides = [1, 1]} : vector<8x64xf32> to vector<8x32xf32>
    %cst_203 = arith.constant 1.000000e+00 : f32
    %759 = vector.broadcast %cst_203 : f32 to vector<8x32xf32>
    %760 = arith.subf %759, %758 : vector<8x32xf32>
    %761 = arith.mulf %760, %757 : vector<8x32xf32>
    %762 = vector.extract_strided_slice %751 {offsets = [0, 32], sizes = [8, 32], strides = [1, 1]} : vector<8x64xf32> to vector<8x32xf32>
    %763 = arith.mulf %762, %714 : vector<8x32xf32>
    %764 = arith.addf %761, %763 : vector<8x32xf32>
    %c112_204 = arith.constant 112 : index
    %c0_205 = arith.constant 0 : index
    %765 = vector.load %arg5[%c112_204, %c0_205] : memref<128x64xf32, #tpu.memory_space<vmem>>, vector<8x32xf32>
    tpu.vector_store %arg5[%c112_204, %c0_205], %743 {strides = array<i32>} : memref<128x64xf32, #tpu.memory_space<vmem>>, vector<8x32xf32>,
    %c8_206 = arith.constant 8 : index
    %c32_207 = arith.constant 32 : index
    %766 = vector.load %arg5[%c8_206, %c32_207] : memref<128x64xf32, #tpu.memory_space<vmem>>, vector<8x32xf32>
    tpu.vector_store %arg5[%c8_206, %c32_207], %764 {strides = array<i32>} : memref<128x64xf32, #tpu.memory_space<vmem>>, vector<8x32xf32>,
    %c120_208 = arith.constant 120 : index
    %c0_209 = arith.constant 0 : index
    %767 = vector.load %arg4[%c120_208, %c0_209] : memref<128x256xf32, #tpu.memory_space<vmem>>, vector<8x96xf32>
    %c0_210 = arith.constant 0 : index
    %c128_211 = arith.constant 128 : index
    %768 = vector.load %arg4[%c0_210, %c128_211] : memref<128x256xf32, #tpu.memory_space<vmem>>, vector<8x96xf32>
    %cst_212 = arith.constant dense<0.000000e+00> : vector<8x96xf32>
    %769 = tpu.matmul %743, %7, %cst_212 {dimension_numbers = #tpu.dot_dimension_numbers<[1], [0], [0], [1], [0, 0, 1, 1], [], []>} : vector<8x32xf32>, vector<32x96xf32>, vector<8x96xf32> -> vector<8x96xf32>
    %770 = arith.addf %769, %11 : vector<8x96xf32>
    %cst_213 = arith.constant dense<0.000000e+00> : vector<8x96xf32>
    %771 = tpu.matmul %764, %8, %cst_213 {dimension_numbers = #tpu.dot_dimension_numbers<[1], [0], [0], [1], [0, 0, 1, 1], [], []>} : vector<8x32xf32>, vector<32x96xf32>, vector<8x96xf32> -> vector<8x96xf32>
    %772 = arith.addf %771, %14 : vector<8x96xf32>
    %773 = vector.extract_strided_slice %767 {offsets = [0, 0], sizes = [8, 64], strides = [1, 1]} : vector<8x96xf32> to vector<8x64xf32>
    %774 = vector.extract_strided_slice %770 {offsets = [0, 0], sizes = [8, 64], strides = [1, 1]} : vector<8x96xf32> to vector<8x64xf32>
    %775 = arith.addf %773, %774 : vector<8x64xf32>
    %776 = arith.negf %775 : vector<8x64xf32>
    %777 = math.exp %776 : vector<8x64xf32>
    %cst_214 = arith.constant 1.000000e+00 : f32
    %778 = vector.broadcast %cst_214 : f32 to vector<8x64xf32>
    %779 = arith.addf %778, %777 : vector<8x64xf32>
    %780 = arith.divf %778, %779 : vector<8x64xf32>
    %781 = vector.extract_strided_slice %767 {offsets = [0, 64], sizes = [8, 32], strides = [1, 1]} : vector<8x96xf32> to vector<8x32xf32>
    %782 = vector.extract_strided_slice %780 {offsets = [0, 0], sizes = [8, 32], strides = [1, 1]} : vector<8x64xf32> to vector<8x32xf32>
    %783 = vector.extract_strided_slice %770 {offsets = [0, 64], sizes = [8, 32], strides = [1, 1]} : vector<8x96xf32> to vector<8x32xf32>
    %784 = arith.mulf %782, %783 : vector<8x32xf32>
    %785 = arith.addf %781, %784 : vector<8x32xf32>
    %786 = math.tanh %785 : vector<8x32xf32>
    %787 = vector.extract_strided_slice %780 {offsets = [0, 32], sizes = [8, 32], strides = [1, 1]} : vector<8x64xf32> to vector<8x32xf32>
    %cst_215 = arith.constant 1.000000e+00 : f32
    %788 = vector.broadcast %cst_215 : f32 to vector<8x32xf32>
    %789 = arith.subf %788, %787 : vector<8x32xf32>
    %790 = arith.mulf %789, %786 : vector<8x32xf32>
    %791 = vector.extract_strided_slice %780 {offsets = [0, 32], sizes = [8, 32], strides = [1, 1]} : vector<8x64xf32> to vector<8x32xf32>
    %792 = arith.mulf %791, %743 : vector<8x32xf32>
    %793 = arith.addf %790, %792 : vector<8x32xf32>
    %794 = vector.extract_strided_slice %768 {offsets = [0, 0], sizes = [8, 64], strides = [1, 1]} : vector<8x96xf32> to vector<8x64xf32>
    %795 = vector.extract_strided_slice %772 {offsets = [0, 0], sizes = [8, 64], strides = [1, 1]} : vector<8x96xf32> to vector<8x64xf32>
    %796 = arith.addf %794, %795 : vector<8x64xf32>
    %797 = arith.negf %796 : vector<8x64xf32>
    %798 = math.exp %797 : vector<8x64xf32>
    %cst_216 = arith.constant 1.000000e+00 : f32
    %799 = vector.broadcast %cst_216 : f32 to vector<8x64xf32>
    %800 = arith.addf %799, %798 : vector<8x64xf32>
    %801 = arith.divf %799, %800 : vector<8x64xf32>
    %802 = vector.extract_strided_slice %768 {offsets = [0, 64], sizes = [8, 32], strides = [1, 1]} : vector<8x96xf32> to vector<8x32xf32>
    %803 = vector.extract_strided_slice %801 {offsets = [0, 0], sizes = [8, 32], strides = [1, 1]} : vector<8x64xf32> to vector<8x32xf32>
    %804 = vector.extract_strided_slice %772 {offsets = [0, 64], sizes = [8, 32], strides = [1, 1]} : vector<8x96xf32> to vector<8x32xf32>
    %805 = arith.mulf %803, %804 : vector<8x32xf32>
    %806 = arith.addf %802, %805 : vector<8x32xf32>
    %807 = math.tanh %806 : vector<8x32xf32>
    %808 = vector.extract_strided_slice %801 {offsets = [0, 32], sizes = [8, 32], strides = [1, 1]} : vector<8x64xf32> to vector<8x32xf32>
    %cst_217 = arith.constant 1.000000e+00 : f32
    %809 = vector.broadcast %cst_217 : f32 to vector<8x32xf32>
    %810 = arith.subf %809, %808 : vector<8x32xf32>
    %811 = arith.mulf %810, %807 : vector<8x32xf32>
    %812 = vector.extract_strided_slice %801 {offsets = [0, 32], sizes = [8, 32], strides = [1, 1]} : vector<8x64xf32> to vector<8x32xf32>
    %813 = arith.mulf %812, %764 : vector<8x32xf32>
    %814 = arith.addf %811, %813 : vector<8x32xf32>
    %c120_218 = arith.constant 120 : index
    %c0_219 = arith.constant 0 : index
    %815 = vector.load %arg5[%c120_218, %c0_219] : memref<128x64xf32, #tpu.memory_space<vmem>>, vector<8x32xf32>
    tpu.vector_store %arg5[%c120_218, %c0_219], %793 {strides = array<i32>} : memref<128x64xf32, #tpu.memory_space<vmem>>, vector<8x32xf32>,
    %c0_220 = arith.constant 0 : index
    %c32_221 = arith.constant 32 : index
    %816 = vector.load %arg5[%c0_220, %c32_221] : memref<128x64xf32, #tpu.memory_space<vmem>>, vector<8x32xf32>
    tpu.vector_store %arg5[%c0_220, %c32_221], %814 {strides = array<i32>} : memref<128x64xf32, #tpu.memory_space<vmem>>, vector<8x32xf32>,
    %c72_222 = arith.constant 72 : index
    %c0_223 = arith.constant 0 : index
    %817 = vector.load %arg1[%c72_222, %c0_223] : memref<240x256xf32, #tpu.memory_space<vmem>>, vector<64x64xf32>
    %c235 = arith.constant 235 : index
    %c0_224 = arith.constant 0 : index
    %818 = vector.load %arg1[%c235, %c0_224] : memref<240x256xf32, #tpu.memory_space<vmem>>, vector<1x64xf32>
    %c0_225 = arith.constant 0 : index
    %c0_226 = arith.constant 0 : index
    %819 = vector.load %arg5[%c0_225, %c0_226] : memref<128x64xf32, #tpu.memory_space<vmem>>, vector<128x64xf32>
    %cst_227 = arith.constant dense<0.000000e+00> : vector<128x64xf32>
    %820 = tpu.matmul %819, %817, %cst_227 {dimension_numbers = #tpu.dot_dimension_numbers<[1], [0], [0], [1], [0, 0, 1, 1], [], []>} : vector<128x64xf32>, vector<64x64xf32>, vector<128x64xf32> -> vector<128x64xf32>
    %821 = vector.broadcast %818 : vector<1x64xf32> to vector<128x64xf32>
    %822 = arith.addf %820, %821 : vector<128x64xf32>
    %823 = vector.extract_strided_slice %822 {offsets = [0, 0], sizes = [8, 64], strides = [1, 1]} : vector<128x64xf32> to vector<8x64xf32>
    %824 = vector.extract_strided_slice %822 {offsets = [8, 0], sizes = [8, 64], strides = [1, 1]} : vector<128x64xf32> to vector<8x64xf32>
    %825 = arith.maximumf %823, %824 : vector<8x64xf32>
    %826 = vector.extract_strided_slice %822 {offsets = [16, 0], sizes = [8, 64], strides = [1, 1]} : vector<128x64xf32> to vector<8x64xf32>
    %827 = arith.maximumf %825, %826 : vector<8x64xf32>
    %828 = vector.extract_strided_slice %822 {offsets = [24, 0], sizes = [8, 64], strides = [1, 1]} : vector<128x64xf32> to vector<8x64xf32>
    %829 = arith.maximumf %827, %828 : vector<8x64xf32>
    %830 = vector.extract_strided_slice %822 {offsets = [32, 0], sizes = [8, 64], strides = [1, 1]} : vector<128x64xf32> to vector<8x64xf32>
    %831 = arith.maximumf %829, %830 : vector<8x64xf32>
    %832 = vector.extract_strided_slice %822 {offsets = [40, 0], sizes = [8, 64], strides = [1, 1]} : vector<128x64xf32> to vector<8x64xf32>
    %833 = arith.maximumf %831, %832 : vector<8x64xf32>
    %834 = vector.extract_strided_slice %822 {offsets = [48, 0], sizes = [8, 64], strides = [1, 1]} : vector<128x64xf32> to vector<8x64xf32>
    %835 = arith.maximumf %833, %834 : vector<8x64xf32>
    %836 = vector.extract_strided_slice %822 {offsets = [56, 0], sizes = [8, 64], strides = [1, 1]} : vector<128x64xf32> to vector<8x64xf32>
    %837 = arith.maximumf %835, %836 : vector<8x64xf32>
    %838 = vector.extract_strided_slice %822 {offsets = [64, 0], sizes = [8, 64], strides = [1, 1]} : vector<128x64xf32> to vector<8x64xf32>
    %839 = arith.maximumf %837, %838 : vector<8x64xf32>
    %840 = vector.extract_strided_slice %822 {offsets = [72, 0], sizes = [8, 64], strides = [1, 1]} : vector<128x64xf32> to vector<8x64xf32>
    %841 = arith.maximumf %839, %840 : vector<8x64xf32>
    %842 = vector.extract_strided_slice %822 {offsets = [80, 0], sizes = [8, 64], strides = [1, 1]} : vector<128x64xf32> to vector<8x64xf32>
    %843 = arith.maximumf %841, %842 : vector<8x64xf32>
    %844 = vector.extract_strided_slice %822 {offsets = [88, 0], sizes = [8, 64], strides = [1, 1]} : vector<128x64xf32> to vector<8x64xf32>
    %845 = arith.maximumf %843, %844 : vector<8x64xf32>
    %846 = vector.extract_strided_slice %822 {offsets = [96, 0], sizes = [8, 64], strides = [1, 1]} : vector<128x64xf32> to vector<8x64xf32>
    %847 = arith.maximumf %845, %846 : vector<8x64xf32>
    %848 = vector.extract_strided_slice %822 {offsets = [104, 0], sizes = [8, 64], strides = [1, 1]} : vector<128x64xf32> to vector<8x64xf32>
    %849 = arith.maximumf %847, %848 : vector<8x64xf32>
    %850 = vector.extract_strided_slice %822 {offsets = [112, 0], sizes = [8, 64], strides = [1, 1]} : vector<128x64xf32> to vector<8x64xf32>
    %851 = arith.maximumf %849, %850 : vector<8x64xf32>
    %852 = vector.extract_strided_slice %822 {offsets = [120, 0], sizes = [8, 64], strides = [1, 1]} : vector<128x64xf32> to vector<8x64xf32>
    %853 = arith.maximumf %851, %852 : vector<8x64xf32>
    %854 = vector.extract_strided_slice %822 {offsets = [0, 0], sizes = [8, 64], strides = [1, 1]} : vector<128x64xf32> to vector<8x64xf32>
    %855 = arith.subf %854, %853 : vector<8x64xf32>
    %856 = math.exp %855 : vector<8x64xf32>
    %857 = vector.extract_strided_slice %822 {offsets = [8, 0], sizes = [8, 64], strides = [1, 1]} : vector<128x64xf32> to vector<8x64xf32>
    %858 = arith.subf %857, %853 : vector<8x64xf32>
    %859 = math.exp %858 : vector<8x64xf32>
    %860 = vector.extract_strided_slice %822 {offsets = [16, 0], sizes = [8, 64], strides = [1, 1]} : vector<128x64xf32> to vector<8x64xf32>
    %861 = arith.subf %860, %853 : vector<8x64xf32>
    %862 = math.exp %861 : vector<8x64xf32>
    %863 = vector.extract_strided_slice %822 {offsets = [24, 0], sizes = [8, 64], strides = [1, 1]} : vector<128x64xf32> to vector<8x64xf32>
    %864 = arith.subf %863, %853 : vector<8x64xf32>
    %865 = math.exp %864 : vector<8x64xf32>
    %866 = vector.extract_strided_slice %822 {offsets = [32, 0], sizes = [8, 64], strides = [1, 1]} : vector<128x64xf32> to vector<8x64xf32>
    %867 = arith.subf %866, %853 : vector<8x64xf32>
    %868 = math.exp %867 : vector<8x64xf32>
    %869 = vector.extract_strided_slice %822 {offsets = [40, 0], sizes = [8, 64], strides = [1, 1]} : vector<128x64xf32> to vector<8x64xf32>
    %870 = arith.subf %869, %853 : vector<8x64xf32>
    %871 = math.exp %870 : vector<8x64xf32>
    %872 = vector.extract_strided_slice %822 {offsets = [48, 0], sizes = [8, 64], strides = [1, 1]} : vector<128x64xf32> to vector<8x64xf32>
    %873 = arith.subf %872, %853 : vector<8x64xf32>
    %874 = math.exp %873 : vector<8x64xf32>
    %875 = vector.extract_strided_slice %822 {offsets = [56, 0], sizes = [8, 64], strides = [1, 1]} : vector<128x64xf32> to vector<8x64xf32>
    %876 = arith.subf %875, %853 : vector<8x64xf32>
    %877 = math.exp %876 : vector<8x64xf32>
    %878 = vector.extract_strided_slice %822 {offsets = [64, 0], sizes = [8, 64], strides = [1, 1]} : vector<128x64xf32> to vector<8x64xf32>
    %879 = arith.subf %878, %853 : vector<8x64xf32>
    %880 = math.exp %879 : vector<8x64xf32>
    %881 = vector.extract_strided_slice %822 {offsets = [72, 0], sizes = [8, 64], strides = [1, 1]} : vector<128x64xf32> to vector<8x64xf32>
    %882 = arith.subf %881, %853 : vector<8x64xf32>
    %883 = math.exp %882 : vector<8x64xf32>
    %884 = vector.extract_strided_slice %822 {offsets = [80, 0], sizes = [8, 64], strides = [1, 1]} : vector<128x64xf32> to vector<8x64xf32>
    %885 = arith.subf %884, %853 : vector<8x64xf32>
    %886 = math.exp %885 : vector<8x64xf32>
    %887 = vector.extract_strided_slice %822 {offsets = [88, 0], sizes = [8, 64], strides = [1, 1]} : vector<128x64xf32> to vector<8x64xf32>
    %888 = arith.subf %887, %853 : vector<8x64xf32>
    %889 = math.exp %888 : vector<8x64xf32>
    %890 = vector.extract_strided_slice %822 {offsets = [96, 0], sizes = [8, 64], strides = [1, 1]} : vector<128x64xf32> to vector<8x64xf32>
    %891 = arith.subf %890, %853 : vector<8x64xf32>
    %892 = math.exp %891 : vector<8x64xf32>
    %893 = vector.extract_strided_slice %822 {offsets = [104, 0], sizes = [8, 64], strides = [1, 1]} : vector<128x64xf32> to vector<8x64xf32>
    %894 = arith.subf %893, %853 : vector<8x64xf32>
    %895 = math.exp %894 : vector<8x64xf32>
    %896 = vector.extract_strided_slice %822 {offsets = [112, 0], sizes = [8, 64], strides = [1, 1]} : vector<128x64xf32> to vector<8x64xf32>
    %897 = arith.subf %896, %853 : vector<8x64xf32>
    %898 = math.exp %897 : vector<8x64xf32>
    %899 = vector.extract_strided_slice %822 {offsets = [120, 0], sizes = [8, 64], strides = [1, 1]} : vector<128x64xf32> to vector<8x64xf32>
    %900 = arith.subf %899, %853 : vector<8x64xf32>
    %901 = math.exp %900 : vector<8x64xf32>
    %902 = arith.addf %856, %859 : vector<8x64xf32>
    %903 = arith.addf %902, %862 : vector<8x64xf32>
    %904 = arith.addf %903, %865 : vector<8x64xf32>
    %905 = arith.addf %904, %868 : vector<8x64xf32>
    %906 = arith.addf %905, %871 : vector<8x64xf32>
    %907 = arith.addf %906, %874 : vector<8x64xf32>
    %908 = arith.addf %907, %877 : vector<8x64xf32>
    %909 = arith.addf %908, %880 : vector<8x64xf32>
    %910 = arith.addf %909, %883 : vector<8x64xf32>
    %911 = arith.addf %910, %886 : vector<8x64xf32>
    %912 = arith.addf %911, %889 : vector<8x64xf32>
    %913 = arith.addf %912, %892 : vector<8x64xf32>
    %914 = arith.addf %913, %895 : vector<8x64xf32>
    %915 = arith.addf %914, %898 : vector<8x64xf32>
    %916 = arith.addf %915, %901 : vector<8x64xf32>
    %cst_228 = arith.constant 1.000000e+00 : f32
    %917 = vector.broadcast %cst_228 : f32 to vector<8x64xf32>
    %918 = arith.divf %917, %916 : vector<8x64xf32>
    %cst_229 = arith.constant 0.000000e+00 : f32
    %919 = vector.broadcast %cst_229 : f32 to vector<8x64xf32>
    %920 = arith.mulf %856, %918 : vector<8x64xf32>
    %cst_230 = arith.constant dense<0.000000e+00> : vector<8xf32>
    %921 = vector.multi_reduction <add>, %920, %cst_230 [1] : vector<8x64xf32> to vector<8xf32>
    %922 = vector.shape_cast %921 : vector<8xf32> to vector<8x1xf32>
    %cst_231 = arith.constant 1.562500e-02 : f32
    %923 = vector.broadcast %cst_231 : f32 to vector<8x1xf32>
    %924 = arith.mulf %922, %923 : vector<8x1xf32>
    %c0_232 = arith.constant 0 : index
    %c0_233 = arith.constant 0 : index
    %925 = vector.load %arg5[%c0_232, %c0_233] : memref<128x64xf32, #tpu.memory_space<vmem>>, vector<8x64xf32>
    %926 = vector.broadcast %924 : vector<8x1xf32> to vector<8x64xf32>
    %927 = arith.mulf %926, %925 : vector<8x64xf32>
    %928 = arith.addf %919, %927 : vector<8x64xf32>
    %929 = arith.mulf %859, %918 : vector<8x64xf32>
    %cst_234 = arith.constant dense<0.000000e+00> : vector<8xf32>
    %930 = vector.multi_reduction <add>, %929, %cst_234 [1] : vector<8x64xf32> to vector<8xf32>
    %931 = vector.shape_cast %930 : vector<8xf32> to vector<8x1xf32>
    %cst_235 = arith.constant 1.562500e-02 : f32
    %932 = vector.broadcast %cst_235 : f32 to vector<8x1xf32>
    %933 = arith.mulf %931, %932 : vector<8x1xf32>
    %c8_236 = arith.constant 8 : index
    %c0_237 = arith.constant 0 : index
    %934 = vector.load %arg5[%c8_236, %c0_237] : memref<128x64xf32, #tpu.memory_space<vmem>>, vector<8x64xf32>
    %935 = vector.broadcast %933 : vector<8x1xf32> to vector<8x64xf32>
    %936 = arith.mulf %935, %934 : vector<8x64xf32>
    %937 = arith.addf %928, %936 : vector<8x64xf32>
    %938 = arith.mulf %862, %918 : vector<8x64xf32>
    %cst_238 = arith.constant dense<0.000000e+00> : vector<8xf32>
    %939 = vector.multi_reduction <add>, %938, %cst_238 [1] : vector<8x64xf32> to vector<8xf32>
    %940 = vector.shape_cast %939 : vector<8xf32> to vector<8x1xf32>
    %cst_239 = arith.constant 1.562500e-02 : f32
    %941 = vector.broadcast %cst_239 : f32 to vector<8x1xf32>
    %942 = arith.mulf %940, %941 : vector<8x1xf32>
    %c16_240 = arith.constant 16 : index
    %c0_241 = arith.constant 0 : index
    %943 = vector.load %arg5[%c16_240, %c0_241] : memref<128x64xf32, #tpu.memory_space<vmem>>, vector<8x64xf32>
    %944 = vector.broadcast %942 : vector<8x1xf32> to vector<8x64xf32>
    %945 = arith.mulf %944, %943 : vector<8x64xf32>
    %946 = arith.addf %937, %945 : vector<8x64xf32>
    %947 = arith.mulf %865, %918 : vector<8x64xf32>
    %cst_242 = arith.constant dense<0.000000e+00> : vector<8xf32>
    %948 = vector.multi_reduction <add>, %947, %cst_242 [1] : vector<8x64xf32> to vector<8xf32>
    %949 = vector.shape_cast %948 : vector<8xf32> to vector<8x1xf32>
    %cst_243 = arith.constant 1.562500e-02 : f32
    %950 = vector.broadcast %cst_243 : f32 to vector<8x1xf32>
    %951 = arith.mulf %949, %950 : vector<8x1xf32>
    %c24_244 = arith.constant 24 : index
    %c0_245 = arith.constant 0 : index
    %952 = vector.load %arg5[%c24_244, %c0_245] : memref<128x64xf32, #tpu.memory_space<vmem>>, vector<8x64xf32>
    %953 = vector.broadcast %951 : vector<8x1xf32> to vector<8x64xf32>
    %954 = arith.mulf %953, %952 : vector<8x64xf32>
    %955 = arith.addf %946, %954 : vector<8x64xf32>
    %956 = arith.mulf %868, %918 : vector<8x64xf32>
    %cst_246 = arith.constant dense<0.000000e+00> : vector<8xf32>
    %957 = vector.multi_reduction <add>, %956, %cst_246 [1] : vector<8x64xf32> to vector<8xf32>
    %958 = vector.shape_cast %957 : vector<8xf32> to vector<8x1xf32>
    %cst_247 = arith.constant 1.562500e-02 : f32
    %959 = vector.broadcast %cst_247 : f32 to vector<8x1xf32>
    %960 = arith.mulf %958, %959 : vector<8x1xf32>
    %c32_248 = arith.constant 32 : index
    %c0_249 = arith.constant 0 : index
    %961 = vector.load %arg5[%c32_248, %c0_249] : memref<128x64xf32, #tpu.memory_space<vmem>>, vector<8x64xf32>
    %962 = vector.broadcast %960 : vector<8x1xf32> to vector<8x64xf32>
    %963 = arith.mulf %962, %961 : vector<8x64xf32>
    %964 = arith.addf %955, %963 : vector<8x64xf32>
    %965 = arith.mulf %871, %918 : vector<8x64xf32>
    %cst_250 = arith.constant dense<0.000000e+00> : vector<8xf32>
    %966 = vector.multi_reduction <add>, %965, %cst_250 [1] : vector<8x64xf32> to vector<8xf32>
    %967 = vector.shape_cast %966 : vector<8xf32> to vector<8x1xf32>
    %cst_251 = arith.constant 1.562500e-02 : f32
    %968 = vector.broadcast %cst_251 : f32 to vector<8x1xf32>
    %969 = arith.mulf %967, %968 : vector<8x1xf32>
    %c40_252 = arith.constant 40 : index
    %c0_253 = arith.constant 0 : index
    %970 = vector.load %arg5[%c40_252, %c0_253] : memref<128x64xf32, #tpu.memory_space<vmem>>, vector<8x64xf32>
    %971 = vector.broadcast %969 : vector<8x1xf32> to vector<8x64xf32>
    %972 = arith.mulf %971, %970 : vector<8x64xf32>
    %973 = arith.addf %964, %972 : vector<8x64xf32>
    %974 = arith.mulf %874, %918 : vector<8x64xf32>
    %cst_254 = arith.constant dense<0.000000e+00> : vector<8xf32>
    %975 = vector.multi_reduction <add>, %974, %cst_254 [1] : vector<8x64xf32> to vector<8xf32>
    %976 = vector.shape_cast %975 : vector<8xf32> to vector<8x1xf32>
    %cst_255 = arith.constant 1.562500e-02 : f32
    %977 = vector.broadcast %cst_255 : f32 to vector<8x1xf32>
    %978 = arith.mulf %976, %977 : vector<8x1xf32>
    %c48_256 = arith.constant 48 : index
    %c0_257 = arith.constant 0 : index
    %979 = vector.load %arg5[%c48_256, %c0_257] : memref<128x64xf32, #tpu.memory_space<vmem>>, vector<8x64xf32>
    %980 = vector.broadcast %978 : vector<8x1xf32> to vector<8x64xf32>
    %981 = arith.mulf %980, %979 : vector<8x64xf32>
    %982 = arith.addf %973, %981 : vector<8x64xf32>
    %983 = arith.mulf %877, %918 : vector<8x64xf32>
    %cst_258 = arith.constant dense<0.000000e+00> : vector<8xf32>
    %984 = vector.multi_reduction <add>, %983, %cst_258 [1] : vector<8x64xf32> to vector<8xf32>
    %985 = vector.shape_cast %984 : vector<8xf32> to vector<8x1xf32>
    %cst_259 = arith.constant 1.562500e-02 : f32
    %986 = vector.broadcast %cst_259 : f32 to vector<8x1xf32>
    %987 = arith.mulf %985, %986 : vector<8x1xf32>
    %c56_260 = arith.constant 56 : index
    %c0_261 = arith.constant 0 : index
    %988 = vector.load %arg5[%c56_260, %c0_261] : memref<128x64xf32, #tpu.memory_space<vmem>>, vector<8x64xf32>
    %989 = vector.broadcast %987 : vector<8x1xf32> to vector<8x64xf32>
    %990 = arith.mulf %989, %988 : vector<8x64xf32>
    %991 = arith.addf %982, %990 : vector<8x64xf32>
    %992 = arith.mulf %880, %918 : vector<8x64xf32>
    %cst_262 = arith.constant dense<0.000000e+00> : vector<8xf32>
    %993 = vector.multi_reduction <add>, %992, %cst_262 [1] : vector<8x64xf32> to vector<8xf32>
    %994 = vector.shape_cast %993 : vector<8xf32> to vector<8x1xf32>
    %cst_263 = arith.constant 1.562500e-02 : f32
    %995 = vector.broadcast %cst_263 : f32 to vector<8x1xf32>
    %996 = arith.mulf %994, %995 : vector<8x1xf32>
    %c64_264 = arith.constant 64 : index
    %c0_265 = arith.constant 0 : index
    %997 = vector.load %arg5[%c64_264, %c0_265] : memref<128x64xf32, #tpu.memory_space<vmem>>, vector<8x64xf32>
    %998 = vector.broadcast %996 : vector<8x1xf32> to vector<8x64xf32>
    %999 = arith.mulf %998, %997 : vector<8x64xf32>
    %1000 = arith.addf %991, %999 : vector<8x64xf32>
    %1001 = arith.mulf %883, %918 : vector<8x64xf32>
    %cst_266 = arith.constant dense<0.000000e+00> : vector<8xf32>
    %1002 = vector.multi_reduction <add>, %1001, %cst_266 [1] : vector<8x64xf32> to vector<8xf32>
    %1003 = vector.shape_cast %1002 : vector<8xf32> to vector<8x1xf32>
    %cst_267 = arith.constant 1.562500e-02 : f32
    %1004 = vector.broadcast %cst_267 : f32 to vector<8x1xf32>
    %1005 = arith.mulf %1003, %1004 : vector<8x1xf32>
    %c72_268 = arith.constant 72 : index
    %c0_269 = arith.constant 0 : index
    %1006 = vector.load %arg5[%c72_268, %c0_269] : memref<128x64xf32, #tpu.memory_space<vmem>>, vector<8x64xf32>
    %1007 = vector.broadcast %1005 : vector<8x1xf32> to vector<8x64xf32>
    %1008 = arith.mulf %1007, %1006 : vector<8x64xf32>
    %1009 = arith.addf %1000, %1008 : vector<8x64xf32>
    %1010 = arith.mulf %886, %918 : vector<8x64xf32>
    %cst_270 = arith.constant dense<0.000000e+00> : vector<8xf32>
    %1011 = vector.multi_reduction <add>, %1010, %cst_270 [1] : vector<8x64xf32> to vector<8xf32>
    %1012 = vector.shape_cast %1011 : vector<8xf32> to vector<8x1xf32>
    %cst_271 = arith.constant 1.562500e-02 : f32
    %1013 = vector.broadcast %cst_271 : f32 to vector<8x1xf32>
    %1014 = arith.mulf %1012, %1013 : vector<8x1xf32>
    %c80_272 = arith.constant 80 : index
    %c0_273 = arith.constant 0 : index
    %1015 = vector.load %arg5[%c80_272, %c0_273] : memref<128x64xf32, #tpu.memory_space<vmem>>, vector<8x64xf32>
    %1016 = vector.broadcast %1014 : vector<8x1xf32> to vector<8x64xf32>
    %1017 = arith.mulf %1016, %1015 : vector<8x64xf32>
    %1018 = arith.addf %1009, %1017 : vector<8x64xf32>
    %1019 = arith.mulf %889, %918 : vector<8x64xf32>
    %cst_274 = arith.constant dense<0.000000e+00> : vector<8xf32>
    %1020 = vector.multi_reduction <add>, %1019, %cst_274 [1] : vector<8x64xf32> to vector<8xf32>
    %1021 = vector.shape_cast %1020 : vector<8xf32> to vector<8x1xf32>
    %cst_275 = arith.constant 1.562500e-02 : f32
    %1022 = vector.broadcast %cst_275 : f32 to vector<8x1xf32>
    %1023 = arith.mulf %1021, %1022 : vector<8x1xf32>
    %c88_276 = arith.constant 88 : index
    %c0_277 = arith.constant 0 : index
    %1024 = vector.load %arg5[%c88_276, %c0_277] : memref<128x64xf32, #tpu.memory_space<vmem>>, vector<8x64xf32>
    %1025 = vector.broadcast %1023 : vector<8x1xf32> to vector<8x64xf32>
    %1026 = arith.mulf %1025, %1024 : vector<8x64xf32>
    %1027 = arith.addf %1018, %1026 : vector<8x64xf32>
    %1028 = arith.mulf %892, %918 : vector<8x64xf32>
    %cst_278 = arith.constant dense<0.000000e+00> : vector<8xf32>
    %1029 = vector.multi_reduction <add>, %1028, %cst_278 [1] : vector<8x64xf32> to vector<8xf32>
    %1030 = vector.shape_cast %1029 : vector<8xf32> to vector<8x1xf32>
    %cst_279 = arith.constant 1.562500e-02 : f32
    %1031 = vector.broadcast %cst_279 : f32 to vector<8x1xf32>
    %1032 = arith.mulf %1030, %1031 : vector<8x1xf32>
    %c96_280 = arith.constant 96 : index
    %c0_281 = arith.constant 0 : index
    %1033 = vector.load %arg5[%c96_280, %c0_281] : memref<128x64xf32, #tpu.memory_space<vmem>>, vector<8x64xf32>
    %1034 = vector.broadcast %1032 : vector<8x1xf32> to vector<8x64xf32>
    %1035 = arith.mulf %1034, %1033 : vector<8x64xf32>
    %1036 = arith.addf %1027, %1035 : vector<8x64xf32>
    %1037 = arith.mulf %895, %918 : vector<8x64xf32>
    %cst_282 = arith.constant dense<0.000000e+00> : vector<8xf32>
    %1038 = vector.multi_reduction <add>, %1037, %cst_282 [1] : vector<8x64xf32> to vector<8xf32>
    %1039 = vector.shape_cast %1038 : vector<8xf32> to vector<8x1xf32>
    %cst_283 = arith.constant 1.562500e-02 : f32
    %1040 = vector.broadcast %cst_283 : f32 to vector<8x1xf32>
    %1041 = arith.mulf %1039, %1040 : vector<8x1xf32>
    %c104_284 = arith.constant 104 : index
    %c0_285 = arith.constant 0 : index
    %1042 = vector.load %arg5[%c104_284, %c0_285] : memref<128x64xf32, #tpu.memory_space<vmem>>, vector<8x64xf32>
    %1043 = vector.broadcast %1041 : vector<8x1xf32> to vector<8x64xf32>
    %1044 = arith.mulf %1043, %1042 : vector<8x64xf32>
    %1045 = arith.addf %1036, %1044 : vector<8x64xf32>
    %1046 = arith.mulf %898, %918 : vector<8x64xf32>
    %cst_286 = arith.constant dense<0.000000e+00> : vector<8xf32>
    %1047 = vector.multi_reduction <add>, %1046, %cst_286 [1] : vector<8x64xf32> to vector<8xf32>
    %1048 = vector.shape_cast %1047 : vector<8xf32> to vector<8x1xf32>
    %cst_287 = arith.constant 1.562500e-02 : f32
    %1049 = vector.broadcast %cst_287 : f32 to vector<8x1xf32>
    %1050 = arith.mulf %1048, %1049 : vector<8x1xf32>
    %c112_288 = arith.constant 112 : index
    %c0_289 = arith.constant 0 : index
    %1051 = vector.load %arg5[%c112_288, %c0_289] : memref<128x64xf32, #tpu.memory_space<vmem>>, vector<8x64xf32>
    %1052 = vector.broadcast %1050 : vector<8x1xf32> to vector<8x64xf32>
    %1053 = arith.mulf %1052, %1051 : vector<8x64xf32>
    %1054 = arith.addf %1045, %1053 : vector<8x64xf32>
    %1055 = arith.mulf %901, %918 : vector<8x64xf32>
    %cst_290 = arith.constant dense<0.000000e+00> : vector<8xf32>
    %1056 = vector.multi_reduction <add>, %1055, %cst_290 [1] : vector<8x64xf32> to vector<8xf32>
    %1057 = vector.shape_cast %1056 : vector<8xf32> to vector<8x1xf32>
    %cst_291 = arith.constant 1.562500e-02 : f32
    %1058 = vector.broadcast %cst_291 : f32 to vector<8x1xf32>
    %1059 = arith.mulf %1057, %1058 : vector<8x1xf32>
    %c120_292 = arith.constant 120 : index
    %c0_293 = arith.constant 0 : index
    %1060 = vector.load %arg5[%c120_292, %c0_293] : memref<128x64xf32, #tpu.memory_space<vmem>>, vector<8x64xf32>
    %1061 = vector.broadcast %1059 : vector<8x1xf32> to vector<8x64xf32>
    %1062 = arith.mulf %1061, %1060 : vector<8x64xf32>
    %1063 = arith.addf %1054, %1062 : vector<8x64xf32>
    %c136 = arith.constant 136 : index
    %c0_294 = arith.constant 0 : index
    %1064 = vector.load %arg1[%c136, %c0_294] : memref<240x256xf32, #tpu.memory_space<vmem>>, vector<64x96xf32>
    %c236 = arith.constant 236 : index
    %c0_295 = arith.constant 0 : index
    %1065 = vector.load %arg1[%c236, %c0_295] : memref<240x256xf32, #tpu.memory_space<vmem>>, vector<1x96xf32>
    %cst_296 = arith.constant dense<0.000000e+00> : vector<8x96xf32>
    %1066 = tpu.matmul %1063, %1064, %cst_296 {dimension_numbers = #tpu.dot_dimension_numbers<[1], [0], [0], [1], [0, 0, 1, 1], [], []>} : vector<8x64xf32>, vector<64x96xf32>, vector<8x96xf32> -> vector<8x96xf32>
    %1067 = vector.broadcast %1065 : vector<1x96xf32> to vector<8x96xf32>
    %1068 = arith.addf %1066, %1067 : vector<8x96xf32>
    %c200 = arith.constant 200 : index
    %c0_297 = arith.constant 0 : index
    %1069 = vector.load %arg1[%c200, %c0_297] : memref<240x256xf32, #tpu.memory_space<vmem>>, vector<32x256xf32>
    %c237 = arith.constant 237 : index
    %c0_298 = arith.constant 0 : index
    %1070 = vector.load %arg1[%c237, %c0_298] : memref<240x256xf32, #tpu.memory_space<vmem>>, vector<1x256xf32>
    %1071 = vector.shape_cast %1070 : vector<1x256xf32> to vector<1x256xf32>
    %1072 = vector.broadcast %1071 : vector<1x256xf32> to vector<8x256xf32>
    %1073 = arith.addf %793, %814 : vector<8x32xf32>
    %cst_299 = arith.constant dense<0.000000e+00> : vector<8x256xf32>
    %1074 = tpu.matmul %1073, %1069, %cst_299 {dimension_numbers = #tpu.dot_dimension_numbers<[1], [0], [0], [1], [0, 0, 1, 1], [], []>} : vector<8x32xf32>, vector<32x256xf32>, vector<8x256xf32> -> vector<8x256xf32>
    %1075 = arith.addf %1074, %1072 : vector<8x256xf32>
    %1076 = vector.extract_strided_slice %1075 {offsets = [0, 0], sizes = [8, 96], strides = [1, 1]} : vector<8x256xf32> to vector<8x96xf32>
    %cst_300 = arith.constant 0.000000e+00 : f32
    %1077 = vector.broadcast %cst_300 : f32 to vector<8x96xf32>
    %1078 = arith.addf %1068, %1077 : vector<8x96xf32>
    %1079 = vector.extract_strided_slice %1078 {offsets = [0, 0], sizes = [8, 64], strides = [1, 1]} : vector<8x96xf32> to vector<8x64xf32>
    %1080 = vector.extract_strided_slice %1076 {offsets = [0, 0], sizes = [8, 64], strides = [1, 1]} : vector<8x96xf32> to vector<8x64xf32>
    %1081 = arith.addf %1079, %1080 : vector<8x64xf32>
    %1082 = arith.negf %1081 : vector<8x64xf32>
    %1083 = math.exp %1082 : vector<8x64xf32>
    %cst_301 = arith.constant 1.000000e+00 : f32
    %1084 = vector.broadcast %cst_301 : f32 to vector<8x64xf32>
    %1085 = arith.addf %1084, %1083 : vector<8x64xf32>
    %1086 = arith.divf %1084, %1085 : vector<8x64xf32>
    %1087 = vector.extract_strided_slice %1078 {offsets = [0, 64], sizes = [8, 32], strides = [1, 1]} : vector<8x96xf32> to vector<8x32xf32>
    %1088 = vector.extract_strided_slice %1086 {offsets = [0, 0], sizes = [8, 32], strides = [1, 1]} : vector<8x64xf32> to vector<8x32xf32>
    %1089 = vector.extract_strided_slice %1076 {offsets = [0, 64], sizes = [8, 32], strides = [1, 1]} : vector<8x96xf32> to vector<8x32xf32>
    %1090 = arith.mulf %1088, %1089 : vector<8x32xf32>
    %1091 = arith.addf %1087, %1090 : vector<8x32xf32>
    %1092 = math.tanh %1091 : vector<8x32xf32>
    %1093 = vector.extract_strided_slice %1086 {offsets = [0, 32], sizes = [8, 32], strides = [1, 1]} : vector<8x64xf32> to vector<8x32xf32>
    %cst_302 = arith.constant 1.000000e+00 : f32
    %1094 = vector.broadcast %cst_302 : f32 to vector<8x32xf32>
    %1095 = arith.subf %1094, %1093 : vector<8x32xf32>
    %1096 = arith.mulf %1095, %1092 : vector<8x32xf32>
    %1097 = vector.extract_strided_slice %1086 {offsets = [0, 32], sizes = [8, 32], strides = [1, 1]} : vector<8x64xf32> to vector<8x32xf32>
    %1098 = arith.mulf %1097, %1073 : vector<8x32xf32>
    %1099 = arith.addf %1096, %1098 : vector<8x32xf32>
    %cst_303 = arith.constant dense<0.000000e+00> : vector<8x256xf32>
    %1100 = tpu.matmul %1099, %1069, %cst_303 {dimension_numbers = #tpu.dot_dimension_numbers<[1], [0], [0], [1], [0, 0, 1, 1], [], []>} : vector<8x32xf32>, vector<32x256xf32>, vector<8x256xf32> -> vector<8x256xf32>
    %1101 = arith.addf %1100, %1072 : vector<8x256xf32>
    %1102 = vector.extract_strided_slice %1101 {offsets = [0, 0], sizes = [8, 96], strides = [1, 1]} : vector<8x256xf32> to vector<8x96xf32>
    %1103 = vector.extract_strided_slice %1101 {offsets = [0, 96], sizes = [8, 8], strides = [1, 1]} : vector<8x256xf32> to vector<8x8xf32>
    %1104 = vector.extract_strided_slice %1101 {offsets = [0, 128], sizes = [8, 96], strides = [1, 1]} : vector<8x256xf32> to vector<8x96xf32>
    %1105 = vector.extract_strided_slice %1099 {offsets = [0, 0], sizes = [2, 32], strides = [1, 1]} : vector<8x32xf32> to vector<2x32xf32>
    %1106 = vector.shape_cast %1105 : vector<2x32xf32> to vector<2x1x32xf32>
    %c0_304 = arith.constant 0 : index
    %c0_305 = arith.constant 0 : index
    %c0_306 = arith.constant 0 : index
    %1107 = vector.load %arg3[%c0_304, %c0_305, %c0_306] : memref<2x6x32xf32, #tpu.memory_space<vmem>>, vector<2x1x32xf32>
    tpu.vector_store %arg3[%c0_304, %c0_305, %c0_306], %1106 {strides = array<i32>} : memref<2x6x32xf32, #tpu.memory_space<vmem>>, vector<2x1x32xf32>,
    %1108 = vector.extract_strided_slice %1103 {offsets = [0, 0], sizes = [2, 8], strides = [1, 1]} : vector<8x8xf32> to vector<2x8xf32>
    %1109 = vector.shape_cast %1108 : vector<2x8xf32> to vector<2x1x8xf32>
    %c0_307 = arith.constant 0 : index
    %c0_308 = arith.constant 0 : index
    %c0_309 = arith.constant 0 : index
    %1110 = vector.load %arg2[%c0_307, %c0_308, %c0_309] : memref<2x6x8xf32, #tpu.memory_space<vmem>>, vector<2x1x8xf32>
    tpu.vector_store %arg2[%c0_307, %c0_308, %c0_309], %1109 {strides = array<i32>} : memref<2x6x8xf32, #tpu.memory_space<vmem>>, vector<2x1x8xf32>,
    %1111 = arith.addf %1068, %1104 : vector<8x96xf32>
    %1112 = vector.extract_strided_slice %1111 {offsets = [0, 0], sizes = [8, 64], strides = [1, 1]} : vector<8x96xf32> to vector<8x64xf32>
    %1113 = vector.extract_strided_slice %1102 {offsets = [0, 0], sizes = [8, 64], strides = [1, 1]} : vector<8x96xf32> to vector<8x64xf32>
    %1114 = arith.addf %1112, %1113 : vector<8x64xf32>
    %1115 = arith.negf %1114 : vector<8x64xf32>
    %1116 = math.exp %1115 : vector<8x64xf32>
    %cst_310 = arith.constant 1.000000e+00 : f32
    %1117 = vector.broadcast %cst_310 : f32 to vector<8x64xf32>
    %1118 = arith.addf %1117, %1116 : vector<8x64xf32>
    %1119 = arith.divf %1117, %1118 : vector<8x64xf32>
    %1120 = vector.extract_strided_slice %1111 {offsets = [0, 64], sizes = [8, 32], strides = [1, 1]} : vector<8x96xf32> to vector<8x32xf32>
    %1121 = vector.extract_strided_slice %1119 {offsets = [0, 0], sizes = [8, 32], strides = [1, 1]} : vector<8x64xf32> to vector<8x32xf32>
    %1122 = vector.extract_strided_slice %1102 {offsets = [0, 64], sizes = [8, 32], strides = [1, 1]} : vector<8x96xf32> to vector<8x32xf32>
    %1123 = arith.mulf %1121, %1122 : vector<8x32xf32>
    %1124 = arith.addf %1120, %1123 : vector<8x32xf32>
    %1125 = math.tanh %1124 : vector<8x32xf32>
    %1126 = vector.extract_strided_slice %1119 {offsets = [0, 32], sizes = [8, 32], strides = [1, 1]} : vector<8x64xf32> to vector<8x32xf32>
    %cst_311 = arith.constant 1.000000e+00 : f32
    %1127 = vector.broadcast %cst_311 : f32 to vector<8x32xf32>
    %1128 = arith.subf %1127, %1126 : vector<8x32xf32>
    %1129 = arith.mulf %1128, %1125 : vector<8x32xf32>
    %1130 = vector.extract_strided_slice %1119 {offsets = [0, 32], sizes = [8, 32], strides = [1, 1]} : vector<8x64xf32> to vector<8x32xf32>
    %1131 = arith.mulf %1130, %1099 : vector<8x32xf32>
    %1132 = arith.addf %1129, %1131 : vector<8x32xf32>
    %cst_312 = arith.constant dense<0.000000e+00> : vector<8x256xf32>
    %1133 = tpu.matmul %1132, %1069, %cst_312 {dimension_numbers = #tpu.dot_dimension_numbers<[1], [0], [0], [1], [0, 0, 1, 1], [], []>} : vector<8x32xf32>, vector<32x256xf32>, vector<8x256xf32> -> vector<8x256xf32>
    %1134 = arith.addf %1133, %1072 : vector<8x256xf32>
    %1135 = vector.extract_strided_slice %1134 {offsets = [0, 0], sizes = [8, 96], strides = [1, 1]} : vector<8x256xf32> to vector<8x96xf32>
    %1136 = vector.extract_strided_slice %1134 {offsets = [0, 96], sizes = [8, 8], strides = [1, 1]} : vector<8x256xf32> to vector<8x8xf32>
    %1137 = vector.extract_strided_slice %1134 {offsets = [0, 128], sizes = [8, 96], strides = [1, 1]} : vector<8x256xf32> to vector<8x96xf32>
    %1138 = vector.extract_strided_slice %1132 {offsets = [0, 0], sizes = [2, 32], strides = [1, 1]} : vector<8x32xf32> to vector<2x32xf32>
    %1139 = vector.shape_cast %1138 : vector<2x32xf32> to vector<2x1x32xf32>
    %c0_313 = arith.constant 0 : index
    %c1 = arith.constant 1 : index
    %c0_314 = arith.constant 0 : index
    %1140 = vector.load %arg3[%c0_313, %c1, %c0_314] : memref<2x6x32xf32, #tpu.memory_space<vmem>>, vector<2x1x32xf32>
    tpu.vector_store %arg3[%c0_313, %c1, %c0_314], %1139 {strides = array<i32>} : memref<2x6x32xf32, #tpu.memory_space<vmem>>, vector<2x1x32xf32>,
    %1141 = vector.extract_strided_slice %1136 {offsets = [0, 0], sizes = [2, 8], strides = [1, 1]} : vector<8x8xf32> to vector<2x8xf32>
    %1142 = vector.shape_cast %1141 : vector<2x8xf32> to vector<2x1x8xf32>
    %c0_315 = arith.constant 0 : index
    %c1_316 = arith.constant 1 : index
    %c0_317 = arith.constant 0 : index
    %1143 = vector.load %arg2[%c0_315, %c1_316, %c0_317] : memref<2x6x8xf32, #tpu.memory_space<vmem>>, vector<2x1x8xf32>
    tpu.vector_store %arg2[%c0_315, %c1_316, %c0_317], %1142 {strides = array<i32>} : memref<2x6x8xf32, #tpu.memory_space<vmem>>, vector<2x1x8xf32>,
    %1144 = arith.addf %1068, %1137 : vector<8x96xf32>
    %1145 = vector.extract_strided_slice %1144 {offsets = [0, 0], sizes = [8, 64], strides = [1, 1]} : vector<8x96xf32> to vector<8x64xf32>
    %1146 = vector.extract_strided_slice %1135 {offsets = [0, 0], sizes = [8, 64], strides = [1, 1]} : vector<8x96xf32> to vector<8x64xf32>
    %1147 = arith.addf %1145, %1146 : vector<8x64xf32>
    %1148 = arith.negf %1147 : vector<8x64xf32>
    %1149 = math.exp %1148 : vector<8x64xf32>
    %cst_318 = arith.constant 1.000000e+00 : f32
    %1150 = vector.broadcast %cst_318 : f32 to vector<8x64xf32>
    %1151 = arith.addf %1150, %1149 : vector<8x64xf32>
    %1152 = arith.divf %1150, %1151 : vector<8x64xf32>
    %1153 = vector.extract_strided_slice %1144 {offsets = [0, 64], sizes = [8, 32], strides = [1, 1]} : vector<8x96xf32> to vector<8x32xf32>
    %1154 = vector.extract_strided_slice %1152 {offsets = [0, 0], sizes = [8, 32], strides = [1, 1]} : vector<8x64xf32> to vector<8x32xf32>
    %1155 = vector.extract_strided_slice %1135 {offsets = [0, 64], sizes = [8, 32], strides = [1, 1]} : vector<8x96xf32> to vector<8x32xf32>
    %1156 = arith.mulf %1154, %1155 : vector<8x32xf32>
    %1157 = arith.addf %1153, %1156 : vector<8x32xf32>
    %1158 = math.tanh %1157 : vector<8x32xf32>
    %1159 = vector.extract_strided_slice %1152 {offsets = [0, 32], sizes = [8, 32], strides = [1, 1]} : vector<8x64xf32> to vector<8x32xf32>
    %cst_319 = arith.constant 1.000000e+00 : f32
    %1160 = vector.broadcast %cst_319 : f32 to vector<8x32xf32>
    %1161 = arith.subf %1160, %1159 : vector<8x32xf32>
    %1162 = arith.mulf %1161, %1158 : vector<8x32xf32>
    %1163 = vector.extract_strided_slice %1152 {offsets = [0, 32], sizes = [8, 32], strides = [1, 1]} : vector<8x64xf32> to vector<8x32xf32>
    %1164 = arith.mulf %1163, %1132 : vector<8x32xf32>
    %1165 = arith.addf %1162, %1164 : vector<8x32xf32>
    %cst_320 = arith.constant dense<0.000000e+00> : vector<8x256xf32>
    %1166 = tpu.matmul %1165, %1069, %cst_320 {dimension_numbers = #tpu.dot_dimension_numbers<[1], [0], [0], [1], [0, 0, 1, 1], [], []>} : vector<8x32xf32>, vector<32x256xf32>, vector<8x256xf32> -> vector<8x256xf32>
    %1167 = arith.addf %1166, %1072 : vector<8x256xf32>
    %1168 = vector.extract_strided_slice %1167 {offsets = [0, 0], sizes = [8, 96], strides = [1, 1]} : vector<8x256xf32> to vector<8x96xf32>
    %1169 = vector.extract_strided_slice %1167 {offsets = [0, 96], sizes = [8, 8], strides = [1, 1]} : vector<8x256xf32> to vector<8x8xf32>
    %1170 = vector.extract_strided_slice %1167 {offsets = [0, 128], sizes = [8, 96], strides = [1, 1]} : vector<8x256xf32> to vector<8x96xf32>
    %1171 = vector.extract_strided_slice %1165 {offsets = [0, 0], sizes = [2, 32], strides = [1, 1]} : vector<8x32xf32> to vector<2x32xf32>
    %1172 = vector.shape_cast %1171 : vector<2x32xf32> to vector<2x1x32xf32>
    %c0_321 = arith.constant 0 : index
    %c2 = arith.constant 2 : index
    %c0_322 = arith.constant 0 : index
    %1173 = vector.load %arg3[%c0_321, %c2, %c0_322] : memref<2x6x32xf32, #tpu.memory_space<vmem>>, vector<2x1x32xf32>
    tpu.vector_store %arg3[%c0_321, %c2, %c0_322], %1172 {strides = array<i32>} : memref<2x6x32xf32, #tpu.memory_space<vmem>>, vector<2x1x32xf32>,
    %1174 = vector.extract_strided_slice %1169 {offsets = [0, 0], sizes = [2, 8], strides = [1, 1]} : vector<8x8xf32> to vector<2x8xf32>
    %1175 = vector.shape_cast %1174 : vector<2x8xf32> to vector<2x1x8xf32>
    %c0_323 = arith.constant 0 : index
    %c2_324 = arith.constant 2 : index
    %c0_325 = arith.constant 0 : index
    %1176 = vector.load %arg2[%c0_323, %c2_324, %c0_325] : memref<2x6x8xf32, #tpu.memory_space<vmem>>, vector<2x1x8xf32>
    tpu.vector_store %arg2[%c0_323, %c2_324, %c0_325], %1175 {strides = array<i32>} : memref<2x6x8xf32, #tpu.memory_space<vmem>>, vector<2x1x8xf32>,
    %1177 = arith.addf %1068, %1170 : vector<8x96xf32>
    %1178 = vector.extract_strided_slice %1177 {offsets = [0, 0], sizes = [8, 64], strides = [1, 1]} : vector<8x96xf32> to vector<8x64xf32>
    %1179 = vector.extract_strided_slice %1168 {offsets = [0, 0], sizes = [8, 64], strides = [1, 1]} : vector<8x96xf32> to vector<8x64xf32>
    %1180 = arith.addf %1178, %1179 : vector<8x64xf32>
    %1181 = arith.negf %1180 : vector<8x64xf32>
    %1182 = math.exp %1181 : vector<8x64xf32>
    %cst_326 = arith.constant 1.000000e+00 : f32
    %1183 = vector.broadcast %cst_326 : f32 to vector<8x64xf32>
    %1184 = arith.addf %1183, %1182 : vector<8x64xf32>
    %1185 = arith.divf %1183, %1184 : vector<8x64xf32>
    %1186 = vector.extract_strided_slice %1177 {offsets = [0, 64], sizes = [8, 32], strides = [1, 1]} : vector<8x96xf32> to vector<8x32xf32>
    %1187 = vector.extract_strided_slice %1185 {offsets = [0, 0], sizes = [8, 32], strides = [1, 1]} : vector<8x64xf32> to vector<8x32xf32>
    %1188 = vector.extract_strided_slice %1168 {offsets = [0, 64], sizes = [8, 32], strides = [1, 1]} : vector<8x96xf32> to vector<8x32xf32>
    %1189 = arith.mulf %1187, %1188 : vector<8x32xf32>
    %1190 = arith.addf %1186, %1189 : vector<8x32xf32>
    %1191 = math.tanh %1190 : vector<8x32xf32>
    %1192 = vector.extract_strided_slice %1185 {offsets = [0, 32], sizes = [8, 32], strides = [1, 1]} : vector<8x64xf32> to vector<8x32xf32>
    %cst_327 = arith.constant 1.000000e+00 : f32
    %1193 = vector.broadcast %cst_327 : f32 to vector<8x32xf32>
    %1194 = arith.subf %1193, %1192 : vector<8x32xf32>
    %1195 = arith.mulf %1194, %1191 : vector<8x32xf32>
    %1196 = vector.extract_strided_slice %1185 {offsets = [0, 32], sizes = [8, 32], strides = [1, 1]} : vector<8x64xf32> to vector<8x32xf32>
    %1197 = arith.mulf %1196, %1165 : vector<8x32xf32>
    %1198 = arith.addf %1195, %1197 : vector<8x32xf32>
    %cst_328 = arith.constant dense<0.000000e+00> : vector<8x256xf32>
    %1199 = tpu.matmul %1198, %1069, %cst_328 {dimension_numbers = #tpu.dot_dimension_numbers<[1], [0], [0], [1], [0, 0, 1, 1], [], []>} : vector<8x32xf32>, vector<32x256xf32>, vector<8x256xf32> -> vector<8x256xf32>
    %1200 = arith.addf %1199, %1072 : vector<8x256xf32>
    %1201 = vector.extract_strided_slice %1200 {offsets = [0, 0], sizes = [8, 96], strides = [1, 1]} : vector<8x256xf32> to vector<8x96xf32>
    %1202 = vector.extract_strided_slice %1200 {offsets = [0, 96], sizes = [8, 8], strides = [1, 1]} : vector<8x256xf32> to vector<8x8xf32>
    %1203 = vector.extract_strided_slice %1200 {offsets = [0, 128], sizes = [8, 96], strides = [1, 1]} : vector<8x256xf32> to vector<8x96xf32>
    %1204 = vector.extract_strided_slice %1198 {offsets = [0, 0], sizes = [2, 32], strides = [1, 1]} : vector<8x32xf32> to vector<2x32xf32>
    %1205 = vector.shape_cast %1204 : vector<2x32xf32> to vector<2x1x32xf32>
    %c0_329 = arith.constant 0 : index
    %c3 = arith.constant 3 : index
    %c0_330 = arith.constant 0 : index
    %1206 = vector.load %arg3[%c0_329, %c3, %c0_330] : memref<2x6x32xf32, #tpu.memory_space<vmem>>, vector<2x1x32xf32>
    tpu.vector_store %arg3[%c0_329, %c3, %c0_330], %1205 {strides = array<i32>} : memref<2x6x32xf32, #tpu.memory_space<vmem>>, vector<2x1x32xf32>,
    %1207 = vector.extract_strided_slice %1202 {offsets = [0, 0], sizes = [2, 8], strides = [1, 1]} : vector<8x8xf32> to vector<2x8xf32>
    %1208 = vector.shape_cast %1207 : vector<2x8xf32> to vector<2x1x8xf32>
    %c0_331 = arith.constant 0 : index
    %c3_332 = arith.constant 3 : index
    %c0_333 = arith.constant 0 : index
    %1209 = vector.load %arg2[%c0_331, %c3_332, %c0_333] : memref<2x6x8xf32, #tpu.memory_space<vmem>>, vector<2x1x8xf32>
    tpu.vector_store %arg2[%c0_331, %c3_332, %c0_333], %1208 {strides = array<i32>} : memref<2x6x8xf32, #tpu.memory_space<vmem>>, vector<2x1x8xf32>,
    %1210 = arith.addf %1068, %1203 : vector<8x96xf32>
    %1211 = vector.extract_strided_slice %1210 {offsets = [0, 0], sizes = [8, 64], strides = [1, 1]} : vector<8x96xf32> to vector<8x64xf32>
    %1212 = vector.extract_strided_slice %1201 {offsets = [0, 0], sizes = [8, 64], strides = [1, 1]} : vector<8x96xf32> to vector<8x64xf32>
    %1213 = arith.addf %1211, %1212 : vector<8x64xf32>
    %1214 = arith.negf %1213 : vector<8x64xf32>
    %1215 = math.exp %1214 : vector<8x64xf32>
    %cst_334 = arith.constant 1.000000e+00 : f32
    %1216 = vector.broadcast %cst_334 : f32 to vector<8x64xf32>
    %1217 = arith.addf %1216, %1215 : vector<8x64xf32>
    %1218 = arith.divf %1216, %1217 : vector<8x64xf32>
    %1219 = vector.extract_strided_slice %1210 {offsets = [0, 64], sizes = [8, 32], strides = [1, 1]} : vector<8x96xf32> to vector<8x32xf32>
    %1220 = vector.extract_strided_slice %1218 {offsets = [0, 0], sizes = [8, 32], strides = [1, 1]} : vector<8x64xf32> to vector<8x32xf32>
    %1221 = vector.extract_strided_slice %1201 {offsets = [0, 64], sizes = [8, 32], strides = [1, 1]} : vector<8x96xf32> to vector<8x32xf32>
    %1222 = arith.mulf %1220, %1221 : vector<8x32xf32>
    %1223 = arith.addf %1219, %1222 : vector<8x32xf32>
    %1224 = math.tanh %1223 : vector<8x32xf32>
    %1225 = vector.extract_strided_slice %1218 {offsets = [0, 32], sizes = [8, 32], strides = [1, 1]} : vector<8x64xf32> to vector<8x32xf32>
    %cst_335 = arith.constant 1.000000e+00 : f32
    %1226 = vector.broadcast %cst_335 : f32 to vector<8x32xf32>
    %1227 = arith.subf %1226, %1225 : vector<8x32xf32>
    %1228 = arith.mulf %1227, %1224 : vector<8x32xf32>
    %1229 = vector.extract_strided_slice %1218 {offsets = [0, 32], sizes = [8, 32], strides = [1, 1]} : vector<8x64xf32> to vector<8x32xf32>
    %1230 = arith.mulf %1229, %1198 : vector<8x32xf32>
    %1231 = arith.addf %1228, %1230 : vector<8x32xf32>
    %cst_336 = arith.constant dense<0.000000e+00> : vector<8x256xf32>
    %1232 = tpu.matmul %1231, %1069, %cst_336 {dimension_numbers = #tpu.dot_dimension_numbers<[1], [0], [0], [1], [0, 0, 1, 1], [], []>} : vector<8x32xf32>, vector<32x256xf32>, vector<8x256xf32> -> vector<8x256xf32>
    %1233 = arith.addf %1232, %1072 : vector<8x256xf32>
    %1234 = vector.extract_strided_slice %1233 {offsets = [0, 0], sizes = [8, 96], strides = [1, 1]} : vector<8x256xf32> to vector<8x96xf32>
    %1235 = vector.extract_strided_slice %1233 {offsets = [0, 96], sizes = [8, 8], strides = [1, 1]} : vector<8x256xf32> to vector<8x8xf32>
    %1236 = vector.extract_strided_slice %1233 {offsets = [0, 128], sizes = [8, 96], strides = [1, 1]} : vector<8x256xf32> to vector<8x96xf32>
    %1237 = vector.extract_strided_slice %1231 {offsets = [0, 0], sizes = [2, 32], strides = [1, 1]} : vector<8x32xf32> to vector<2x32xf32>
    %1238 = vector.shape_cast %1237 : vector<2x32xf32> to vector<2x1x32xf32>
    %c0_337 = arith.constant 0 : index
    %c4 = arith.constant 4 : index
    %c0_338 = arith.constant 0 : index
    %1239 = vector.load %arg3[%c0_337, %c4, %c0_338] : memref<2x6x32xf32, #tpu.memory_space<vmem>>, vector<2x1x32xf32>
    tpu.vector_store %arg3[%c0_337, %c4, %c0_338], %1238 {strides = array<i32>} : memref<2x6x32xf32, #tpu.memory_space<vmem>>, vector<2x1x32xf32>,
    %1240 = vector.extract_strided_slice %1235 {offsets = [0, 0], sizes = [2, 8], strides = [1, 1]} : vector<8x8xf32> to vector<2x8xf32>
    %1241 = vector.shape_cast %1240 : vector<2x8xf32> to vector<2x1x8xf32>
    %c0_339 = arith.constant 0 : index
    %c4_340 = arith.constant 4 : index
    %c0_341 = arith.constant 0 : index
    %1242 = vector.load %arg2[%c0_339, %c4_340, %c0_341] : memref<2x6x8xf32, #tpu.memory_space<vmem>>, vector<2x1x8xf32>
    tpu.vector_store %arg2[%c0_339, %c4_340, %c0_341], %1241 {strides = array<i32>} : memref<2x6x8xf32, #tpu.memory_space<vmem>>, vector<2x1x8xf32>,
    %1243 = arith.addf %1068, %1236 : vector<8x96xf32>
    %1244 = vector.extract_strided_slice %1243 {offsets = [0, 0], sizes = [8, 64], strides = [1, 1]} : vector<8x96xf32> to vector<8x64xf32>
    %1245 = vector.extract_strided_slice %1234 {offsets = [0, 0], sizes = [8, 64], strides = [1, 1]} : vector<8x96xf32> to vector<8x64xf32>
    %1246 = arith.addf %1244, %1245 : vector<8x64xf32>
    %1247 = arith.negf %1246 : vector<8x64xf32>
    %1248 = math.exp %1247 : vector<8x64xf32>
    %cst_342 = arith.constant 1.000000e+00 : f32
    %1249 = vector.broadcast %cst_342 : f32 to vector<8x64xf32>
    %1250 = arith.addf %1249, %1248 : vector<8x64xf32>
    %1251 = arith.divf %1249, %1250 : vector<8x64xf32>
    %1252 = vector.extract_strided_slice %1243 {offsets = [0, 64], sizes = [8, 32], strides = [1, 1]} : vector<8x96xf32> to vector<8x32xf32>
    %1253 = vector.extract_strided_slice %1251 {offsets = [0, 0], sizes = [8, 32], strides = [1, 1]} : vector<8x64xf32> to vector<8x32xf32>
    %1254 = vector.extract_strided_slice %1234 {offsets = [0, 64], sizes = [8, 32], strides = [1, 1]} : vector<8x96xf32> to vector<8x32xf32>
    %1255 = arith.mulf %1253, %1254 : vector<8x32xf32>
    %1256 = arith.addf %1252, %1255 : vector<8x32xf32>
    %1257 = math.tanh %1256 : vector<8x32xf32>
    %1258 = vector.extract_strided_slice %1251 {offsets = [0, 32], sizes = [8, 32], strides = [1, 1]} : vector<8x64xf32> to vector<8x32xf32>
    %cst_343 = arith.constant 1.000000e+00 : f32
    %1259 = vector.broadcast %cst_343 : f32 to vector<8x32xf32>
    %1260 = arith.subf %1259, %1258 : vector<8x32xf32>
    %1261 = arith.mulf %1260, %1257 : vector<8x32xf32>
    %1262 = vector.extract_strided_slice %1251 {offsets = [0, 32], sizes = [8, 32], strides = [1, 1]} : vector<8x64xf32> to vector<8x32xf32>
    %1263 = arith.mulf %1262, %1231 : vector<8x32xf32>
    %1264 = arith.addf %1261, %1263 : vector<8x32xf32>
    %cst_344 = arith.constant dense<0.000000e+00> : vector<8x256xf32>
    %1265 = tpu.matmul %1264, %1069, %cst_344 {dimension_numbers = #tpu.dot_dimension_numbers<[1], [0], [0], [1], [0, 0, 1, 1], [], []>} : vector<8x32xf32>, vector<32x256xf32>, vector<8x256xf32> -> vector<8x256xf32>
    %1266 = arith.addf %1265, %1072 : vector<8x256xf32>
    %1267 = vector.extract_strided_slice %1266 {offsets = [0, 96], sizes = [8, 8], strides = [1, 1]} : vector<8x256xf32> to vector<8x8xf32>
    %1268 = vector.extract_strided_slice %1264 {offsets = [0, 0], sizes = [2, 32], strides = [1, 1]} : vector<8x32xf32> to vector<2x32xf32>
    %1269 = vector.shape_cast %1268 : vector<2x32xf32> to vector<2x1x32xf32>
    %c0_345 = arith.constant 0 : index
    %c5 = arith.constant 5 : index
    %c0_346 = arith.constant 0 : index
    %1270 = vector.load %arg3[%c0_345, %c5, %c0_346] : memref<2x6x32xf32, #tpu.memory_space<vmem>>, vector<2x1x32xf32>
    tpu.vector_store %arg3[%c0_345, %c5, %c0_346], %1269 {strides = array<i32>} : memref<2x6x32xf32, #tpu.memory_space<vmem>>, vector<2x1x32xf32>,
    %1271 = vector.extract_strided_slice %1267 {offsets = [0, 0], sizes = [2, 8], strides = [1, 1]} : vector<8x8xf32> to vector<2x8xf32>
    %1272 = vector.shape_cast %1271 : vector<2x8xf32> to vector<2x1x8xf32>
    %c0_347 = arith.constant 0 : index
    %c5_348 = arith.constant 5 : index
    %c0_349 = arith.constant 0 : index
    %1273 = vector.load %arg2[%c0_347, %c5_348, %c0_349] : memref<2x6x8xf32, #tpu.memory_space<vmem>>, vector<2x1x8xf32>
    tpu.vector_store %arg2[%c0_347, %c5_348, %c0_349], %1272 {strides = array<i32>} : memref<2x6x8xf32, #tpu.memory_space<vmem>>, vector<2x1x8xf32>,
    return
  }
}

</mosaic_0001>

<bundles_post_ra>
// kernel: eeg_phoneme_seq2seq_forward.1
= control target key start
LH: loop header
LB: loop body
LE: loop exit
PB: predicated region body
PF: predicated region fallthrough
CT: control target
= control target key end

     0   :  { %9 = vsyncpa [#allocation5], 0  ;;  %s6607_s12 = smov [#allocation4]   ;;  %s7947_s0 = inlined_call_operand.vmem [shape: f32[128,4], index: 0, kind: input, shape index: {}]   ;;  %s7948_s1 = inlined_call_operand.hbm [shape: f32[240,256], index: 1, kind: input, shape index: {}]   ;;  %s7949_s2 = inlined_call_operand.vmem [shape: f32[2,6,8], index: 2, kind: output, shape index: {0}]   ;;  %s7950_s3 = inlined_call_operand.vmem [shape: f32[2,6,32], index: 3, kind: output, shape index: {1}]  }
   0x1   :  { %s17_s13 = sshll.u32 %s6607_s12, 4  ;;  %s6583_s16 = scalar_lea.hbm %s7948_s1, 7680  ;;  %s18_s13 = int_to_ptr.vmem [resolvable:$true] %s17_s13 }
   0x2   :  { %p6584_p0 = scmp.ne.s32.totalorder %s7948_s1, %s6583_s16  ;;  %p6587_p1 = scmp.lt.u32.totalorder %s6583_s16, %s7948_s1 }
   0x4   :  { %p6589_p2 = pnand %p6587_p1, %p6584_p0 }
   0x6   :  { %6592 = shalt.err (!%p6589_p2)
}
   0x7   :  { %s6593_s21 = scalar_lea.vmem %s18_s13, 7680  ;;  %p6598_p4 = scmp.lt.s32.totalorder %s18_s13, %s18_s13 }
   0x8   :  { %p6594_p3 = scmp.ne.s32.totalorder %s18_s13, %s6593_s21  ;;  %p6599_p5 = scmp.lt.s32.totalorder %s6593_s21, %s6593_s21 }
   0xa   :  { %p6600_p6 = por %p6599_p5, %p6598_p4 }
   0xc   :  { %p6601_p7 = pnand %p6600_p6, %p6594_p3 }
   0xe   :  { %6604 = shalt.err (!%p6601_p7)
}
   0xf   :  { %s6608_s22 = smov 256   ;;  %s6609_s23 = smov 16  }
  0x10   :  { %23 = dma.hbm_to_vmem [thread:$0]  %s7948_s1, 7680, %s18_s13, [#allocation5], %s6608_s22, %s6608_s22, %s6609_s23  }
  0x11   :  { %6605 = dma.done.wait [#allocation5], 7680  }
  0x12   :  { %6606 = vsyncadd [#allocation5], 4294959616  ;;  %v6610_v0 = vmov 0.0|0.0   ;;  %v6611_v1 = vmov 0.0   ;;  %vm6612_vm0 = vmmov 0   ;;  %vm107_vm1 = vcmask 1043456  }
  0x13   :  { %6031 = vmatprep.subr.bf16.mxu1 %v6610_v0  ;;  %178 = vmatprep.mubr.f32.mxu0 %v6611_v1  ;;  %v307_v2 = vld [vmem:[#allocation4 + $0x10] sm:$0xff]  ;;  %v308_v3 = vld [vmem:[#allocation4 + $0x20] sm:$0xff]  ;;  %v28_v7 = vld [vmem:[#allocation4 + $0x8] sm:$0xf]  ;;  %vm58_vm2 = vcmask 31744   ;;  %v48_v32 = vlaneseq  ;;  %s6614_s29 = smov 96  }
  0x14   :  { %5628 = vmatprep.mubr.msk.f32.mxu1 %vm6612_vm0, %v6611_v1  ;;  %v309_v4 = vld [vmem:[#allocation4 + $0x30] sm:$0xff]  ;;  %v6653_v5 = vpack.c.bf16 %v308_v3, %v307_v2  ;;  %v310_v6 = vld [vmem:[#allocation4 + $0x40] sm:$0xff]  ;;  %5317 = vmatprep.subr.msk.mxu0 %vm107_vm1, %v28_v7  ;;  %v32_v13 = vld [vmem:[%s7947_s0 + $0x8] sm:$0xff]  ;;  %vm520_vm3 = vcmask 523520   ;;  %vm319_vm4 = vcmask 261120   ;;  %vm3652_vm5 = vcmask 523264  }
  0x15   :  { %v27_v8 = vld [vmem:[#allocation4] sm:$0xf]  ;;  %v6659_v10 = vpack.c.bf16 %v310_v6, %v309_v4  ;;  %v311_v11 = vld [vmem:[#allocation4 + $0x50] sm:$0xff]  ;;  %v34_v19 = vld [vmem:[%s7947_s0 + $0x18] sm:$0xff]  ;;  %v6765_v33 = vshrl.u32 %v48_v32, 7  ;;  %s6616_s30 = smov 32  }
  0x16   :  { %v31_v9 = vld [vmem:[%s7947_s0] sm:$0xff]  ;;  %6033 = vmatpush3.bf16.msra.mxu1 %v6653_v5  ;;  %5318 = vmatpush1.msk.msra.mxu0 %vm107_vm1, %v27_v8  ;;  %v313_v15 = vld [vmem:[#allocation4 + $0x70] sm:$0xff]  ;;  %v36_v21 = vld [vmem:[%s7947_s0 + $0x28] sm:$0xff]  ;;  %vm4371_vm6 = vcmask 253952   ;;  %vm4411_vm7 = vcmask 57344  }
  0x17   :  { %6034 = vmatprep.subr.bf16.mxu1 %v6610_v0  ;;  %5319 = vmatmul.mubr.msk.f32.vlgmr.msra.gmra.mrb[0].mxu0 %vm58_vm2, %v31_v9  ;;  %v312_v12 = vld [vmem:[#allocation4 + $0x60] sm:$0xff]  ;;  %v33_v17 = vld [vmem:[%s7947_s0 + $0x10] sm:$0xff]  ;;  %v38_v23 = vld [vmem:[%s7947_s0 + $0x38] sm:$0xff]  ;;  %v54_v34 = vsub.s32 1, %v6765_v33  ;;  %v6773_v37 = vsub.s32 0, %v6765_v33 }
  0x18   :  { %184 = vmatprep.mubr.f32.mxu0 %v6611_v1  ;;  %6079 = vmatprep.subr.bf16.mxu0 %v6610_v0  ;;  %v6670_v14 = vpack.c.bf16 %v312_v12, %v311_v11  ;;  %v314_v16 = vld [vmem:[#allocation4 + $0x80] sm:$0xff]  ;;  %v37_v22 = vld [vmem:[%s7947_s0 + $0x30] sm:$0xff]  ;;  %v40_v25 = vld [vmem:[%s7947_s0 + $0x48] sm:$0xff] }
  0x19   :  { %6081 = vmatpush3.bf16.msra.mxu0 %v6653_v5  ;;  %v6682_v18 = vpack.c.bf16 %v314_v16, %v313_v15  ;;  %v35_v20 = vld [vmem:[%s7947_s0 + $0x20] sm:$0xff]  ;;  %v41_v26 = vld [vmem:[%s7947_s0 + $0x50] sm:$0xff]  ;;  %v42_v27 = vld [vmem:[%s7947_s0 + $0x58] sm:$0xff] }
  0x1a   :  { %6036 = vmatpush3.bf16.msra.mxu1 %v6659_v10  ;;  %6082 = vmatprep.subr.bf16.mxu0 %v6610_v0  ;;  %v39_v24 = vld [vmem:[%s7947_s0 + $0x40] sm:$0xff]  ;;  %v44_v29 = vld [vmem:[%s7947_s0 + $0x68] sm:$0xff]  ;;  %v45_v30 = vld [vmem:[%s7947_s0 + $0x70] sm:$0xff] }
  0x1b   :  { %6037 = vmatprep.subr.bf16.mxu1 %v6610_v0  ;;  %5320 = vmatmul.mubr.msk.f32.gmra.mrb[2].mxu0 %vm58_vm2, %v32_v13  ;;  %v43_v28 = vld [vmem:[%s7947_s0 + $0x60] sm:$0xff]  ;;  %v46_v31 = vld [vmem:[%s7947_s0 + $0x78] sm:$0xff]  ;;  %v6783_v42 = vld [vmem:[#allocation4 + $0x1d1] ss:$0 sm:$0xff]  ;;  %s6613_s0 = smov 64  }
  0x1c   :  { %190 = vmatprep.mubr.f32.mxu0 %v6611_v1  ;;  %v30_v35 = vld [vmem:[#allocation4 + $0x1d0] ss:$8 sm:$0x3]  ;;  %v6802_v54 = vld [vmem:[#allocation4 + $0x1d2] ss:$0 sm:$0xff] }
  0x1d   :  { %5629 = vmatmul.mubr.f32.vlgmr.msra.gmra.mrb[0].mxu1 %v6611_v1  ;;  %6084 = vmatpush3.bf16.msra.mxu0 %v6659_v10  ;;  %v6770_v36 = vrot.slane %v30_v35, %v54_v34  ;;  %v6781_v41 = vrot.slane %v30_v35, %v6773_v37 }
  0x1e   :  { %6039 = vmatpush3.bf16.msra.mxu1 %v6670_v14  ;;  %5639 = vmatprep.mubr.msk.f32.mxu1 %vm6612_vm0, %v6611_v1 }
  0x1f   :  { %6040 = vmatprep.subr.bf16.mxu1 %v6610_v0  ;;  %5321 = vmatmul.mubr.msk.f32.gmra.mrb[4].mxu0 %vm58_vm2, %v33_v17 }
  0x20   :  { %196 = vmatprep.mubr.f32.mxu0 %v6611_v1  ;;  %6091 = vmatprep.subr.bf16.mxu0 %v6610_v0 }
  0x22   :  { %6042 = vmatpush3.bf16.msra.mxu1 %v6682_v18 }
  0x23   :  { %5322 = vmatmul.mubr.msk.f32.gmra.mrb[6].mxu0 %vm58_vm2, %v34_v19  ;;  %6043 = vmatprep.subr.bf16.mxu1 %v6610_v0 }
  0x24   :  { %202 = vmatprep.mubr.f32.mxu0 %v6611_v1 }
  0x25   :  { %5640 = vmatmul.mubr.f32.vlgmr.msra.gmra.mrb[2].mxu1 %v6611_v1 }
  0x26   :  { %6045 = vmatpush3.bf16.msra.mxu1 %v6653_v5  ;;  %5650 = vmatprep.mubr.msk.f32.mxu1 %vm6612_vm0, %v6611_v1 }
  0x27   :  { %5323 = vmatmul.mubr.msk.f32.gmra.mrb[8].mxu0 %vm58_vm2, %v35_v20  ;;  %6046 = vmatprep.subr.bf16.mxu1 %v6610_v0 }
  0x28   :  { %208 = vmatprep.mubr.f32.mxu0 %v6611_v1 }
  0x2a   :  { %6048 = vmatpush3.bf16.msra.mxu1 %v6659_v10 }
  0x2b   :  { %5324 = vmatmul.mubr.msk.f32.gmra.mrb[10].mxu0 %vm58_vm2, %v36_v21  ;;  %6049 = vmatprep.subr.bf16.mxu1 %v6610_v0 }
  0x2c   :  { %214 = vmatprep.mubr.f32.mxu0 %v6611_v1 }
  0x2f   :  { %5325 = vmatmul.mubr.msk.f32.gmra.mrb[12].mxu0 %vm58_vm2, %v37_v22 }
  0x30   :  { %220 = vmatprep.mubr.f32.mxu0 %v6611_v1 }
  0x33   :  { %5326 = vmatmul.mubr.msk.f32.gmra.mrb[14].mxu0 %vm58_vm2, %v38_v23 }
  0x34   :  { %226 = vmatprep.mubr.f32.mxu0 %v6611_v1 }
  0x37   :  { %5327 = vmatmul.mubr.msk.f32.gmra.mrb[16].mxu0 %vm58_vm2, %v39_v24 }
  0x38   :  { %232 = vmatprep.mubr.f32.mxu0 %v6611_v1 }
  0x3b   :  { %5328 = vmatmul.mubr.msk.f32.gmra.mrb[18].mxu0 %vm58_vm2, %v40_v25 }
  0x3c   :  { %238 = vmatprep.mubr.f32.mxu0 %v6611_v1 }
  0x3f   :  { %5329 = vmatmul.mubr.msk.f32.gmra.mrb[20].mxu0 %vm58_vm2, %v41_v26 }
  0x40   :  { %244 = vmatprep.mubr.f32.mxu0 %v6611_v1 }
  0x43   :  { %5330 = vmatmul.mubr.msk.f32.gmra.mrb[22].mxu0 %vm58_vm2, %v42_v27 }
  0x44   :  { %250 = vmatprep.mubr.f32.mxu0 %v6611_v1 }
  0x47   :  { %5331 = vmatmul.mubr.msk.f32.gmra.mrb[24].mxu0 %vm58_vm2, %v43_v28 }
  0x48   :  { %256 = vmatprep.mubr.f32.mxu0 %v6611_v1 }
  0x4b   :  { %5332 = vmatmul.mubr.msk.f32.gmra.mrb[26].mxu0 %vm58_vm2, %v44_v29 }
  0x4c   :  { %262 = vmatprep.mubr.f32.mxu0 %v6611_v1 }
  0x4f   :  { %5333 = vmatmul.mubr.msk.f32.gmra.mrb[28].mxu0 %vm58_vm2, %v45_v30 }
  0x50   :  { %268 = vmatprep.mubr.f32.mxu0 %v6611_v1 }
  0x53   :  { %5334 = vmatmul.mubr.msk.f32.gmra.mrb[30].mxu0 %vm58_vm2, %v46_v31 }
  0x54   :  { %5716 = vmatprep.mubr.msk.f32.mxu0 %vm6612_vm0, %v6611_v1 }
  0xea   :  { %v6775_v38 = vpop.f32.mrb[0].mxu0 }
  0xeb   :  { %v182_v39 = vpop.f32.mrb[1].mxu0 }
  0xec   :  { %v6778_v40 = vadd.f32 %v182_v39, %v6770_v36 }
  0xee   :  { %v186_v43 = vpop.f32.mrb[2].mxu0 }
  0xef   :  { %v6786_v44 = vadd.f32 %v186_v43, %v6781_v41  ;;  %v188_v45 = vpop.f32.mrb[3].mxu0 }
  0xf0   :  { %v389_v46 = vpop.f32.mrb[0].mxu1  ;;  %v6789_v47 = vadd.f32 %v188_v45, %v6770_v36 }
  0xf1   :  { %v6792_v48 = vadd.f32 %v389_v46, %v6783_v42  ;;  %v5630_v49 = vpop.f32.mrb[1].mxu1 }
  0xf2   :  { %v192_v50 = vpop.f32.mrb[4].mxu0 }
  0xf3   :  { %471 = vrot.lane.b32.xlu0 %v6792_v48, %s6613_s0  ;;  %v6797_v51 = vadd.f32 %v192_v50, %v6781_v41  ;;  %v194_v52 = vpop.f32.mrb[5].mxu0 }
  0xf4   :  { %v6800_v53 = vadd.f32 %v194_v52, %v6770_v36 }
  0xf6   :  { %v198_v55 = vpop.f32.mrb[6].mxu0 }
  0xf7   :  { %v6805_v56 = vadd.f32 %v198_v55, %v6781_v41  ;;  %v200_v57 = vpop.f32.mrb[7].mxu0 }
  0xf8   :  { %v459_v58 = vpop.f32.mrb[2].mxu1  ;;  %v6808_v59 = vadd.f32 %v200_v57, %v6770_v36 }
  0xf9   :  { %v460_v60 = vadd.f32 %v459_v58, %v6802_v54  ;;  %v5641_v61 = vpop.f32.mrb[3].mxu1 }
  0xfa   :  { %v204_v62 = vpop.f32.mrb[8].mxu0 }
  0xfb   :  { %497 = vrot.lane.b32.xlu0 %v460_v60, %s6613_s0  ;;  %v6813_v63 = vadd.f32 %v204_v62, %v6781_v41  ;;  %v206_v2 = vpop.f32.mrb[9].mxu0 }
  0xfc   :  { %v6816_v3 = vadd.f32 %v206_v2, %v6770_v36 }
  0xfe   :  { %v210_v4 = vpop.f32.mrb[10].mxu0 }
  0xff   :  { %v6819_v6 = vadd.f32 %v210_v4, %v6781_v41  ;;  %v212_v7 = vpop.f32.mrb[11].mxu0 }
 0x100   :  { %v6822_v8 = vadd.f32 %v212_v7, %v6770_v36 }
 0x102   :  { %v216_v9 = vpop.f32.mrb[12].mxu0 }
 0x103   :  { %v6825_v11 = vadd.f32 %v216_v9, %v6781_v41  ;;  %v218_v12 = vpop.f32.mrb[13].mxu0 }
 0x104   :  { %v6828_v13 = vadd.f32 %v218_v12, %v6770_v36 }
 0x106   :  { %v222_v15 = vpop.f32.mrb[14].mxu0 }
 0x107   :  { %v6831_v16 = vadd.f32 %v222_v15, %v6781_v41  ;;  %v224_v17 = vpop.f32.mrb[15].mxu0  ;;  %v181_v15 = vadd.f32 %v6775_v38, %v6781_v41 }
 0x108   :  { %v6834_v19 = vadd.f32 %v224_v17, %v6770_v36 }
 0x109   :  { %v463_v17 = vadd.f32 %v6792_v48, %v181_v15 }
 0x10a   :  { %v228_v20 = vpop.f32.mrb[16].mxu0 }
 0x10b   :  { %v6837_v21 = vadd.f32 %v228_v20, %v6781_v41  ;;  %v230_v22 = vpop.f32.mrb[17].mxu0  ;;  %v5335_v20 = vmul.f32 -1.442695, %v463_v17 }
 0x10c   :  { %v6840_v23 = vadd.f32 %v230_v22, %v6770_v36 }
 0x10d   :  { %6317 = vpow2.f32 %v5335_v20 }
 0x10e   :  { %v234_v24 = vpop.f32.mrb[18].mxu0 }
 0x10f   :  { %v6843_v25 = vadd.f32 %v234_v24, %v6781_v41  ;;  %v236_v26 = vpop.f32.mrb[19].mxu0 }
 0x110   :  { %v6846_v27 = vadd.f32 %v236_v26, %v6770_v36 }
 0x112   :  { %v240_v28 = vpop.f32.mrb[20].mxu0 }
 0x113   :  { %v6849_v29 = vadd.f32 %v240_v28, %v6781_v41  ;;  %v242_v30 = vpop.f32.mrb[21].mxu0 }
 0x114   :  { %v6852_v31 = vadd.f32 %v242_v30, %v6770_v36 }
 0x116   :  { %v246_v32 = vpop.f32.mrb[22].mxu0 }
 0x117   :  { %v6855_v35 = vadd.f32 %v246_v32, %v6781_v41  ;;  %v248_v39 = vpop.f32.mrb[23].mxu0  ;;  %v6318_v28 = vpop.eup %6317 }
 0x118   :  { %v6858_v43 = vadd.f32 %v248_v39, %v6770_v36  ;;  %v467_v30 = vadd.f32 1.0, %v6318_v28 }
 0x11a   :  { %v252_v45 = vpop.f32.mrb[24].mxu0 }
 0x11b   :  { %v6861_v46 = vadd.f32 %v252_v45, %v6781_v41  ;;  %v254_v49 = vpop.f32.mrb[25].mxu0 }
 0x11c   :  { %v6864_v50 = vadd.f32 %v254_v49, %v6770_v36 }
 0x11e   :  { %v258_v52 = vpop.f32.mrb[26].mxu0 }
 0x11f   :  { %v6867_v55 = vadd.f32 %v258_v52, %v6781_v41  ;;  %v260_v57 = vpop.f32.mrb[27].mxu0 }
 0x120   :  { %v6870_v58 = vadd.f32 %v260_v57, %v6770_v36 }
 0x122   :  { %v264_v61 = vpop.f32.mrb[28].mxu0 }
 0x123   :  { %v6873_v62 = vadd.f32 %v264_v61, %v6781_v41  ;;  %v266_v2 = vpop.f32.mrb[29].mxu0 }
 0x124   :  { %v6876_v4 = vadd.f32 %v266_v2, %v6770_v36 }
 0x126   :  { %v270_v7 = vpop.f32.mrb[30].mxu0 }
 0x127   :  { %v6879_v9 = vadd.f32 %v270_v7, %v6781_v41  ;;  %v272_v12 = vpop.f32.mrb[31].mxu0 }
 0x128   :  { %v273_v22 = vadd.f32 %v272_v12, %v6770_v36 }
 0x12a   :  { %v489_v24 = vadd.f32 %v460_v60, %v273_v22 }
 0x12c   :  { %v5336_v26 = vmul.f32 -1.442695, %v489_v24 }
 0x12e   :  { %6319 = vpow2.f32 %v5336_v26 }
 0x12f   :  { %6321 = vrcp.f32 %v467_v30 }
 0x138   :  { %v6320_v32 = vpop.eup %6319 }
 0x139   :  { %v493_v39 = vadd.f32 1.0, %v6320_v32  ;;  %v6322_v45 = vpop.eup %6321 }
 0x13a   :  { %v481_v12 = vsub.f32 1.0, %v6322_v45  ;;  %v487_v20 = vmul.f32 0.0, %v6322_v45 }
 0x13b   :  { %6323 = vrcp.f32 %v493_v39 }
 0x145   :  { %v6324_v38 = vpop.eup %6323 }
 0x165   :  { %v472_v49 = vpop.permute.xlu0 %471 }
 0x166   :  { %v474_v52 = vmul.f32 %v6322_v45, %v472_v49 }
 0x168   :  { %476 = vrot.lane.b32.xlu1 %v474_v52, %s6613_s0 }
 0x16d   :  { %v498_v41 = vpop.permute.xlu0 %497 }
 0x16e   :  { %v500_v48 = vmul.f32 %v6324_v38, %v498_v41 }
 0x170   :  { %502 = vrot.lane.b32.xlu1 %v500_v48, %s6613_s0 }
 0x1da   :  { %v477_v36 = vpop.permute.xlu1 %476 }
 0x1db   :  { %v479_v60 = vadd.f32 %v477_v36, %v181_v15  ;;  %v507_v15 = vsub.f32 1.0, %v6324_v38 }
 0x1dd   :  { %6325 = vtanh.f32 %v479_v60 }
 0x1e2   :  { %v503_v57 = vpop.permute.xlu1 %502 }
 0x1e3   :  { %v505_v61 = vadd.f32 %v503_v57, %v273_v22  ;;  %v513_v22 = vmul.f32 0.0, %v6324_v38 }
 0x1e5   :  { %6327 = vtanh.f32 %v505_v61 }
 0x1e7   :  { %v6326_v2 = vpop.eup %6325 }
 0x1e8   :  { %483 = vrot.lane.b32.xlu0 %v6326_v2, %s6614_s29 }
 0x1ef   :  { %v6328_v7 = vpop.eup %6327 }
 0x1f0   :  { %509 = vrot.lane.b32.xlu1 %v6328_v7, %s6614_s29 }
 0x25a   :  { %v484_v17 = vpop.permute.xlu0 %483 }
 0x25b   :  { %v486_v24 = vmul.f32 %v484_v17, %v481_v12 }
 0x25d   :  { %v6889_v26 = vadd.f32 %v487_v20, %v486_v24 }
 0x25f   :  { %516 = vrot.lane.b32.xlu0 %v6889_v26, %s6614_s29 }
 0x262   :  { %v510_v28 = vpop.permute.xlu1 %509 }
 0x263   :  { %v512_v30 = vmul.f32 %v510_v28, %v507_v15 }
 0x265   :  { %v6893_v32 = vadd.f32 %v513_v22, %v512_v30 }
 0x267   :  { %597 = vrot.lane.b32.xlu1 %v6893_v32, %s6614_s29  ;;  %521 = vst.msk [vmem:[#allocation3 + $0x78] sm:$0xff] %vm520_vm3, %v6893_v32 }
 0x2d1   :  { %v517_v39 = vpop.permute.xlu0 %516 }
 0x2d2   :  { %519 = vst.msk [vmem:[#allocation3] sm:$0xff] %vm319_vm4, %v517_v39  ;;  %5651 = vmatmul.mubr.msk.f32.vlgmr.msra.gmra.mrb[4].mxu1 %vm319_vm4, %v517_v39 }
 0x2d3   :  { %6051 = vmatpush3.bf16.msra.mxu1 %v6670_v14  ;;  %5661 = vmatprep.mubr.msk.f32.mxu1 %vm6612_vm0, %v6611_v1 }
 0x2d4   :  { %6052 = vmatprep.subr.bf16.mxu1 %v6610_v0 }
 0x2d7   :  { %6054 = vmatpush3.bf16.msra.mxu1 %v6682_v18 }
 0x2d8   :  { %6055 = vmatprep.subr.bf16.mxu1 %v6610_v0 }
 0x2d9   :  { %v598_v45 = vpop.permute.xlu1 %597 }
 0x2da   :  { %5662 = vmatmul.mubr.msk.f32.vlgmr.msra.gmra.mrb[6].mxu1 %vm319_vm4, %v598_v45 }
 0x2db   :  { %6057 = vmatpush3.bf16.msra.mxu1 %v6653_v5  ;;  %5672 = vmatprep.mubr.msk.f32.mxu1 %vm6612_vm0, %v6611_v1 }
 0x2dc   :  { %6058 = vmatprep.subr.bf16.mxu1 %v6610_v0 }
 0x2df   :  { %6060 = vmatpush3.bf16.msra.mxu1 %v6659_v10 }
 0x2e0   :  { %6061 = vmatprep.subr.bf16.mxu1 %v6610_v0 }
 0x3a5   :  { %v592_v49 = vpop.f32.mrb[4].mxu1 }
 0x3a6   :  { %v593_v52 = vadd.f32 %v592_v49, %v6783_v42  ;;  %v5652_v38 = vpop.f32.mrb[5].mxu1 }
 0x3a8   :  { %679 = vrot.lane.b32.xlu0 %v593_v52, %s6613_s0  ;;  %v671_v60 = vadd.f32 %v593_v52, %v6786_v44 }
 0x3aa   :  { %v5339_v57 = vmul.f32 -1.442695, %v671_v60 }
 0x3ac   :  { %6329 = vpow2.f32 %v5339_v57 }
 0x3ad   :  { %v667_v41 = vpop.f32.mrb[6].mxu1 }
 0x3ae   :  { %v668_v48 = vadd.f32 %v667_v41, %v6802_v54  ;;  %v5663_v36 = vpop.f32.mrb[7].mxu1 }
 0x3b0   :  { %705 = vrot.lane.b32.xlu1 %v668_v48, %s6613_s0  ;;  %v697_v61 = vadd.f32 %v668_v48, %v6876_v4 }
 0x3b2   :  { %v5340_v2 = vmul.f32 -1.442695, %v697_v61 }
 0x3b4   :  { %6331 = vpow2.f32 %v5340_v2 }
 0x3b6   :  { %v6330_v7 = vpop.eup %6329 }
 0x3b7   :  { %v675_v12 = vadd.f32 1.0, %v6330_v7 }
 0x3b9   :  { %6333 = vrcp.f32 %v675_v12 }
 0x3be   :  { %v6332_v17 = vpop.eup %6331 }
 0x3bf   :  { %v701_v20 = vadd.f32 1.0, %v6332_v17 }
 0x3c1   :  { %6335 = vrcp.f32 %v701_v20 }
 0x3c3   :  { %v6334_v24 = vpop.eup %6333 }
 0x3c4   :  { %v689_v36 = vsub.f32 1.0, %v6334_v24  ;;  %v695_v57 = vmul.f32 %v6334_v24, %v6889_v26 }
 0x3cb   :  { %v6336_v22 = vpop.eup %6335 }
 0x41a   :  { %v680_v15 = vpop.permute.xlu0 %679 }
 0x41b   :  { %v682_v28 = vmul.f32 %v6334_v24, %v680_v15 }
 0x41d   :  { %684 = vrot.lane.b32.xlu0 %v682_v28, %s6613_s0 }
 0x422   :  { %v706_v30 = vpop.permute.xlu1 %705 }
 0x423   :  { %v708_v39 = vmul.f32 %v6336_v22, %v706_v30 }
 0x425   :  { %710 = vrot.lane.b32.xlu1 %v708_v39, %s6613_s0 }
 0x48f   :  { %v685_v45 = vpop.permute.xlu0 %684 }
 0x490   :  { %v687_v49 = vadd.f32 %v685_v45, %v6786_v44  ;;  %v715_v44 = vsub.f32 1.0, %v6336_v22 }
 0x492   :  { %6337 = vtanh.f32 %v687_v49 }
 0x497   :  { %v711_v52 = vpop.permute.xlu1 %710 }
 0x498   :  { %v713_v38 = vadd.f32 %v711_v52, %v6876_v4  ;;  %v721_v4 = vmul.f32 %v6336_v22, %v6893_v32 }
 0x49a   :  { %6339 = vtanh.f32 %v713_v38 }
 0x49c   :  { %v6338_v41 = vpop.eup %6337 }
 0x49d   :  { %691 = vrot.lane.b32.xlu0 %v6338_v41, %s6614_s29 }
 0x4a4   :  { %v6340_v48 = vpop.eup %6339 }
 0x4a5   :  { %717 = vrot.lane.b32.xlu1 %v6340_v48, %s6614_s29 }
 0x50f   :  { %v692_v60 = vpop.permute.xlu0 %691 }
 0x510   :  { %v694_v61 = vmul.f32 %v692_v60, %v689_v36 }
 0x512   :  { %v6927_v2 = vadd.f32 %v695_v57, %v694_v61 }
 0x514   :  { %724 = vrot.lane.b32.xlu0 %v6927_v2, %s6614_s29 }
 0x517   :  { %v718_v7 = vpop.permute.xlu1 %717 }
 0x518   :  { %v720_v12 = vmul.f32 %v718_v7, %v715_v44 }
 0x51a   :  { %v6932_v17 = vadd.f32 %v721_v4, %v720_v12 }
 0x51c   :  { %804 = vrot.lane.b32.xlu1 %v6932_v17, %s6614_s29  ;;  %728 = vst.msk [vmem:[#allocation3 + $0x70] sm:$0xff] %vm520_vm3, %v6932_v17 }
 0x586   :  { %v725_v26 = vpop.permute.xlu0 %724 }
 0x587   :  { %727 = vst.msk [vmem:[#allocation3 + $0x8] sm:$0xff] %vm319_vm4, %v725_v26  ;;  %5673 = vmatmul.mubr.msk.f32.vlgmr.msra.gmra.mrb[8].mxu1 %vm319_vm4, %v725_v26 }
 0x588   :  { %6063 = vmatpush3.bf16.msra.mxu1 %v6670_v14  ;;  %5683 = vmatprep.mubr.msk.f32.mxu1 %vm6612_vm0, %v6611_v1 }
 0x589   :  { %6064 = vmatprep.subr.bf16.mxu1 %v6610_v0 }
 0x58c   :  { %6066 = vmatpush3.bf16.msra.mxu1 %v6682_v18 }
 0x58d   :  { %6067 = vmatprep.subr.bf16.mxu1 %v6610_v0 }
 0x58e   :  { %v805_v32 = vpop.permute.xlu1 %804 }
 0x58f   :  { %5684 = vmatmul.mubr.msk.f32.vlgmr.msra.gmra.mrb[10].mxu1 %vm319_vm4, %v805_v32 }
 0x590   :  { %6069 = vmatpush3.bf16.msra.mxu1 %v6653_v5  ;;  %5694 = vmatprep.mubr.msk.f32.mxu1 %vm6612_vm0, %v6611_v1 }
 0x591   :  { %6070 = vmatprep.subr.bf16.mxu1 %v6610_v0 }
 0x594   :  { %6072 = vmatpush3.bf16.msra.mxu1 %v6659_v10 }
 0x595   :  { %6073 = vmatprep.subr.bf16.mxu1 %v6610_v0 }
 0x65a   :  { %v799_v20 = vpop.f32.mrb[8].mxu1 }
 0x65b   :  { %v800_v24 = vadd.f32 %v799_v20, %v6783_v42  ;;  %v5674_v15 = vpop.f32.mrb[9].mxu1 }
 0x65d   :  { %886 = vrot.lane.b32.xlu0 %v800_v24, %s6613_s0  ;;  %v878_v39 = vadd.f32 %v800_v24, %v6797_v51 }
 0x65f   :  { %v5343_v45 = vmul.f32 -1.442695, %v878_v39 }
 0x661   :  { %6341 = vpow2.f32 %v5343_v45 }
 0x662   :  { %v874_v28 = vpop.f32.mrb[10].mxu1 }
 0x663   :  { %v875_v22 = vadd.f32 %v874_v28, %v6802_v54  ;;  %v5685_v30 = vpop.f32.mrb[11].mxu1 }
 0x665   :  { %912 = vrot.lane.b32.xlu1 %v875_v22, %s6613_s0  ;;  %v904_v49 = vadd.f32 %v875_v22, %v6870_v58 }
 0x667   :  { %v5344_v52 = vmul.f32 -1.442695, %v904_v49 }
 0x669   :  { %6343 = vpow2.f32 %v5344_v52 }
 0x66b   :  { %v6342_v38 = vpop.eup %6341 }
 0x66c   :  { %v882_v41 = vadd.f32 1.0, %v6342_v38 }
 0x66e   :  { %6345 = vrcp.f32 %v882_v41 }
 0x673   :  { %v6344_v48 = vpop.eup %6343 }
 0x674   :  { %v908_v36 = vadd.f32 1.0, %v6344_v48 }
 0x676   :  { %6347 = vrcp.f32 %v908_v36 }
 0x678   :  { %v6346_v60 = vpop.eup %6345 }
 0x679   :  { %v896_v28 = vsub.f32 1.0, %v6346_v60  ;;  %v902_v30 = vmul.f32 %v6346_v60, %v6927_v2 }
 0x680   :  { %v6348_v44 = vpop.eup %6347 }
 0x6cf   :  { %v887_v57 = vpop.permute.xlu0 %886 }
 0x6d0   :  { %v889_v61 = vmul.f32 %v6346_v60, %v887_v57 }
 0x6d2   :  { %891 = vrot.lane.b32.xlu0 %v889_v61, %s6613_s0 }
 0x6d7   :  { %v913_v7 = vpop.permute.xlu1 %912 }
 0x6d8   :  { %v915_v4 = vmul.f32 %v6348_v44, %v913_v7 }
 0x6da   :  { %917 = vrot.lane.b32.xlu1 %v915_v4, %s6613_s0 }
 0x744   :  { %v892_v12 = vpop.permute.xlu0 %891 }
 0x745   :  { %v894_v26 = vadd.f32 %v892_v12, %v6797_v51  ;;  %v922_v51 = vsub.f32 1.0, %v6348_v44 }
 0x747   :  { %6349 = vtanh.f32 %v894_v26 }
 0x74c   :  { %v918_v32 = vpop.permute.xlu1 %917 }
 0x74d   :  { %v920_v20 = vadd.f32 %v918_v32, %v6870_v58  ;;  %v928_v58 = vmul.f32 %v6348_v44, %v6932_v17 }
 0x74f   :  { %6351 = vtanh.f32 %v920_v20 }
 0x751   :  { %v6350_v24 = vpop.eup %6349 }
 0x752   :  { %898 = vrot.lane.b32.xlu0 %v6350_v24, %s6614_s29 }
 0x759   :  { %v6352_v15 = vpop.eup %6351 }
 0x75a   :  { %924 = vrot.lane.b32.xlu1 %v6352_v15, %s6614_s29 }
 0x7c4   :  { %v899_v22 = vpop.permute.xlu0 %898 }
 0x7c5   :  { %v901_v39 = vmul.f32 %v899_v22, %v896_v28 }
 0x7c7   :  { %v6966_v45 = vadd.f32 %v902_v30, %v901_v39 }
 0x7c9   :  { %931 = vrot.lane.b32.xlu0 %v6966_v45, %s6614_s29 }
 0x7cc   :  { %v925_v49 = vpop.permute.xlu1 %924 }
 0x7cd   :  { %v927_v52 = vmul.f32 %v925_v49, %v922_v51 }
 0x7cf   :  { %v6971_v38 = vadd.f32 %v928_v58, %v927_v52 }
 0x7d1   :  { %1011 = vrot.lane.b32.xlu1 %v6971_v38, %s6614_s29  ;;  %935 = vst.msk [vmem:[#allocation3 + $0x68] sm:$0xff] %vm520_vm3, %v6971_v38 }
 0x83b   :  { %v932_v2 = vpop.permute.xlu0 %931 }
 0x83c   :  { %934 = vst.msk [vmem:[#allocation3 + $0x10] sm:$0xff] %vm319_vm4, %v932_v2  ;;  %5695 = vmatmul.mubr.msk.f32.vlgmr.msra.gmra.mrb[12].mxu1 %vm319_vm4, %v932_v2 }
 0x83d   :  { %6075 = vmatpush3.bf16.msra.mxu1 %v6670_v14  ;;  %5705 = vmatprep.mubr.msk.f32.mxu1 %vm6612_vm0, %v6611_v1 }
 0x83e   :  { %6076 = vmatprep.subr.bf16.mxu1 %v6610_v0 }
 0x841   :  { %6078 = vmatpush3.bf16.msra.mxu1 %v6682_v18 }
 0x842   :  { %6085 = vmatprep.subr.bf16.mxu1 %v6610_v0 }
 0x843   :  { %v1012_v17 = vpop.permute.xlu1 %1011 }
 0x844   :  { %5706 = vmatmul.mubr.msk.f32.vlgmr.msra.gmra.mrb[14].mxu1 %vm319_vm4, %v1012_v17 }
 0x845   :  { %6087 = vmatpush3.bf16.msra.mxu1 %v6670_v14  ;;  %5727 = vmatprep.mubr.msk.f32.mxu1 %vm6612_vm0, %v6611_v1 }
 0x846   :  { %6088 = vmatprep.subr.bf16.mxu1 %v6610_v0 }
 0x849   :  { %6090 = vmatpush3.bf16.msra.mxu1 %v6682_v18 }
 0x84a   :  { %6097 = vmatprep.subr.bf16.mxu1 %v6610_v0 }
 0x90f   :  { %v1006_v41 = vpop.f32.mrb[12].mxu1 }
 0x910   :  { %v1007_v48 = vadd.f32 %v1006_v41, %v6783_v42  ;;  %v5696_v36 = vpop.f32.mrb[13].mxu1 }
 0x912   :  { %1093 = vrot.lane.b32.xlu0 %v1007_v48, %s6613_s0  ;;  %v1085_v44 = vadd.f32 %v1007_v48, %v6805_v56 }
 0x914   :  { %v5347_v7 = vmul.f32 -1.442695, %v1085_v44 }
 0x916   :  { %6353 = vpow2.f32 %v5347_v7 }
 0x917   :  { %v1081_v60 = vpop.f32.mrb[14].mxu1 }
 0x918   :  { %v1082_v57 = vadd.f32 %v1081_v60, %v6802_v54  ;;  %v5707_v61 = vpop.f32.mrb[15].mxu1 }
 0x91a   :  { %1119 = vrot.lane.b32.xlu1 %v1082_v57, %s6613_s0  ;;  %v1111_v4 = vadd.f32 %v1082_v57, %v6864_v50 }
 0x91c   :  { %v5348_v12 = vmul.f32 -1.442695, %v1111_v4 }
 0x91e   :  { %6355 = vpow2.f32 %v5348_v12 }
 0x920   :  { %v6354_v26 = vpop.eup %6353 }
 0x921   :  { %v1089_v32 = vadd.f32 1.0, %v6354_v26 }
 0x923   :  { %6357 = vrcp.f32 %v1089_v32 }
 0x928   :  { %v6356_v20 = vpop.eup %6355 }
 0x929   :  { %v1115_v24 = vadd.f32 1.0, %v6356_v20 }
 0x92b   :  { %6359 = vrcp.f32 %v1115_v24 }
 0x92d   :  { %v6358_v15 = vpop.eup %6357 }
 0x92e   :  { %v1103_v48 = vsub.f32 1.0, %v6358_v15  ;;  %v1109_v60 = vmul.f32 %v6358_v15, %v6966_v45 }
 0x935   :  { %v6360_v30 = vpop.eup %6359 }
 0x984   :  { %v1094_v28 = vpop.permute.xlu0 %1093 }
 0x985   :  { %v1096_v22 = vmul.f32 %v6358_v15, %v1094_v28 }
 0x987   :  { %1098 = vrot.lane.b32.xlu0 %v1096_v22, %s6613_s0 }
 0x98c   :  { %v1120_v39 = vpop.permute.xlu1 %1119 }
 0x98d   :  { %v1122_v51 = vmul.f32 %v6360_v30, %v1120_v39 }
 0x98f   :  { %1124 = vrot.lane.b32.xlu1 %v1122_v51, %s6613_s0 }
 0x9f9   :  { %v1099_v49 = vpop.permute.xlu0 %1098 }
 0x9fa   :  { %v1101_v58 = vadd.f32 %v1099_v49, %v6805_v56  ;;  %v1129_v56 = vsub.f32 1.0, %v6360_v30 }
 0x9fc   :  { %6361 = vtanh.f32 %v1101_v58 }
 0xa01   :  { %v1125_v52 = vpop.permute.xlu1 %1124 }
 0xa02   :  { %v1127_v2 = vadd.f32 %v1125_v52, %v6864_v50  ;;  %v1135_v50 = vmul.f32 %v6360_v30, %v6971_v38 }
 0xa04   :  { %6363 = vtanh.f32 %v1127_v2 }
 0xa06   :  { %v6362_v17 = vpop.eup %6361 }
 0xa07   :  { %1105 = vrot.lane.b32.xlu0 %v6362_v17, %s6614_s29 }
 0xa0e   :  { %v6364_v41 = vpop.eup %6363 }
 0xa0f   :  { %1131 = vrot.lane.b32.xlu1 %v6364_v41, %s6614_s29 }
 0xa79   :  { %v1106_v36 = vpop.permute.xlu0 %1105 }
 0xa7a   :  { %v1108_v57 = vmul.f32 %v1106_v36, %v1103_v48 }
 0xa7c   :  { %v7005_v61 = vadd.f32 %v1109_v60, %v1108_v57 }
 0xa7e   :  { %1138 = vrot.lane.b32.xlu0 %v7005_v61, %s6614_s29 }
 0xa81   :  { %v1132_v44 = vpop.permute.xlu1 %1131 }
 0xa82   :  { %v1134_v7 = vmul.f32 %v1132_v44, %v1129_v56 }
 0xa84   :  { %v7010_v4 = vadd.f32 %v1135_v50, %v1134_v7 }
 0xa86   :  { %1218 = vrot.lane.b32.xlu1 %v7010_v4, %s6614_s29  ;;  %1142 = vst.msk [vmem:[#allocation3 + $0x60] sm:$0xff] %vm520_vm3, %v7010_v4 }
 0xaf0   :  { %v1139_v45 = vpop.permute.xlu0 %1138 }
 0xaf1   :  { %1141 = vst.msk [vmem:[#allocation3 + $0x18] sm:$0xff] %vm319_vm4, %v1139_v45  ;;  %5717 = vmatmul.mubr.msk.f32.vlgmr.msra.gmra.mrb[32].mxu0 %vm319_vm4, %v1139_v45 }
 0xaf2   :  { %6093 = vmatpush3.bf16.msra.mxu0 %v6653_v5  ;;  %5738 = vmatprep.mubr.msk.f32.mxu0 %vm6612_vm0, %v6611_v1 }
 0xaf3   :  { %6094 = vmatprep.subr.bf16.mxu0 %v6610_v0 }
 0xaf6   :  { %6096 = vmatpush3.bf16.msra.mxu0 %v6659_v10 }
 0xaf7   :  { %6103 = vmatprep.subr.bf16.mxu0 %v6610_v0 }
 0xaf8   :  { %v1219_v38 = vpop.permute.xlu1 %1218 }
 0xaf9   :  { %5728 = vmatmul.mubr.msk.f32.vlgmr.msra.gmra.mrb[16].mxu1 %vm319_vm4, %v1219_v38 }
 0xafa   :  { %6099 = vmatpush3.bf16.msra.mxu1 %v6670_v14  ;;  %5749 = vmatprep.mubr.msk.f32.mxu1 %vm6612_vm0, %v6611_v1 }
 0xafb   :  { %6100 = vmatprep.subr.bf16.mxu1 %v6610_v0 }
 0xafe   :  { %6102 = vmatpush3.bf16.msra.mxu1 %v6682_v18 }
 0xaff   :  { %6109 = vmatprep.subr.bf16.mxu1 %v6610_v0 }
 0xbc4   :  { %v1213_v12 = vpop.f32.mrb[32].mxu0 }
 0xbc5   :  { %v1214_v26 = vadd.f32 %v1213_v12, %v6783_v42  ;;  %v5718_v32 = vpop.f32.mrb[33].mxu0 }
 0xbc7   :  { %1300 = vrot.lane.b32.xlu0 %v1214_v26, %s6613_s0  ;;  %v1292_v28 = vadd.f32 %v1214_v26, %v6813_v63 }
 0xbc9   :  { %v5351_v22 = vmul.f32 -1.442695, %v1292_v28 }
 0xbcb   :  { %6365 = vpow2.f32 %v5351_v22 }
 0xbcc   :  { %v1288_v20 = vpop.f32.mrb[16].mxu1 }
 0xbcd   :  { %v1289_v24 = vadd.f32 %v1288_v20, %v6802_v54  ;;  %v5729_v15 = vpop.f32.mrb[17].mxu1 }
 0xbcf   :  { %1326 = vrot.lane.b32.xlu1 %v1289_v24, %s6613_s0  ;;  %v1318_v30 = vadd.f32 %v1289_v24, %v6858_v43 }
 0xbd1   :  { %v5352_v39 = vmul.f32 -1.442695, %v1318_v30 }
 0xbd3   :  { %6367 = vpow2.f32 %v5352_v39 }
 0xbd5   :  { %v6366_v51 = vpop.eup %6365 }
 0xbd6   :  { %v1296_v49 = vadd.f32 1.0, %v6366_v51 }
 0xbd8   :  { %6369 = vrcp.f32 %v1296_v49 }
 0xbdd   :  { %v6368_v58 = vpop.eup %6367 }
 0xbde   :  { %v1322_v52 = vadd.f32 1.0, %v6368_v58 }
 0xbe0   :  { %6371 = vrcp.f32 %v1322_v52 }
 0xbe2   :  { %v6370_v2 = vpop.eup %6369 }
 0xbe3   :  { %v1310_v38 = vsub.f32 1.0, %v6370_v2  ;;  %v1316_v26 = vmul.f32 %v6370_v2, %v7005_v61 }
 0xbea   :  { %v6372_v48 = vpop.eup %6371 }
 0xc39   :  { %v1301_v17 = vpop.permute.xlu0 %1300 }
 0xc3a   :  { %v1303_v41 = vmul.f32 %v6370_v2, %v1301_v17 }
 0xc3c   :  { %1305 = vrot.lane.b32.xlu0 %v1303_v41, %s6613_s0 }
 0xc41   :  { %v1327_v36 = vpop.permute.xlu1 %1326 }
 0xc42   :  { %v1329_v60 = vmul.f32 %v6372_v48, %v1327_v36 }
 0xc44   :  { %1331 = vrot.lane.b32.xlu1 %v1329_v60, %s6613_s0 }
 0xcae   :  { %v1306_v57 = vpop.permute.xlu0 %1305 }
 0xcaf   :  { %v1308_v56 = vadd.f32 %v1306_v57, %v6813_v63  ;;  %v1336_v63 = vsub.f32 1.0, %v6372_v48 }
 0xcb1   :  { %6373 = vtanh.f32 %v1308_v56 }
 0xcb6   :  { %v1332_v44 = vpop.permute.xlu1 %1331 }
 0xcb7   :  { %v1334_v50 = vadd.f32 %v1332_v44, %v6858_v43  ;;  %v1342_v43 = vmul.f32 %v6372_v48, %v7010_v4 }
 0xcb9   :  { %6375 = vtanh.f32 %v1334_v50 }
 0xcbb   :  { %v6374_v7 = vpop.eup %6373 }
 0xcbc   :  { %1312 = vrot.lane.b32.xlu0 %v6374_v7, %s6614_s29 }
 0xcc3   :  { %v6376_v45 = vpop.eup %6375 }
 0xcc4   :  { %1338 = vrot.lane.b32.xlu1 %v6376_v45, %s6614_s29 }
 0xd2e   :  { %v1313_v12 = vpop.permute.xlu0 %1312 }
 0xd2f   :  { %v1315_v32 = vmul.f32 %v1313_v12, %v1310_v38 }
 0xd31   :  { %v7044_v20 = vadd.f32 %v1316_v26, %v1315_v32 }
 0xd33   :  { %1345 = vrot.lane.b32.xlu0 %v7044_v20, %s6614_s29 }
 0xd36   :  { %v1339_v24 = vpop.permute.xlu1 %1338 }
 0xd37   :  { %v1341_v15 = vmul.f32 %v1339_v24, %v1336_v63 }
 0xd39   :  { %v7049_v28 = vadd.f32 %v1342_v43, %v1341_v15 }
 0xd3b   :  { %1425 = vrot.lane.b32.xlu1 %v7049_v28, %s6614_s29  ;;  %1349 = vst.msk [vmem:[#allocation3 + $0x58] sm:$0xff] %vm520_vm3, %v7049_v28 }
 0xda5   :  { %v1346_v61 = vpop.permute.xlu0 %1345 }
 0xda6   :  { %1348 = vst.msk [vmem:[#allocation3 + $0x20] sm:$0xff] %vm319_vm4, %v1346_v61  ;;  %5739 = vmatmul.mubr.msk.f32.vlgmr.msra.gmra.mrb[34].mxu0 %vm319_vm4, %v1346_v61 }
 0xda7   :  { %6105 = vmatpush3.bf16.msra.mxu0 %v6653_v5  ;;  %5760 = vmatprep.mubr.msk.f32.mxu0 %vm6612_vm0, %v6611_v1 }
 0xda8   :  { %6106 = vmatprep.subr.bf16.mxu0 %v6610_v0 }
 0xdab   :  { %6108 = vmatpush3.bf16.msra.mxu0 %v6659_v10 }
 0xdac   :  { %6115 = vmatprep.subr.bf16.mxu0 %v6610_v0 }
 0xdad   :  { %v1426_v4 = vpop.permute.xlu1 %1425 }
 0xdae   :  { %5750 = vmatmul.mubr.msk.f32.vlgmr.msra.gmra.mrb[18].mxu1 %vm319_vm4, %v1426_v4 }
 0xdaf   :  { %6111 = vmatpush3.bf16.msra.mxu1 %v6670_v14  ;;  %5771 = vmatprep.mubr.msk.f32.mxu1 %vm6612_vm0, %v6611_v1 }
 0xdb0   :  { %6112 = vmatprep.subr.bf16.mxu1 %v6610_v0 }
 0xdb3   :  { %6114 = vmatpush3.bf16.msra.mxu1 %v6682_v18 }
 0xdb4   :  { %6121 = vmatprep.subr.bf16.mxu1 %v6610_v0 }
 0xe79   :  { %v1420_v22 = vpop.f32.mrb[34].mxu0 }
 0xe7a   :  { %v1421_v30 = vadd.f32 %v1420_v22, %v6783_v42  ;;  %v5740_v39 = vpop.f32.mrb[35].mxu0 }
 0xe7c   :  { %1507 = vrot.lane.b32.xlu0 %v1421_v30, %s6613_s0  ;;  %v1499_v52 = vadd.f32 %v1421_v30, %v6819_v6 }
 0xe7e   :  { %v5355_v2 = vmul.f32 -1.442695, %v1499_v52 }
 0xe80   :  { %6377 = vpow2.f32 %v5355_v2 }
 0xe81   :  { %v1495_v51 = vpop.f32.mrb[18].mxu1 }
 0xe82   :  { %v1496_v49 = vadd.f32 %v1495_v51, %v6802_v54  ;;  %v5751_v58 = vpop.f32.mrb[19].mxu1 }
 0xe84   :  { %1533 = vrot.lane.b32.xlu1 %v1496_v49, %s6613_s0  ;;  %v1525_v17 = vadd.f32 %v1496_v49, %v6852_v31 }
 0xe86   :  { %v5356_v41 = vmul.f32 -1.442695, %v1525_v17 }
 0xe88   :  { %6379 = vpow2.f32 %v5356_v41 }
 0xe8a   :  { %v6378_v48 = vpop.eup %6377 }
 0xe8b   :  { %v1503_v36 = vadd.f32 1.0, %v6378_v48 }
 0xe8d   :  { %6381 = vrcp.f32 %v1503_v36 }
 0xe92   :  { %v6380_v60 = vpop.eup %6379 }
 0xe93   :  { %v1529_v57 = vadd.f32 1.0, %v6380_v60 }
 0xe95   :  { %6383 = vrcp.f32 %v1529_v57 }
 0xe97   :  { %v6382_v56 = vpop.eup %6381 }
 0xe98   :  { %v1517_v15 = vsub.f32 1.0, %v6382_v56  ;;  %v1523_v4 = vmul.f32 %v6382_v56, %v7044_v20 }
 0xe9f   :  { %v6384_v7 = vpop.eup %6383 }
 0xeee   :  { %v1508_v44 = vpop.permute.xlu0 %1507 }
 0xeef   :  { %v1510_v50 = vmul.f32 %v6382_v56, %v1508_v44 }
 0xef1   :  { %1512 = vrot.lane.b32.xlu0 %v1510_v50, %s6613_s0 }
 0xef6   :  { %v1534_v45 = vpop.permute.xlu1 %1533 }
 0xef7   :  { %v1536_v38 = vmul.f32 %v6384_v7, %v1534_v45 }
 0xef9   :  { %1538 = vrot.lane.b32.xlu1 %v1536_v38, %s6613_s0 }
 0xf63   :  { %v1513_v12 = vpop.permute.xlu0 %1512 }
 0xf64   :  { %v1515_v26 = vadd.f32 %v1513_v12, %v6819_v6  ;;  %v1543_v6 = vsub.f32 1.0, %v6384_v7 }
 0xf66   :  { %6385 = vtanh.f32 %v1515_v26 }
 0xf6b   :  { %v1539_v32 = vpop.permute.xlu1 %1538 }
 0xf6c   :  { %v1541_v63 = vadd.f32 %v1539_v32, %v6852_v31  ;;  %v1549_v31 = vmul.f32 %v6384_v7, %v7049_v28 }
 0xf6e   :  { %6387 = vtanh.f32 %v1541_v63 }
 0xf70   :  { %v6386_v24 = vpop.eup %6385 }
 0xf71   :  { %1519 = vrot.lane.b32.xlu0 %v6386_v24, %s6614_s29 }
 0xf78   :  { %v6388_v43 = vpop.eup %6387 }
 0xf79   :  { %1545 = vrot.lane.b32.xlu1 %v6388_v43, %s6614_s29 }
 0xfe3   :  { %v1520_v61 = vpop.permute.xlu0 %1519 }
 0xfe4   :  { %v1522_v22 = vmul.f32 %v1520_v61, %v1517_v15 }
 0xfe6   :  { %v7083_v30 = vadd.f32 %v1523_v4, %v1522_v22 }
 0xfe8   :  { %1552 = vrot.lane.b32.xlu0 %v7083_v30, %s6614_s29 }
 0xfeb   :  { %v1546_v39 = vpop.permute.xlu1 %1545 }
 0xfec   :  { %v1548_v51 = vmul.f32 %v1546_v39, %v1543_v6 }
 0xfee   :  { %v7088_v49 = vadd.f32 %v1549_v31, %v1548_v51 }
 0xff0   :  { %1632 = vrot.lane.b32.xlu1 %v7088_v49, %s6614_s29  ;;  %1556 = vst.msk [vmem:[#allocation3 + $0x50] sm:$0xff] %vm520_vm3, %v7088_v49 }
0x105a   :  { %v1553_v20 = vpop.permute.xlu0 %1552 }
0x105b   :  { %1555 = vst.msk [vmem:[#allocation3 + $0x28] sm:$0xff] %vm319_vm4, %v1553_v20  ;;  %5761 = vmatmul.mubr.msk.f32.vlgmr.msra.gmra.mrb[36].mxu0 %vm319_vm4, %v1553_v20 }
0x105c   :  { %6117 = vmatpush3.bf16.msra.mxu0 %v6653_v5  ;;  %5782 = vmatprep.mubr.msk.f32.mxu0 %vm6612_vm0, %v6611_v1 }
0x105d   :  { %6118 = vmatprep.subr.bf16.mxu0 %v6610_v0 }
0x1060   :  { %6120 = vmatpush3.bf16.msra.mxu0 %v6659_v10 }
0x1061   :  { %6127 = vmatprep.subr.bf16.mxu0 %v6610_v0 }
0x1062   :  { %v1633_v28 = vpop.permute.xlu1 %1632 }
0x1063   :  { %5772 = vmatmul.mubr.msk.f32.vlgmr.msra.gmra.mrb[20].mxu1 %vm319_vm4, %v1633_v28 }
0x1064   :  { %6123 = vmatpush3.bf16.msra.mxu1 %v6670_v14  ;;  %5793 = vmatprep.mubr.msk.f32.mxu1 %vm6612_vm0, %v6611_v1 }
0x1065   :  { %6124 = vmatprep.subr.bf16.mxu1 %v6610_v0 }
0x1068   :  { %6126 = vmatpush3.bf16.msra.mxu1 %v6682_v18 }
0x1069   :  { %6133 = vmatprep.subr.bf16.mxu1 %v6610_v0 }
0x112e   :  { %v1627_v58 = vpop.f32.mrb[36].mxu0 }
0x112f   :  { %v1628_v52 = vadd.f32 %v1627_v58, %v6783_v42  ;;  %v5762_v2 = vpop.f32.mrb[37].mxu0 }
0x1130   :  { %v7148_v2 = vld [vmem:[#allocation4 + $0x1d1] ss:$0 sm:$0xff] }
0x1131   :  { %1714 = vrot.lane.b32.xlu0 %v1628_v52, %s6613_s0  ;;  %v1706_v36 = vadd.f32 %v1628_v52, %v6825_v11 }
0x1133   :  { %v5359_v60 = vmul.f32 -1.442695, %v1706_v36  ;;  %v7152_v36 = vld [vmem:[#allocation4 + $0x1d2] ss:$0 sm:$0xff] }
0x1135   :  { %6389 = vpow2.f32 %v5359_v60 }
0x1136   :  { %v1702_v17 = vpop.f32.mrb[20].mxu1 }
0x1137   :  { %v1703_v41 = vadd.f32 %v1702_v17, %v6802_v54  ;;  %v5773_v48 = vpop.f32.mrb[21].mxu1 }
0x1139   :  { %1740 = vrot.lane.b32.xlu1 %v1703_v41, %s6613_s0  ;;  %v1732_v57 = vadd.f32 %v1703_v41, %v6846_v27 }
0x113b   :  { %v5360_v56 = vmul.f32 -1.442695, %v1732_v57 }
0x113d   :  { %6391 = vpow2.f32 %v5360_v56 }
0x113f   :  { %v6390_v44 = vpop.eup %6389 }
0x1140   :  { %v1710_v50 = vadd.f32 1.0, %v6390_v44 }
0x1142   :  { %6393 = vrcp.f32 %v1710_v50 }
0x1147   :  { %v6392_v42 = vpop.eup %6391 }
0x1148   :  { %v1736_v7 = vadd.f32 1.0, %v6392_v42 }
0x114a   :  { %6395 = vrcp.f32 %v1736_v7 }
0x114c   :  { %v6394_v45 = vpop.eup %6393 }
0x114d   :  { %v1724_v22 = vsub.f32 1.0, %v6394_v45  ;;  %v1730_v39 = vmul.f32 %v6394_v45, %v7083_v30 }
0x1154   :  { %v6396_v12 = vpop.eup %6395 }
0x11a3   :  { %v1715_v38 = vpop.permute.xlu0 %1714 }
0x11a4   :  { %v1717_v54 = vmul.f32 %v6394_v45, %v1715_v38 }
0x11a6   :  { %1719 = vrot.lane.b32.xlu0 %v1717_v54, %s6613_s0 }
0x11ab   :  { %v1741_v26 = vpop.permute.xlu1 %1740 }
0x11ac   :  { %v1743_v32 = vmul.f32 %v6396_v12, %v1741_v26 }
0x11ae   :  { %1745 = vrot.lane.b32.xlu1 %v1743_v32, %s6613_s0 }
0x1218   :  { %v1720_v63 = vpop.permute.xlu0 %1719 }
0x1219   :  { %v1722_v24 = vadd.f32 %v1720_v63, %v6825_v11  ;;  %v1750_v11 = vsub.f32 1.0, %v6396_v12 }
0x121b   :  { %6397 = vtanh.f32 %v1722_v24 }
0x1220   :  { %v1746_v43 = vpop.permute.xlu1 %1745 }
0x1221   :  { %v1748_v15 = vadd.f32 %v1746_v43, %v6846_v27  ;;  %v1756_v27 = vmul.f32 %v6396_v12, %v7088_v49 }
0x1223   :  { %6399 = vtanh.f32 %v1748_v15 }
0x1225   :  { %v6398_v61 = vpop.eup %6397 }
0x1226   :  { %1726 = vrot.lane.b32.xlu0 %v6398_v61, %s6614_s29 }
0x122d   :  { %v6400_v4 = vpop.eup %6399 }
0x122e   :  { %1752 = vrot.lane.b32.xlu1 %v6400_v4, %s6614_s29 }
0x1298   :  { %v1727_v6 = vpop.permute.xlu0 %1726 }
0x1299   :  { %v1729_v31 = vmul.f32 %v1727_v6, %v1724_v22 }
0x129b   :  { %v7122_v51 = vadd.f32 %v1730_v39, %v1729_v31 }
0x129d   :  { %1759 = vrot.lane.b32.xlu0 %v7122_v51, %s6614_s29 }
0x12a0   :  { %v1753_v20 = vpop.permute.xlu1 %1752 }
0x12a1   :  { %v1755_v28 = vmul.f32 %v1753_v20, %v1750_v11 }
0x12a3   :  { %v7127_v58 = vadd.f32 %v1756_v27, %v1755_v28 }
0x12a5   :  { %1839 = vrot.lane.b32.xlu1 %v7127_v58, %s6614_s29  ;;  %1763 = vst.msk [vmem:[#allocation3 + $0x48] sm:$0xff] %vm520_vm3, %v7127_v58 }
0x130f   :  { %v1760_v30 = vpop.permute.xlu0 %1759 }
0x1310   :  { %1762 = vst.msk [vmem:[#allocation3 + $0x30] sm:$0xff] %vm319_vm4, %v1760_v30  ;;  %5783 = vmatmul.mubr.msk.f32.vlgmr.msra.gmra.mrb[38].mxu0 %vm319_vm4, %v1760_v30 }
0x1311   :  { %6129 = vmatpush3.bf16.msra.mxu0 %v6653_v5  ;;  %5804 = vmatprep.mubr.msk.f32.mxu0 %vm6612_vm0, %v6611_v1 }
0x1312   :  { %6130 = vmatprep.subr.bf16.mxu0 %v6610_v0 }
0x1315   :  { %6132 = vmatpush3.bf16.msra.mxu0 %v6659_v10 }
0x1316   :  { %6139 = vmatprep.subr.bf16.mxu0 %v6610_v0 }
0x1317   :  { %v1840_v49 = vpop.permute.xlu1 %1839 }
0x1318   :  { %5794 = vmatmul.mubr.msk.f32.vlgmr.msra.gmra.mrb[22].mxu1 %vm319_vm4, %v1840_v49 }
0x1319   :  { %6135 = vmatpush3.bf16.msra.mxu1 %v6670_v14  ;;  %5815 = vmatprep.mubr.msk.f32.mxu1 %vm6612_vm0, %v6611_v1 }
0x131a   :  { %6136 = vmatprep.subr.bf16.mxu1 %v6610_v0 }
0x131d   :  { %6138 = vmatpush3.bf16.msra.mxu1 %v6682_v18 }
0x131e   :  { %6145 = vmatprep.subr.bf16.mxu1 %v6610_v0 }
0x13e3   :  { %v1834_v52 = vpop.f32.mrb[38].mxu0 }
0x13e4   :  { %v1835_v17 = vadd.f32 %v7148_v2, %v1834_v52  ;;  %v5784_v41 = vpop.f32.mrb[39].mxu0 }
0x13e6   :  { %1921 = vrot.lane.b32.xlu0 %v1835_v17, %s6613_s0  ;;  %v1913_v56 = vadd.f32 %v1835_v17, %v6831_v16 }
0x13e8   :  { %v5363_v44 = vmul.f32 -1.442695, %v1913_v56 }
0x13ea   :  { %6401 = vpow2.f32 %v5363_v44 }
0x13eb   :  { %v1909_v48 = vpop.f32.mrb[22].mxu1 }
0x13ec   :  { %v1910_v60 = vadd.f32 %v7152_v36, %v1909_v48  ;;  %v5795_v57 = vpop.f32.mrb[23].mxu1 }
0x13ee   :  { %1947 = vrot.lane.b32.xlu1 %v1910_v60, %s6613_s0  ;;  %v1939_v50 = vadd.f32 %v1910_v60, %v6840_v23 }
0x13f0   :  { %v5364_v42 = vmul.f32 -1.442695, %v1939_v50 }
0x13f2   :  { %6403 = vpow2.f32 %v5364_v42 }
0x13f4   :  { %v6402_v7 = vpop.eup %6401 }
0x13f5   :  { %v1917_v45 = vadd.f32 1.0, %v6402_v7 }
0x13f7   :  { %6405 = vrcp.f32 %v1917_v45 }
0x13fc   :  { %v6404_v38 = vpop.eup %6403 }
0x13fd   :  { %v1943_v54 = vadd.f32 1.0, %v6404_v38 }
0x13ff   :  { %6407 = vrcp.f32 %v1943_v54 }
0x1401   :  { %v6406_v12 = vpop.eup %6405 }
0x1402   :  { %v1931_v31 = vsub.f32 1.0, %v6406_v12  ;;  %v1937_v20 = vmul.f32 %v6406_v12, %v7122_v51 }
0x1409   :  { %v6408_v63 = vpop.eup %6407 }
0x1458   :  { %v1922_v26 = vpop.permute.xlu0 %1921 }
0x1459   :  { %v1924_v32 = vmul.f32 %v6406_v12, %v1922_v26 }
0x145b   :  { %1926 = vrot.lane.b32.xlu0 %v1924_v32, %s6613_s0 }
0x1460   :  { %v1948_v24 = vpop.permute.xlu1 %1947 }
0x1461   :  { %v1950_v43 = vmul.f32 %v6408_v63, %v1948_v24 }
0x1463   :  { %1952 = vrot.lane.b32.xlu1 %v1950_v43, %s6613_s0 }
0x14cd   :  { %v1927_v15 = vpop.permute.xlu0 %1926 }
0x14ce   :  { %v1929_v61 = vadd.f32 %v1927_v15, %v6831_v16  ;;  %v1957_v16 = vsub.f32 1.0, %v6408_v63 }
0x14d0   :  { %6409 = vtanh.f32 %v1929_v61 }
0x14d5   :  { %v1953_v4 = vpop.permute.xlu1 %1952 }
0x14d6   :  { %v1955_v22 = vadd.f32 %v1953_v4, %v6840_v23  ;;  %v1963_v23 = vmul.f32 %v6408_v63, %v7127_v58 }
0x14d8   :  { %6411 = vtanh.f32 %v1955_v22 }
0x14da   :  { %v6410_v6 = vpop.eup %6409 }
0x14db   :  { %1933 = vrot.lane.b32.xlu0 %v6410_v6, %s6614_s29 }
0x14e2   :  { %v6412_v39 = vpop.eup %6411 }
0x14e3   :  { %1959 = vrot.lane.b32.xlu1 %v6412_v39, %s6614_s29 }
0x154d   :  { %v1934_v11 = vpop.permute.xlu0 %1933 }
0x154e   :  { %v1936_v27 = vmul.f32 %v1934_v11, %v1931_v31 }
0x1550   :  { %v7165_v28 = vadd.f32 %v1937_v20, %v1936_v27 }
0x1552   :  { %1966 = vrot.lane.b32.xlu0 %v7165_v28, %s6614_s29 }
0x1555   :  { %v1960_v30 = vpop.permute.xlu1 %1959 }
0x1556   :  { %v1962_v49 = vmul.f32 %v1960_v30, %v1957_v16 }
0x1558   :  { %v7170_v52 = vadd.f32 %v1963_v23, %v1962_v49 }
0x155a   :  { %2046 = vrot.lane.b32.xlu1 %v7170_v52, %s6614_s29  ;;  %1970 = vst.msk [vmem:[#allocation3 + $0x40] sm:$0xff] %vm520_vm3, %v7170_v52 }
0x15c4   :  { %v1967_v51 = vpop.permute.xlu0 %1966 }
0x15c5   :  { %1969 = vst.msk [vmem:[#allocation3 + $0x38] sm:$0xff] %vm319_vm4, %v1967_v51  ;;  %5805 = vmatmul.mubr.msk.f32.vlgmr.msra.gmra.mrb[40].mxu0 %vm319_vm4, %v1967_v51 }
0x15c6   :  { %6141 = vmatpush3.bf16.msra.mxu0 %v6653_v5  ;;  %5826 = vmatprep.mubr.msk.f32.mxu0 %vm6612_vm0, %v6611_v1 }
0x15c7   :  { %6142 = vmatprep.subr.bf16.mxu0 %v6610_v0 }
0x15ca   :  { %6144 = vmatpush3.bf16.msra.mxu0 %v6659_v10 }
0x15cb   :  { %6151 = vmatprep.subr.bf16.mxu0 %v6610_v0 }
0x15cc   :  { %v2047_v58 = vpop.permute.xlu1 %2046 }
0x15cd   :  { %5816 = vmatmul.mubr.msk.f32.vlgmr.msra.gmra.mrb[24].mxu1 %vm319_vm4, %v2047_v58 }
0x15ce   :  { %6147 = vmatpush3.bf16.msra.mxu1 %v6670_v14  ;;  %5837 = vmatprep.mubr.msk.f32.mxu1 %vm6612_vm0, %v6611_v1 }
0x15cf   :  { %6148 = vmatprep.subr.bf16.mxu1 %v6610_v0 }
0x15d2   :  { %6150 = vmatpush3.bf16.msra.mxu1 %v6682_v18 }
0x15d3   :  { %6157 = vmatprep.subr.bf16.mxu1 %v6610_v0 }
0x1698   :  { %v2041_v17 = vpop.f32.mrb[40].mxu0 }
0x1699   :  { %v2042_v41 = vadd.f32 %v7148_v2, %v2041_v17  ;;  %v5806_v48 = vpop.f32.mrb[41].mxu0 }
0x169b   :  { %2128 = vrot.lane.b32.xlu0 %v2042_v41, %s6613_s0  ;;  %v2120_v44 = vadd.f32 %v2042_v41, %v6837_v21 }
0x169d   :  { %v5367_v50 = vmul.f32 -1.442695, %v2120_v44 }
0x169f   :  { %6413 = vpow2.f32 %v5367_v50 }
0x16a0   :  { %v2116_v60 = vpop.f32.mrb[24].mxu1 }
0x16a1   :  { %v2117_v57 = vadd.f32 %v7152_v36, %v2116_v60  ;;  %v5817_v56 = vpop.f32.mrb[25].mxu1 }
0x16a3   :  { %2154 = vrot.lane.b32.xlu1 %v2117_v57, %s6613_s0  ;;  %v2146_v42 = vadd.f32 %v2117_v57, %v6834_v19 }
0x16a5   :  { %v5368_v7 = vmul.f32 -1.442695, %v2146_v42 }
0x16a7   :  { %6415 = vpow2.f32 %v5368_v7 }
0x16a9   :  { %v6414_v45 = vpop.eup %6413 }
0x16aa   :  { %v2124_v38 = vadd.f32 1.0, %v6414_v45 }
0x16ac   :  { %6417 = vrcp.f32 %v2124_v38 }
0x16b1   :  { %v6416_v54 = vpop.eup %6415 }
0x16b2   :  { %v2150_v12 = vadd.f32 1.0, %v6416_v54 }
0x16b4   :  { %6419 = vrcp.f32 %v2150_v12 }
0x16b6   :  { %v6418_v26 = vpop.eup %6417 }
0x16b7   :  { %v2138_v11 = vsub.f32 1.0, %v6418_v26  ;;  %v2144_v27 = vmul.f32 %v6418_v26, %v7165_v28 }
0x16be   :  { %v6420_v24 = vpop.eup %6419 }
0x170d   :  { %v2129_v32 = vpop.permute.xlu0 %2128 }
0x170e   :  { %v2131_v63 = vmul.f32 %v6418_v26, %v2129_v32 }
0x1710   :  { %2133 = vrot.lane.b32.xlu0 %v2131_v63, %s6613_s0 }
0x1715   :  { %v2155_v43 = vpop.permute.xlu1 %2154 }
0x1716   :  { %v2157_v15 = vmul.f32 %v6420_v24, %v2155_v43 }
0x1718   :  { %2159 = vrot.lane.b32.xlu1 %v2157_v15, %s6613_s0 }
0x1782   :  { %v2134_v61 = vpop.permute.xlu0 %2133 }
0x1783   :  { %v2136_v4 = vadd.f32 %v2134_v61, %v6837_v21  ;;  %v2164_v21 = vsub.f32 1.0, %v6420_v24 }
0x1785   :  { %6421 = vtanh.f32 %v2136_v4 }
0x178a   :  { %v2160_v22 = vpop.permute.xlu1 %2159 }
0x178b   :  { %v2162_v6 = vadd.f32 %v2160_v22, %v6834_v19  ;;  %v2170_v19 = vmul.f32 %v6420_v24, %v7170_v52 }
0x178d   :  { %6423 = vtanh.f32 %v2162_v6 }
0x178f   :  { %v6422_v39 = vpop.eup %6421 }
0x1790   :  { %2140 = vrot.lane.b32.xlu0 %v6422_v39, %s6614_s29 }
0x1797   :  { %v6424_v31 = vpop.eup %6423 }
0x1798   :  { %2166 = vrot.lane.b32.xlu1 %v6424_v31, %s6614_s29 }
0x1802   :  { %v2141_v20 = vpop.permute.xlu0 %2140 }
0x1803   :  { %v2143_v16 = vmul.f32 %v2141_v20, %v2138_v11 }
0x1805   :  { %v7204_v30 = vadd.f32 %v2144_v27, %v2143_v16 }
0x1807   :  { %2173 = vrot.lane.b32.xlu0 %v7204_v30, %s6614_s29 }
0x180a   :  { %v2167_v23 = vpop.permute.xlu1 %2166 }
0x180b   :  { %v2169_v49 = vmul.f32 %v2167_v23, %v2164_v21 }
0x180d   :  { %v7209_v51 = vadd.f32 %v2170_v19, %v2169_v49 }
0x180f   :  { %2177 = vst.msk [vmem:[#allocation3 + $0x38] sm:$0xff] %vm520_vm3, %v7209_v51  ;;  %2253 = vrot.lane.b32.xlu1 %v7209_v51, %s6614_s29 }
0x1879   :  { %v2174_v28 = vpop.permute.xlu0 %2173 }
0x187a   :  { %2176 = vst.msk [vmem:[#allocation3 + $0x40] sm:$0xff] %vm319_vm4, %v2174_v28  ;;  %5827 = vmatmul.mubr.msk.f32.vlgmr.msra.gmra.mrb[42].mxu0 %vm319_vm4, %v2174_v28 }
0x187b   :  { %6153 = vmatpush3.bf16.msra.mxu0 %v6653_v5  ;;  %5848 = vmatprep.mubr.msk.f32.mxu0 %vm6612_vm0, %v6611_v1 }
0x187c   :  { %6154 = vmatprep.subr.bf16.mxu0 %v6610_v0 }
0x187f   :  { %6156 = vmatpush3.bf16.msra.mxu0 %v6659_v10 }
0x1880   :  { %6163 = vmatprep.subr.bf16.mxu0 %v6610_v0 }
0x1881   :  { %v2254_v52 = vpop.permute.xlu1 %2253 }
0x1882   :  { %5838 = vmatmul.mubr.msk.f32.vlgmr.msra.gmra.mrb[26].mxu1 %vm319_vm4, %v2254_v52 }
0x1883   :  { %6159 = vmatpush3.bf16.msra.mxu1 %v6670_v14  ;;  %5859 = vmatprep.mubr.msk.f32.mxu1 %vm6612_vm0, %v6611_v1 }
0x1884   :  { %6160 = vmatprep.subr.bf16.mxu1 %v6610_v0 }
0x1887   :  { %6162 = vmatpush3.bf16.msra.mxu1 %v6682_v18 }
0x1888   :  { %6169 = vmatprep.subr.bf16.mxu1 %v6610_v0 }
0x194d   :  { %v2248_v58 = vpop.f32.mrb[42].mxu0 }
0x194e   :  { %v2249_v17 = vadd.f32 %v7148_v2, %v2248_v58  ;;  %v5828_v41 = vpop.f32.mrb[43].mxu0 }
0x1950   :  { %2335 = vrot.lane.b32.xlu0 %v2249_v17, %s6613_s0  ;;  %v2327_v56 = vadd.f32 %v2249_v17, %v6843_v25 }
0x1952   :  { %v5371_v44 = vmul.f32 -1.442695, %v2327_v56 }
0x1954   :  { %6425 = vpow2.f32 %v5371_v44 }
0x1955   :  { %v2323_v48 = vpop.f32.mrb[26].mxu1 }
0x1956   :  { %v2324_v60 = vadd.f32 %v7152_v36, %v2323_v48  ;;  %v5839_v57 = vpop.f32.mrb[27].mxu1 }
0x1958   :  { %2361 = vrot.lane.b32.xlu1 %v2324_v60, %s6613_s0  ;;  %v2353_v50 = vadd.f32 %v2324_v60, %v6828_v13 }
0x195a   :  { %v5372_v42 = vmul.f32 -1.442695, %v2353_v50 }
0x195c   :  { %6427 = vpow2.f32 %v5372_v42 }
0x195e   :  { %v6426_v7 = vpop.eup %6425 }
0x195f   :  { %v2331_v45 = vadd.f32 1.0, %v6426_v7 }
0x1961   :  { %6429 = vrcp.f32 %v2331_v45 }
0x1966   :  { %v6428_v38 = vpop.eup %6427 }
0x1967   :  { %v2357_v54 = vadd.f32 1.0, %v6428_v38 }
0x1969   :  { %6431 = vrcp.f32 %v2357_v54 }
0x196b   :  { %v6430_v12 = vpop.eup %6429 }
0x196c   :  { %v2345_v31 = vsub.f32 1.0, %v6430_v12  ;;  %v2351_v20 = vmul.f32 %v6430_v12, %v7204_v30 }
0x1973   :  { %v6432_v63 = vpop.eup %6431 }
0x19c2   :  { %v2336_v26 = vpop.permute.xlu0 %2335 }
0x19c3   :  { %v2338_v32 = vmul.f32 %v6430_v12, %v2336_v26 }
0x19c5   :  { %2340 = vrot.lane.b32.xlu0 %v2338_v32, %s6613_s0 }
0x19ca   :  { %v2362_v24 = vpop.permute.xlu1 %2361 }
0x19cb   :  { %v2364_v43 = vmul.f32 %v6432_v63, %v2362_v24 }
0x19cd   :  { %2366 = vrot.lane.b32.xlu1 %v2364_v43, %s6613_s0 }
0x1a37   :  { %v2341_v15 = vpop.permute.xlu0 %2340 }
0x1a38   :  { %v2343_v61 = vadd.f32 %v2341_v15, %v6843_v25  ;;  %v2371_v25 = vsub.f32 1.0, %v6432_v63 }
0x1a3a   :  { %6433 = vtanh.f32 %v2343_v61 }
0x1a3f   :  { %v2367_v4 = vpop.permute.xlu1 %2366 }
0x1a40   :  { %v2369_v22 = vadd.f32 %v2367_v4, %v6828_v13  ;;  %v2377_v13 = vmul.f32 %v6432_v63, %v7209_v51 }
0x1a42   :  { %6435 = vtanh.f32 %v2369_v22 }
0x1a44   :  { %v6434_v6 = vpop.eup %6433 }
0x1a45   :  { %2347 = vrot.lane.b32.xlu0 %v6434_v6, %s6614_s29 }
0x1a4c   :  { %v6436_v39 = vpop.eup %6435 }
0x1a4d   :  { %2373 = vrot.lane.b32.xlu1 %v6436_v39, %s6614_s29 }
0x1ab7   :  { %v2348_v11 = vpop.permute.xlu0 %2347 }
0x1ab8   :  { %v2350_v27 = vmul.f32 %v2348_v11, %v2345_v31 }
0x1aba   :  { %v7243_v16 = vadd.f32 %v2351_v20, %v2350_v27 }
0x1abc   :  { %2380 = vrot.lane.b32.xlu0 %v7243_v16, %s6614_s29 }
0x1abf   :  { %v2374_v21 = vpop.permute.xlu1 %2373 }
0x1ac0   :  { %v2376_v23 = vmul.f32 %v2374_v21, %v2371_v25 }
0x1ac2   :  { %v7248_v19 = vadd.f32 %v2377_v13, %v2376_v23 }
0x1ac4   :  { %2384 = vst.msk [vmem:[#allocation3 + $0x30] sm:$0xff] %vm520_vm3, %v7248_v19  ;;  %2460 = vrot.lane.b32.xlu1 %v7248_v19, %s6614_s29 }
0x1b2e   :  { %v2381_v30 = vpop.permute.xlu0 %2380 }
0x1b2f   :  { %2383 = vst.msk [vmem:[#allocation3 + $0x48] sm:$0xff] %vm319_vm4, %v2381_v30  ;;  %5849 = vmatmul.mubr.msk.f32.vlgmr.msra.gmra.mrb[44].mxu0 %vm319_vm4, %v2381_v30 }
0x1b30   :  { %6165 = vmatpush3.bf16.msra.mxu0 %v6653_v5  ;;  %5870 = vmatprep.mubr.msk.f32.mxu0 %vm6612_vm0, %v6611_v1 }
0x1b31   :  { %6166 = vmatprep.subr.bf16.mxu0 %v6610_v0 }
0x1b34   :  { %6168 = vmatpush3.bf16.msra.mxu0 %v6659_v10 }
0x1b35   :  { %6175 = vmatprep.subr.bf16.mxu0 %v6610_v0 }
0x1b36   :  { %v2461_v49 = vpop.permute.xlu1 %2460 }
0x1b37   :  { %5860 = vmatmul.mubr.msk.f32.vlgmr.msra.gmra.mrb[28].mxu1 %vm319_vm4, %v2461_v49 }
0x1b38   :  { %6171 = vmatpush3.bf16.msra.mxu1 %v6670_v14  ;;  %5881 = vmatprep.mubr.msk.f32.mxu1 %vm6612_vm0, %v6611_v1 }
0x1b39   :  { %6172 = vmatprep.subr.bf16.mxu1 %v6610_v0 }
0x1b3c   :  { %6174 = vmatpush3.bf16.msra.mxu1 %v6682_v18 }
0x1b3d   :  { %6181 = vmatprep.subr.bf16.mxu1 %v6610_v0 }
0x1c02   :  { %v2455_v51 = vpop.f32.mrb[44].mxu0 }
0x1c03   :  { %v2456_v28 = vadd.f32 %v7148_v2, %v2455_v51  ;;  %v5850_v52 = vpop.f32.mrb[45].mxu0 }
0x1c05   :  { %2542 = vrot.lane.b32.xlu0 %v2456_v28, %s6613_s0  ;;  %v2534_v48 = vadd.f32 %v2456_v28, %v6849_v29 }
0x1c07   :  { %v5375_v60 = vmul.f32 -1.442695, %v2534_v48 }
0x1c09   :  { %6437 = vpow2.f32 %v5375_v60 }
0x1c0a   :  { %v2530_v58 = vpop.f32.mrb[28].mxu1 }
0x1c0b   :  { %v2531_v17 = vadd.f32 %v7152_v36, %v2530_v58  ;;  %v5861_v41 = vpop.f32.mrb[29].mxu1 }
0x1c0d   :  { %2568 = vrot.lane.b32.xlu1 %v2531_v17, %s6613_s0  ;;  %v2560_v57 = vadd.f32 %v2531_v17, %v6822_v8 }
0x1c0f   :  { %v5376_v56 = vmul.f32 -1.442695, %v2560_v57 }
0x1c11   :  { %6439 = vpow2.f32 %v5376_v56 }
0x1c13   :  { %v6438_v44 = vpop.eup %6437 }
0x1c14   :  { %v2538_v50 = vadd.f32 1.0, %v6438_v44 }
0x1c16   :  { %6441 = vrcp.f32 %v2538_v50 }
0x1c1b   :  { %v6440_v42 = vpop.eup %6439 }
0x1c1c   :  { %v2564_v7 = vadd.f32 1.0, %v6440_v42 }
0x1c1e   :  { %6443 = vrcp.f32 %v2564_v7 }
0x1c20   :  { %v6442_v45 = vpop.eup %6441 }
0x1c21   :  { %v2552_v22 = vsub.f32 1.0, %v6442_v45  ;;  %v2558_v39 = vmul.f32 %v6442_v45, %v7243_v16 }
0x1c28   :  { %v6444_v12 = vpop.eup %6443 }
0x1c77   :  { %v2543_v38 = vpop.permute.xlu0 %2542 }
0x1c78   :  { %v2545_v54 = vmul.f32 %v6442_v45, %v2543_v38 }
0x1c7a   :  { %2547 = vrot.lane.b32.xlu0 %v2545_v54, %s6613_s0 }
0x1c7f   :  { %v2569_v26 = vpop.permute.xlu1 %2568 }
0x1c80   :  { %v2571_v32 = vmul.f32 %v6444_v12, %v2569_v26 }
0x1c82   :  { %2573 = vrot.lane.b32.xlu1 %v2571_v32, %s6613_s0 }
0x1cec   :  { %v2548_v63 = vpop.permute.xlu0 %2547 }
0x1ced   :  { %v2550_v24 = vadd.f32 %v2548_v63, %v6849_v29  ;;  %v2578_v29 = vsub.f32 1.0, %v6444_v12 }
0x1cef   :  { %6445 = vtanh.f32 %v2550_v24 }
0x1cf4   :  { %v2574_v43 = vpop.permute.xlu1 %2573 }
0x1cf5   :  { %v2576_v15 = vadd.f32 %v2574_v43, %v6822_v8  ;;  %v2584_v8 = vmul.f32 %v6444_v12, %v7248_v19 }
0x1cf7   :  { %6447 = vtanh.f32 %v2576_v15 }
0x1cf9   :  { %v6446_v61 = vpop.eup %6445 }
0x1cfa   :  { %2554 = vrot.lane.b32.xlu0 %v6446_v61, %s6614_s29 }
0x1d01   :  { %v6448_v4 = vpop.eup %6447 }
0x1d02   :  { %2580 = vrot.lane.b32.xlu1 %v6448_v4, %s6614_s29 }
0x1d6c   :  { %v2555_v6 = vpop.permute.xlu0 %2554 }
0x1d6d   :  { %v2557_v31 = vmul.f32 %v2555_v6, %v2552_v22 }
0x1d6f   :  { %v7282_v11 = vadd.f32 %v2558_v39, %v2557_v31 }
0x1d71   :  { %2587 = vrot.lane.b32.xlu0 %v7282_v11, %s6614_s29 }
0x1d74   :  { %v2581_v20 = vpop.permute.xlu1 %2580 }
0x1d75   :  { %v2583_v27 = vmul.f32 %v2581_v20, %v2578_v29 }
0x1d77   :  { %v7287_v25 = vadd.f32 %v2584_v8, %v2583_v27 }
0x1d79   :  { %2591 = vst.msk [vmem:[#allocation3 + $0x28] sm:$0xff] %vm520_vm3, %v7287_v25  ;;  %2667 = vrot.lane.b32.xlu1 %v7287_v25, %s6614_s29 }
0x1de3   :  { %v2588_v16 = vpop.permute.xlu0 %2587 }
0x1de4   :  { %2590 = vst.msk [vmem:[#allocation3 + $0x50] sm:$0xff] %vm319_vm4, %v2588_v16  ;;  %5871 = vmatmul.mubr.msk.f32.vlgmr.msra.gmra.mrb[46].mxu0 %vm319_vm4, %v2588_v16 }
0x1de5   :  { %6177 = vmatpush3.bf16.msra.mxu0 %v6653_v5  ;;  %5892 = vmatprep.mubr.msk.f32.mxu0 %vm6612_vm0, %v6611_v1 }
0x1de6   :  { %6178 = vmatprep.subr.bf16.mxu0 %v6610_v0 }
0x1de9   :  { %6180 = vmatpush3.bf16.msra.mxu0 %v6659_v10 }
0x1dea   :  { %6187 = vmatprep.subr.bf16.mxu0 %v6610_v0 }
0x1deb   :  { %v2668_v21 = vpop.permute.xlu1 %2667 }
0x1dec   :  { %5882 = vmatmul.mubr.msk.f32.vlgmr.msra.gmra.mrb[30].mxu1 %vm319_vm4, %v2668_v21 }
0x1ded   :  { %6183 = vmatpush3.bf16.msra.mxu1 %v6670_v14  ;;  %5903 = vmatprep.mubr.msk.f32.mxu1 %vm6612_vm0, %v6611_v1 }
0x1dee   :  { %6184 = vmatprep.subr.bf16.mxu1 %v6610_v0 }
0x1df1   :  { %6186 = vmatpush3.bf16.msra.mxu1 %v6682_v18 }
0x1df2   :  { %6193 = vmatprep.subr.bf16.mxu1 %v6610_v0 }
0x1eb7   :  { %v2662_v13 = vpop.f32.mrb[46].mxu0 }
0x1eb8   :  { %v2663_v23 = vadd.f32 %v7148_v2, %v2662_v13  ;;  %v5872_v19 = vpop.f32.mrb[47].mxu0 }
0x1eba   :  { %2749 = vrot.lane.b32.xlu0 %v2663_v23, %s6613_s0  ;;  %v2741_v28 = vadd.f32 %v2663_v23, %v6855_v35 }
0x1ebc   :  { %v5379_v52 = vmul.f32 -1.442695, %v2741_v28 }
0x1ebe   :  { %6449 = vpow2.f32 %v5379_v52 }
0x1ebf   :  { %v2737_v30 = vpop.f32.mrb[30].mxu1 }
0x1ec0   :  { %v2738_v49 = vadd.f32 %v7152_v36, %v2737_v30  ;;  %v5883_v51 = vpop.f32.mrb[31].mxu1 }
0x1ec2   :  { %2775 = vrot.lane.b32.xlu1 %v2738_v49, %s6613_s0  ;;  %v2767_v58 = vadd.f32 %v2738_v49, %v6816_v3 }
0x1ec4   :  { %v5380_v17 = vmul.f32 -1.442695, %v2767_v58 }
0x1ec6   :  { %6451 = vpow2.f32 %v5380_v17 }
0x1ec8   :  { %v6450_v41 = vpop.eup %6449 }
0x1ec9   :  { %v2745_v48 = vadd.f32 1.0, %v6450_v41 }
0x1ecb   :  { %6453 = vrcp.f32 %v2745_v48 }
0x1ed0   :  { %v6452_v60 = vpop.eup %6451 }
0x1ed1   :  { %v2771_v57 = vadd.f32 1.0, %v6452_v60 }
0x1ed3   :  { %6455 = vrcp.f32 %v2771_v57 }
0x1ed5   :  { %v6454_v56 = vpop.eup %6453 }
0x1ed6   :  { %v2759_v24 = vsub.f32 1.0, %v6454_v56  ;;  %v2765_v15 = vmul.f32 %v6454_v56, %v7282_v11 }
0x1edd   :  { %v6456_v42 = vpop.eup %6455 }
0x1f2c   :  { %v2750_v44 = vpop.permute.xlu0 %2749 }
0x1f2d   :  { %v2752_v50 = vmul.f32 %v6454_v56, %v2750_v44 }
0x1f2f   :  { %2754 = vrot.lane.b32.xlu0 %v2752_v50, %s6613_s0 }
0x1f34   :  { %v2776_v7 = vpop.permute.xlu1 %2775 }
0x1f35   :  { %v2778_v45 = vmul.f32 %v6456_v42, %v2776_v7 }
0x1f37   :  { %2780 = vrot.lane.b32.xlu1 %v2778_v45, %s6613_s0 }
0x1fa1   :  { %v2755_v38 = vpop.permute.xlu0 %2754 }
0x1fa2   :  { %v2757_v54 = vadd.f32 %v2755_v38, %v6855_v35  ;;  %v2785_v35 = vsub.f32 1.0, %v6456_v42 }
0x1fa4   :  { %6457 = vtanh.f32 %v2757_v54 }
0x1fa9   :  { %v2781_v12 = vpop.permute.xlu1 %2780 }
0x1faa   :  { %v2783_v26 = vadd.f32 %v2781_v12, %v6816_v3  ;;  %v2791_v3 = vmul.f32 %v6456_v42, %v7287_v25 }
0x1fac   :  { %6459 = vtanh.f32 %v2783_v26 }
0x1fae   :  { %v6458_v32 = vpop.eup %6457 }
0x1faf   :  { %2761 = vrot.lane.b32.xlu0 %v6458_v32, %s6614_s29 }
0x1fb6   :  { %v6460_v63 = vpop.eup %6459 }
0x1fb7   :  { %2787 = vrot.lane.b32.xlu1 %v6460_v63, %s6614_s29 }
0x2021   :  { %v2762_v43 = vpop.permute.xlu0 %2761 }
0x2022   :  { %v2764_v61 = vmul.f32 %v2762_v43, %v2759_v24 }
0x2024   :  { %v7321_v4 = vadd.f32 %v2765_v15, %v2764_v61 }
0x2026   :  { %2794 = vrot.lane.b32.xlu0 %v7321_v4, %s6614_s29 }
0x2029   :  { %v2788_v22 = vpop.permute.xlu1 %2787 }
0x202a   :  { %v2790_v6 = vmul.f32 %v2788_v22, %v2785_v35 }
0x202c   :  { %v7326_v39 = vadd.f32 %v2791_v3, %v2790_v6 }
0x202e   :  { %2798 = vst.msk [vmem:[#allocation3 + $0x20] sm:$0xff] %vm520_vm3, %v7326_v39  ;;  %2874 = vrot.lane.b32.xlu1 %v7326_v39, %s6614_s29 }
0x2098   :  { %v2795_v31 = vpop.permute.xlu0 %2794 }
0x2099   :  { %2797 = vst.msk [vmem:[#allocation3 + $0x58] sm:$0xff] %vm319_vm4, %v2795_v31  ;;  %5893 = vmatmul.mubr.msk.f32.vlgmr.msra.gmra.mrb[48].mxu0 %vm319_vm4, %v2795_v31 }
0x209a   :  { %6189 = vmatpush3.bf16.msra.mxu0 %v6653_v5  ;;  %5914 = vmatprep.mubr.msk.f32.mxu0 %vm6612_vm0, %v6611_v1 }
0x209b   :  { %6190 = vmatprep.subr.bf16.mxu0 %v6610_v0 }
0x209e   :  { %6192 = vmatpush3.bf16.msra.mxu0 %v6659_v10 }
0x209f   :  { %6199 = vmatprep.subr.bf16.mxu0 %v6610_v0 }
0x20a0   :  { %v2875_v11 = vpop.permute.xlu1 %2874 }
0x20a1   :  { %5904 = vmatmul.mubr.msk.f32.vlgmr.msra.gmra.mrb[32].mxu1 %vm319_vm4, %v2875_v11 }
0x20a2   :  { %6195 = vmatpush3.bf16.msra.mxu1 %v6670_v14  ;;  %5925 = vmatprep.mubr.msk.f32.mxu1 %vm6612_vm0, %v6611_v1 }
0x20a3   :  { %6196 = vmatprep.subr.bf16.mxu1 %v6610_v0 }
0x20a6   :  { %6198 = vmatpush3.bf16.msra.mxu1 %v6682_v18 }
0x20a7   :  { %6205 = vmatprep.subr.bf16.mxu1 %v6610_v0 }
0x216c   :  { %v2869_v29 = vpop.f32.mrb[48].mxu0 }
0x216d   :  { %v2870_v20 = vadd.f32 %v7148_v2, %v2869_v29  ;;  %v5894_v8 = vpop.f32.mrb[49].mxu0 }
0x216f   :  { %2956 = vrot.lane.b32.xlu0 %v2870_v20, %s6613_s0  ;;  %v2948_v21 = vadd.f32 %v2870_v20, %v6861_v46 }
0x2171   :  { %v5383_v13 = vmul.f32 -1.442695, %v2948_v21 }
0x2173   :  { %6461 = vpow2.f32 %v5383_v13 }
0x2174   :  { %v2944_v27 = vpop.f32.mrb[32].mxu1 }
0x2175   :  { %v2945_v25 = vadd.f32 %v7152_v36, %v2944_v27  ;;  %v5905_v16 = vpop.f32.mrb[33].mxu1 }
0x2177   :  { %2982 = vrot.lane.b32.xlu1 %v2945_v25, %s6613_s0  ;;  %v2974_v23 = vadd.f32 %v2945_v25, %v6808_v59 }
0x2179   :  { %v5384_v19 = vmul.f32 -1.442695, %v2974_v23 }
0x217b   :  { %6463 = vpow2.f32 %v5384_v19 }
0x217d   :  { %v6462_v30 = vpop.eup %6461 }
0x217e   :  { %v2952_v49 = vadd.f32 1.0, %v6462_v30 }
0x2180   :  { %6465 = vrcp.f32 %v2952_v49 }
0x2185   :  { %v6464_v51 = vpop.eup %6463 }
0x2186   :  { %v2978_v28 = vadd.f32 1.0, %v6464_v51 }
0x2188   :  { %6467 = vrcp.f32 %v2978_v28 }
0x218a   :  { %v6466_v52 = vpop.eup %6465 }
0x218b   :  { %v2966_v45 = vsub.f32 1.0, %v6466_v52  ;;  %v2972_v54 = vmul.f32 %v6466_v52, %v7321_v4 }
0x2192   :  { %v6468_v41 = vpop.eup %6467 }
0x21e1   :  { %v2957_v58 = vpop.permute.xlu0 %2956 }
0x21e2   :  { %v2959_v17 = vmul.f32 %v6466_v52, %v2957_v58 }
0x21e4   :  { %2961 = vrot.lane.b32.xlu0 %v2959_v17, %s6613_s0 }
0x21e9   :  { %v2983_v48 = vpop.permute.xlu1 %2982 }
0x21ea   :  { %v2985_v60 = vmul.f32 %v6468_v41, %v2983_v48 }
0x21ec   :  { %2987 = vrot.lane.b32.xlu1 %v2985_v60, %s6613_s0 }
0x2256   :  { %v2962_v57 = vpop.permute.xlu0 %2961 }
0x2257   :  { %v2964_v56 = vadd.f32 %v2962_v57, %v6861_v46  ;;  %v2992_v46 = vsub.f32 1.0, %v6468_v41 }
0x2259   :  { %6469 = vtanh.f32 %v2964_v56 }
0x225e   :  { %v2988_v44 = vpop.permute.xlu1 %2987 }
0x225f   :  { %v2990_v50 = vadd.f32 %v2988_v44, %v6808_v59  ;;  %v2998_v59 = vmul.f32 %v6468_v41, %v7326_v39 }
0x2261   :  { %6471 = vtanh.f32 %v2990_v50 }
0x2263   :  { %v6470_v42 = vpop.eup %6469 }
0x2264   :  { %2968 = vrot.lane.b32.xlu0 %v6470_v42, %s6614_s29 }
0x226b   :  { %v6472_v7 = vpop.eup %6471 }
0x226c   :  { %2994 = vrot.lane.b32.xlu1 %v6472_v7, %s6614_s29 }
0x22d6   :  { %v2969_v38 = vpop.permute.xlu0 %2968 }
0x22d7   :  { %v2971_v12 = vmul.f32 %v2969_v38, %v2966_v45 }
0x22d9   :  { %v7360_v26 = vadd.f32 %v2972_v54, %v2971_v12 }
0x22db   :  { %3001 = vrot.lane.b32.xlu0 %v7360_v26, %s6614_s29 }
0x22de   :  { %v2995_v32 = vpop.permute.xlu1 %2994 }
0x22df   :  { %v2997_v63 = vmul.f32 %v2995_v32, %v2992_v46 }
0x22e1   :  { %v7365_v24 = vadd.f32 %v2998_v59, %v2997_v63 }
0x22e3   :  { %3005 = vst.msk [vmem:[#allocation3 + $0x18] sm:$0xff] %vm520_vm3, %v7365_v24  ;;  %3081 = vrot.lane.b32.xlu1 %v7365_v24, %s6614_s29 }
0x234d   :  { %v3002_v43 = vpop.permute.xlu0 %3001 }
0x234e   :  { %3004 = vst.msk [vmem:[#allocation3 + $0x60] sm:$0xff] %vm319_vm4, %v3002_v43  ;;  %5915 = vmatmul.mubr.msk.f32.vlgmr.msra.gmra.mrb[50].mxu0 %vm319_vm4, %v3002_v43 }
0x234f   :  { %6201 = vmatpush3.bf16.msra.mxu0 %v6653_v5  ;;  %5936 = vmatprep.mubr.msk.f32.mxu0 %vm6612_vm0, %v6611_v1 }
0x2350   :  { %6202 = vmatprep.subr.bf16.mxu0 %v6610_v0 }
0x2353   :  { %6204 = vmatpush3.bf16.msra.mxu0 %v6659_v10 }
0x2354   :  { %6211 = vmatprep.subr.bf16.mxu0 %v6610_v0 }
0x2355   :  { %v3082_v15 = vpop.permute.xlu1 %3081 }
0x2356   :  { %5926 = vmatmul.mubr.msk.f32.vlgmr.msra.gmra.mrb[34].mxu1 %vm319_vm4, %v3082_v15 }
0x2357   :  { %6207 = vmatpush3.bf16.msra.mxu1 %v6670_v14  ;;  %5947 = vmatprep.mubr.msk.f32.mxu1 %vm6612_vm0, %v6611_v1 }
0x2358   :  { %6208 = vmatprep.subr.bf16.mxu1 %v6610_v0 }
0x235b   :  { %6210 = vmatpush3.bf16.msra.mxu1 %v6682_v18 }
0x235c   :  { %6217 = vmatprep.subr.bf16.mxu1 %v6610_v0 }
0x2421   :  { %v3076_v61 = vpop.f32.mrb[50].mxu0 }
0x2422   :  { %v3077_v4 = vadd.f32 %v7148_v2, %v3076_v61  ;;  %v5916_v35 = vpop.f32.mrb[51].mxu0 }
0x2424   :  { %3163 = vrot.lane.b32.xlu0 %v3077_v4, %s6613_s0  ;;  %v3155_v39 = vadd.f32 %v3077_v4, %v6867_v55 }
0x2426   :  { %v5387_v31 = vmul.f32 -1.442695, %v3155_v39 }
0x2428   :  { %6473 = vpow2.f32 %v5387_v31 }
0x2429   :  { %v3151_v22 = vpop.f32.mrb[34].mxu1 }
0x242a   :  { %v3152_v3 = vadd.f32 %v7152_v36, %v3151_v22  ;;  %v5927_v6 = vpop.f32.mrb[35].mxu1 }
0x242c   :  { %3189 = vrot.lane.b32.xlu1 %v3152_v3, %s6613_s0  ;;  %v3181_v11 = vadd.f32 %v3152_v3, %v6800_v53 }
0x242e   :  { %v5388_v29 = vmul.f32 -1.442695, %v3181_v11 }
0x2430   :  { %6475 = vpow2.f32 %v5388_v29 }
0x2432   :  { %v6474_v20 = vpop.eup %6473 }
0x2433   :  { %v3159_v8 = vadd.f32 1.0, %v6474_v20 }
0x2435   :  { %6477 = vrcp.f32 %v3159_v8 }
0x243a   :  { %v6476_v27 = vpop.eup %6475 }
0x243b   :  { %v3185_v25 = vadd.f32 1.0, %v6476_v27 }
0x243d   :  { %6479 = vrcp.f32 %v3185_v25 }
0x243f   :  { %v6478_v16 = vpop.eup %6477 }
0x2440   :  { %v3173_v41 = vsub.f32 1.0, %v6478_v16  ;;  %v3179_v60 = vmul.f32 %v6478_v16, %v7360_v26 }
0x2447   :  { %v6480_v23 = vpop.eup %6479 }
0x2496   :  { %v3164_v21 = vpop.permute.xlu0 %3163 }
0x2497   :  { %v3166_v13 = vmul.f32 %v6478_v16, %v3164_v21 }
0x2499   :  { %3168 = vrot.lane.b32.xlu0 %v3166_v13, %s6613_s0 }
0x249e   :  { %v3190_v19 = vpop.permute.xlu1 %3189 }
0x249f   :  { %v3192_v30 = vmul.f32 %v6480_v23, %v3190_v19 }
0x24a1   :  { %3194 = vrot.lane.b32.xlu1 %v3192_v30, %s6613_s0 }
0x250b   :  { %v3169_v49 = vpop.permute.xlu0 %3168 }
0x250c   :  { %v3171_v51 = vadd.f32 %v3169_v49, %v6867_v55  ;;  %v3199_v55 = vsub.f32 1.0, %v6480_v23  ;;  %v6581_v49 = vld [vmem:[#allocation4 + $0x1d1] ss:$0 sm:$0xff] }
0x250e   :  { %6481 = vtanh.f32 %v3171_v51 }
0x2513   :  { %v3195_v28 = vpop.permute.xlu1 %3194 }
0x2514   :  { %v3197_v52 = vadd.f32 %v3195_v28, %v6800_v53  ;;  %v3205_v53 = vmul.f32 %v6480_v23, %v7365_v24 }
0x2516   :  { %6483 = vtanh.f32 %v3197_v52 }
0x2518   :  { %v6482_v58 = vpop.eup %6481 }
0x2519   :  { %3175 = vrot.lane.b32.xlu0 %v6482_v58, %s6614_s29  ;;  %v6582_v58 = vld [vmem:[#allocation4 + $0x1d2] ss:$0 sm:$0xff] }
0x2520   :  { %v6484_v17 = vpop.eup %6483 }
0x2521   :  { %3201 = vrot.lane.b32.xlu1 %v6484_v17, %s6614_s29 }
0x258b   :  { %v3176_v48 = vpop.permute.xlu0 %3175 }
0x258c   :  { %v3178_v57 = vmul.f32 %v3176_v48, %v3173_v41 }
0x258e   :  { %v7399_v56 = vadd.f32 %v3179_v60, %v3178_v57 }
0x2590   :  { %3208 = vrot.lane.b32.xlu0 %v7399_v56, %s6614_s29 }
0x2593   :  { %v3202_v44 = vpop.permute.xlu1 %3201 }
0x2594   :  { %v3204_v50 = vmul.f32 %v3202_v44, %v3199_v55 }
0x2596   :  { %v7404_v42 = vadd.f32 %v3205_v53, %v3204_v50 }
0x2598   :  { %3212 = vst.msk [vmem:[#allocation3 + $0x10] sm:$0xff] %vm520_vm3, %v7404_v42  ;;  %3288 = vrot.lane.b32.xlu1 %v7404_v42, %s6614_s29 }
0x2602   :  { %v3209_v7 = vpop.permute.xlu0 %3208 }
0x2603   :  { %3211 = vst.msk [vmem:[#allocation3 + $0x68] sm:$0xff] %vm319_vm4, %v3209_v7  ;;  %5937 = vmatmul.mubr.msk.f32.vlgmr.msra.gmra.mrb[52].mxu0 %vm319_vm4, %v3209_v7 }
0x2604   :  { %6213 = vmatpush3.bf16.msra.mxu0 %v6653_v5  ;;  %5958 = vmatprep.mubr.msk.f32.mxu0 %vm6612_vm0, %v6611_v1 }
0x2605   :  { %6214 = vmatprep.subr.bf16.mxu0 %v6610_v0 }
0x2608   :  { %6216 = vmatpush3.bf16.msra.mxu0 %v6659_v10 }
0x260a   :  { %v3289_v45 = vpop.permute.xlu1 %3288 }
0x260b   :  { %5948 = vmatmul.mubr.msk.f32.vlgmr.msra.gmra.mrb[36].mxu1 %vm319_vm4, %v3289_v45 }
0x260c   :  { %6219 = vmatpush3.bf16.msra.mxu1 %v6670_v14  ;;  %5969 = vmatprep.mubr.msk.f32.mxu1 %vm6612_vm0, %v6611_v1 }
0x260d   :  { %6220 = vmatprep.subr.bf16.mxu1 %v6610_v0 }
0x2610   :  { %6222 = vmatpush3.bf16.msra.mxu1 %v6682_v18 }
0x2611   :  { %6239 = vmatprep.subr.bf16.mxu1 %v6610_v0 }
0x26d6   :  { %v3283_v5 = vpop.f32.mrb[52].mxu0 }
0x26d7   :  { %v3284_v38 = vadd.f32 %v7148_v2, %v3283_v5  ;;  %v5938_v54 = vpop.f32.mrb[53].mxu0 }
0x26d9   :  { %3370 = vrot.lane.b32.xlu0 %v3284_v38, %s6613_s0  ;;  %v3362_v14 = vadd.f32 %v3284_v38, %v6873_v62 }
0x26db   :  { %v5391_v46 = vmul.f32 -1.442695, %v3362_v14  ;;  %v3628_v14 = vld [vmem:[#allocation4 + $0xa0] sm:$0xff] }
0x26dd   :  { %6485 = vpow2.f32 %v5391_v46 }
0x26de   :  { %v3358_v10 = vpop.f32.mrb[36].mxu1 }
0x26df   :  { %v3359_v12 = vadd.f32 %v7152_v36, %v3358_v10  ;;  %v5949_v26 = vpop.f32.mrb[37].mxu1 }
0x26e0   :  { %v3627_v26 = vld [vmem:[#allocation4 + $0x90] sm:$0xff] }
0x26e1   :  { %3396 = vrot.lane.b32.xlu1 %v3359_v12, %s6613_s0  ;;  %v3388_v18 = vadd.f32 %v3359_v12, %v6789_v47  ;;  %v6223_v46 = vpack.c.bf16 %v3628_v14, %v3627_v26 }
0x26e3   :  { %v5392_v32 = vmul.f32 -1.442695, %v3388_v18  ;;  %6224 = vmatprep.subr.bf16.mxu0 %v6223_v46  ;;  %v3629_v18 = vld [vmem:[#allocation4 + $0xb0] sm:$0xff] }
0x26e5   :  { %6487 = vpow2.f32 %v5392_v32  ;;  %v3630_v32 = vld [vmem:[#allocation4 + $0xc0] sm:$0xff] }
0x26e7   :  { %v6486_v59 = vpop.eup %6485 }
0x26e8   :  { %v3366_v63 = vadd.f32 1.0, %v6486_v59 }
0x26ea   :  { %6489 = vrcp.f32 %v3366_v63  ;;  %v6227_v63 = vpack.c.bf16 %v3630_v32, %v3629_v18 }
0x26ef   :  { %v6488_v2 = vpop.eup %6487 }
0x26f0   :  { %v3392_v24 = vadd.f32 1.0, %v6488_v2 }
0x26f2   :  { %6491 = vrcp.f32 %v3392_v24  ;;  %v3631_v24 = vld [vmem:[#allocation4 + $0xd0] sm:$0xff] }
0x26f4   :  { %v6490_v43 = vpop.eup %6489 }
0x26f5   :  { %v3380_v29 = vsub.f32 1.0, %v6490_v43  ;;  %v3386_v8 = vmul.f32 %v6490_v43, %v7399_v56 }
0x26fc   :  { %v6492_v61 = vpop.eup %6491 }
0x274b   :  { %v3371_v15 = vpop.permute.xlu0 %3370 }
0x274c   :  { %v3373_v36 = vmul.f32 %v6490_v43, %v3371_v15  ;;  %v3632_v43 = vld [vmem:[#allocation4 + $0xe0] sm:$0xff] }
0x274d   :  { %v6231_v15 = vpack.c.bf16 %v3632_v43, %v3631_v24 }
0x274e   :  { %3375 = vrot.lane.b32.xlu0 %v3373_v36, %s6613_s0 }
0x2753   :  { %v3397_v4 = vpop.permute.xlu1 %3396 }
0x2754   :  { %v3399_v35 = vmul.f32 %v6492_v61, %v3397_v4 }
0x2756   :  { %3401 = vrot.lane.b32.xlu1 %v3399_v35, %s6613_s0 }
0x27c0   :  { %v3376_v22 = vpop.permute.xlu0 %3375 }
0x27c1   :  { %v3378_v3 = vadd.f32 %v3376_v22, %v6873_v62  ;;  %v3406_v62 = vsub.f32 1.0, %v6492_v61 }
0x27c3   :  { %6493 = vtanh.f32 %v3378_v3 }
0x27c8   :  { %v3402_v6 = vpop.permute.xlu1 %3401 }
0x27c9   :  { %v3404_v39 = vadd.f32 %v3402_v6, %v6789_v47  ;;  %v3412_v47 = vmul.f32 %v6492_v61, %v7404_v42  ;;  %v3634_v61 = vld [vmem:[#allocation4 + $0x100] sm:$0xff] }
0x27cb   :  { %6495 = vtanh.f32 %v3404_v39 }
0x27cd   :  { %v6494_v31 = vpop.eup %6493 }
0x27ce   :  { %3382 = vrot.lane.b32.xlu0 %v6494_v31, %s6614_s29 }
0x27d5   :  { %v6496_v11 = vpop.eup %6495 }
0x27d6   :  { %3408 = vrot.lane.b32.xlu1 %v6496_v11, %s6614_s29 }
0x2840   :  { %v3383_v20 = vpop.permute.xlu0 %3382 }
0x2841   :  { %v3385_v27 = vmul.f32 %v3383_v20, %v3380_v29 }
0x2843   :  { %v7437_v25 = vadd.f32 %v3386_v8, %v3385_v27 }
0x2845   :  { %3415 = vrot.lane.b32.xlu0 %v7437_v25, %s6614_s29 }
0x2848   :  { %v3409_v16 = vpop.permute.xlu1 %3408 }
0x2849   :  { %v3411_v21 = vmul.f32 %v3409_v16, %v3406_v62  ;;  %v7477_v16 = vld [vmem:[#allocation3 + $0x10] sm:$0xff] }
0x284b   :  { %v7442_v13 = vadd.f32 %v3412_v47, %v3411_v21  ;;  %v7481_v47 = vld [vmem:[#allocation3 + $0x18] sm:$0xff]  ;;  %v7485_v21 = vld [vmem:[#allocation3 + $0x20] sm:$0xff] }
0x284d   :  { %3419 = vst.msk [vmem:[#allocation3 + $0x8] sm:$0xff] %vm520_vm3, %v7442_v13  ;;  %3495 = vrot.lane.b32.xlu1 %v7442_v13, %s6614_s29 }
0x28b7   :  { %v3416_v23 = vpop.permute.xlu0 %3415 }
0x28b8   :  { %3418 = vst.msk [vmem:[#allocation3 + $0x70] sm:$0xff] %vm319_vm4, %v3416_v23  ;;  %5959 = vmatmul.mubr.msk.f32.vlgmr.msra.gmra.mrb[54].mxu0 %vm319_vm4, %v3416_v23  ;;  %v7493_v23 = vld [vmem:[#allocation3 + $0x30] sm:$0xff] }
0x28b9   :  { %6226 = vmatpush3.bf16.msra.mxu0 %v6223_v46 }
0x28ba   :  { %6228 = vmatprep.subr.bf16.mxu0 %v6227_v63 }
0x28bd   :  { %6230 = vmatpush3.bf16.msra.mxu0 %v6227_v63 }
0x28be   :  { %6232 = vmatprep.subr.bf16.mxu0 %v6231_v15 }
0x28bf   :  { %v3496_v19 = vpop.permute.xlu1 %3495 }
0x28c0   :  { %5970 = vmatmul.mubr.msk.f32.vlgmr.msra.gmra.mrb[38].mxu1 %vm319_vm4, %v3496_v19  ;;  %v7497_v19 = vld [vmem:[#allocation3 + $0x38] sm:$0xff] }
0x28c1   :  { %6028 = vmatprep.mubr.msk.f32.mxu1 %vm6612_vm0, %v6611_v1  ;;  %6234 = vmatpush3.bf16.msra.mxu0 %v6231_v15 }
0x298b   :  { %v3490_v30 = vpop.f32.mrb[54].mxu0 }
0x298c   :  { %v3491_v51 = vadd.f32 %v6581_v49, %v3490_v30  ;;  %v5960_v28 = vpop.f32.mrb[55].mxu0  ;;  %v7501_v30 = vld [vmem:[#allocation3 + $0x40] sm:$0xff]  ;;  %v7505_v49 = vld [vmem:[#allocation3 + $0x48] sm:$0xff] }
0x298d   :  { %v7513_v28 = vld [vmem:[#allocation3 + $0x58] sm:$0xff] }
0x298e   :  { %3577 = vrot.lane.b32.xlu0 %v3491_v51, %s6613_s0  ;;  %v3569_v48 = vadd.f32 %v3491_v51, %v6879_v9  ;;  %v7509_v51 = vld [vmem:[#allocation3 + $0x50] sm:$0xff] }
0x2990   :  { %v5395_v60 = vmul.f32 -1.442695, %v3569_v48 }
0x2992   :  { %6497 = vpow2.f32 %v5395_v60  ;;  %v3635_v60 = vld [vmem:[#allocation4 + $0x1d3] ss:$0 sm:$0xff] }
0x2993   :  { %v3565_v52 = vpop.f32.mrb[38].mxu1 }
0x2994   :  { %v3566_v17 = vadd.f32 %v6582_v58, %v3565_v52  ;;  %v5971_v41 = vpop.f32.mrb[39].mxu1  ;;  %v7517_v52 = vld [vmem:[#allocation3 + $0x60] sm:$0xff]  ;;  %v7521_v58 = vld [vmem:[#allocation3 + $0x68] sm:$0xff] }
0x2996   :  { %3603 = vrot.lane.b32.xlu1 %v3566_v17, %s6613_s0  ;;  %v3595_v57 = vadd.f32 %v3566_v17, %v6778_v40  ;;  %v7525_v17 = vld [vmem:[#allocation3 + $0x70] sm:$0xff] }
0x2998   :  { %v5396_v56 = vmul.f32 -1.442695, %v3595_v57 }
0x299a   :  { %6499 = vpow2.f32 %v5396_v56 }
0x299c   :  { %v6498_v55 = vpop.eup %6497 }
0x299d   :  { %v3573_v44 = vadd.f32 1.0, %v6498_v55 }
0x299f   :  { %6501 = vrcp.f32 %v3573_v44 }
0x29a4   :  { %v6500_v53 = vpop.eup %6499 }
0x29a5   :  { %v3599_v50 = vadd.f32 1.0, %v6500_v53 }
0x29a7   :  { %6503 = vrcp.f32 %v3599_v50 }
0x29a9   :  { %v6502_v42 = vpop.eup %6501 }
0x29aa   :  { %v3593_v3 = vmul.f32 %v6502_v42, %v7437_v25  ;;  %v7473_v25 = vld [vmem:[#allocation3 + $0x8] sm:$0xff] }
0x29b1   :  { %v6504_v5 = vpop.eup %6503 }
0x29b2   :  { %v3613_v31 = vsub.f32 1.0, %v6504_v5  ;;  %v3619_v29 = vmul.f32 %v6504_v5, %v7442_v13  ;;  %v7489_v13 = vld [vmem:[#allocation3 + $0x28] sm:$0xff] }
0x2a00   :  { %v3578_v7 = vpop.permute.xlu0 %3577 }
0x2a01   :  { %v3580_v45 = vmul.f32 %v6502_v42, %v3578_v7 }
0x2a03   :  { %3582 = vrot.lane.b32.xlu0 %v3580_v45, %s6613_s0 }
0x2a08   :  { %v3604_v38 = vpop.permute.xlu1 %3603 }
0x2a09   :  { %v3606_v54 = vmul.f32 %v6504_v5, %v3604_v38 }
0x2a0b   :  { %3608 = vrot.lane.b32.xlu1 %v3606_v54, %s6613_s0 }
0x2a75   :  { %v3583_v10 = vpop.permute.xlu0 %3582 }
0x2a76   :  { %v3585_v12 = vadd.f32 %v3583_v10, %v6879_v9  ;;  %v3633_v9 = vld [vmem:[#allocation4 + $0xf0] sm:$0xff] }
0x2a77   :  { %v6235_v4 = vpack.c.bf16 %v3634_v61, %v3633_v9 }
0x2a78   :  { %6505 = vtanh.f32 %v3585_v12 }
0x2a79   :  { %6236 = vmatprep.subr.bf16.mxu0 %v6235_v4 }
0x2a7a   :  { %6238 = vmatpush3.bf16.msra.mxu0 %v6235_v4 }
0x2a7d   :  { %v3609_v59 = vpop.permute.xlu1 %3608 }
0x2a7e   :  { %v3611_v2 = vadd.f32 %v3609_v59, %v6778_v40  ;;  %v3587_v40 = vsub.f32 1.0, %v6502_v42 }
0x2a80   :  { %6507 = vtanh.f32 %v3611_v2 }
0x2a82   :  { %v6506_v36 = vpop.eup %6505 }
0x2a83   :  { %3589 = vrot.lane.b32.xlu0 %v6506_v36, %s6614_s29 }
0x2a8a   :  { %v6508_v35 = vpop.eup %6507 }
0x2a8b   :  { %3615 = vrot.lane.b32.xlu1 %v6508_v35, %s6614_s29 }
0x2af5   :  { %v3590_v22 = vpop.permute.xlu0 %3589 }
0x2af6   :  { %v3592_v6 = vmul.f32 %v3590_v22, %v3587_v40 }
0x2af8   :  { %v3594_v39 = vadd.f32 %v3593_v3, %v3592_v6 }
0x2afa   :  { %3622 = vrot.lane.b32.xlu0 %v3594_v39, %s6614_s29 }
0x2afd   :  { %v3616_v11 = vpop.permute.xlu1 %3615 }
0x2afe   :  { %v3618_v20 = vmul.f32 %v3616_v11, %v3613_v31 }
0x2b00   :  { %v3620_v8 = vadd.f32 %v3619_v29, %v3618_v20 }
0x2b02   :  { %3626 = vst.msk [vmem:[#allocation3] sm:$0xff] %vm520_vm3, %v3620_v8  ;;  %v7467_v27 = vadd.f32 %v3620_v8, %v3594_v39 }
0x2b09   :  { %v7469_v62 = vld [vmem:[#allocation3] sm:$0xff] }
0x2b0a   :  { %5988 = vmatprep.mubr.msk.f32.mxu0 %vm3652_vm5, %v7469_v62 }
0x2b0b   :  { %5989 = vmatmul.mubr.msk.f32.vlgmr.msra.gmra.mrb[56].mxu0 %vm3652_vm5, %v7473_v25 }
0x2b0c   :  { %5991 = vmatprep.mubr.msk.f32.mxu0 %vm3652_vm5, %v7477_v16 }
0x2b0f   :  { %5992 = vmatmul.mubr.msk.f32.gmra.mrb[58].mxu0 %vm3652_vm5, %v7481_v47 }
0x2b10   :  { %5994 = vmatprep.mubr.msk.f32.mxu0 %vm3652_vm5, %v7485_v21 }
0x2b13   :  { %5995 = vmatmul.mubr.msk.f32.gmra.mrb[60].mxu0 %vm3652_vm5, %v7489_v13 }
0x2b14   :  { %5997 = vmatprep.mubr.msk.f32.mxu0 %vm3652_vm5, %v7493_v23 }
0x2b17   :  { %5998 = vmatmul.mubr.msk.f32.gmra.mrb[62].mxu0 %vm3652_vm5, %v7497_v19 }
0x2b18   :  { %6000 = vmatprep.mubr.msk.f32.mxu0 %vm3652_vm5, %v7501_v30 }
0x2b1b   :  { %6001 = vmatmul.mubr.msk.f32.gmra.mrb[64].mxu0 %vm3652_vm5, %v7505_v49 }
0x2b1c   :  { %6003 = vmatprep.mubr.msk.f32.mxu0 %vm3652_vm5, %v7509_v51 }
0x2b1f   :  { %6004 = vmatmul.mubr.msk.f32.gmra.mrb[66].mxu0 %vm3652_vm5, %v7513_v28 }
0x2b20   :  { %6006 = vmatprep.mubr.msk.f32.mxu0 %vm3652_vm5, %v7517_v52 }
0x2b23   :  { %6007 = vmatmul.mubr.msk.f32.gmra.mrb[68].mxu0 %vm3652_vm5, %v7521_v58 }
0x2b24   :  { %6009 = vmatprep.mubr.msk.f32.mxu0 %vm3652_vm5, %v7525_v17 }
0x2b6c   :  { %v3623_v41 = vpop.permute.xlu0 %3622 }
0x2b6d   :  { %3625 = vst.msk [vmem:[#allocation3 + $0x78] sm:$0xff] %vm319_vm4, %v3623_v41 }
0x2b74   :  { %v7530_v48 = vld [vmem:[#allocation3 + $0x78] sm:$0xff] }
0x2b75   :  { %6010 = vmatmul.mubr.msk.f32.gmra.mrb[70].mxu0 %vm3652_vm5, %v7530_v48 }
0x2b76   :  { %4688 = vmatprep.mubr.f32.mxu0 %v6611_v1 }
0x2bde   :  { %v5990_v57 = vpop.f32.mrb[56].mxu0 }
0x2bdf   :  { %v3773_v56 = vadd.f32 %v5990_v57, %v3635_v60  ;;  %v3767_v55 = vpop.f32.mrb[57].mxu0 }
0x2be0   :  { %v3768_v44 = vadd.f32 %v3767_v55, %v3635_v60 }
0x2be2   :  { %v3846_v53 = vmax.f32 %v3768_v44, %v3773_v56  ;;  %v5993_v50 = vpop.f32.mrb[58].mxu0 }
0x2be3   :  { %v3777_v42 = vpop.f32.mrb[59].mxu0  ;;  %v3783_v45 = vadd.f32 %v5993_v50, %v3635_v60 }
0x2be4   :  { %v3778_v7 = vadd.f32 %v3777_v42, %v3635_v60 }
0x2be6   :  { %v3847_v5 = vmax.f32 %v3846_v53, %v3778_v7  ;;  %v5996_v38 = vpop.f32.mrb[60].mxu0 }
0x2be7   :  { %v3787_v54 = vpop.f32.mrb[61].mxu0  ;;  %v3793_v26 = vadd.f32 %v5996_v38, %v3635_v60 }
0x2be8   :  { %v3788_v10 = vadd.f32 %v3787_v54, %v3635_v60  ;;  %v3848_v12 = vmax.f32 %v3847_v5, %v3783_v45 }
0x2bea   :  { %v3849_v14 = vmax.f32 %v3848_v12, %v3788_v10  ;;  %v5999_v46 = vpop.f32.mrb[62].mxu0 }
0x2beb   :  { %v3797_v18 = vpop.f32.mrb[63].mxu0  ;;  %v3803_v63 = vadd.f32 %v5999_v46, %v3635_v60 }
0x2bec   :  { %v3798_v32 = vadd.f32 %v3797_v18, %v3635_v60  ;;  %v3850_v59 = vmax.f32 %v3849_v14, %v3793_v26 }
0x2bee   :  { %v3851_v2 = vmax.f32 %v3850_v59, %v3798_v32  ;;  %v6002_v24 = vpop.f32.mrb[64].mxu0 }
0x2bef   :  { %v3807_v43 = vpop.f32.mrb[65].mxu0  ;;  %v3813_v9 = vadd.f32 %v6002_v24, %v3635_v60 }
0x2bf0   :  { %v3808_v15 = vadd.f32 %v3807_v43, %v3635_v60  ;;  %v3852_v36 = vmax.f32 %v3851_v2, %v3803_v63 }
0x2bf2   :  { %v3853_v61 = vmax.f32 %v3852_v36, %v3808_v15  ;;  %v6005_v4 = vpop.f32.mrb[66].mxu0 }
0x2bf3   :  { %v3817_v35 = vpop.f32.mrb[67].mxu0  ;;  %v3823_v3 = vadd.f32 %v6005_v4, %v3635_v60 }
0x2bf4   :  { %v3818_v40 = vadd.f32 %v3817_v35, %v3635_v60  ;;  %v3854_v22 = vmax.f32 %v3853_v61, %v3813_v9 }
0x2bf6   :  { %v3855_v6 = vmax.f32 %v3854_v22, %v3818_v40  ;;  %v6008_v39 = vpop.f32.mrb[68].mxu0 }
0x2bf7   :  { %v3827_v31 = vpop.f32.mrb[69].mxu0  ;;  %v3833_v20 = vadd.f32 %v6008_v39, %v3635_v60 }
0x2bf8   :  { %v3828_v11 = vadd.f32 %v3827_v31, %v3635_v60  ;;  %v3856_v29 = vmax.f32 %v3855_v6, %v3823_v3 }
0x2bfa   :  { %v3857_v8 = vmax.f32 %v3856_v29, %v3828_v11 }
0x2bfc   :  { %v3858_v41 = vmax.f32 %v3857_v8, %v3833_v20 }
0x2c48   :  { %v6011_v57 = vpop.f32.mrb[70].mxu0 }
0x2c49   :  { %v3837_v55 = vpop.f32.mrb[71].mxu0  ;;  %v7535_v50 = vadd.f32 %v6011_v57, %v3635_v60 }
0x2c4a   :  { %v3838_v53 = vadd.f32 %v3837_v55, %v3635_v60 }
0x2c4c   :  { %v3859_v42 = vmax.f32 %v3858_v41, %v3838_v53 }
0x2c4e   :  { %v3860_v5 = vmax.f32 %v3859_v42, %v7535_v50 }
0x2c50   :  { %v3861_v38 = vsub.f32 %v3768_v44, %v3860_v5  ;;  %v3864_v54 = vsub.f32 %v3773_v56, %v3860_v5  ;;  %v3867_v12 = vsub.f32 %v3778_v7, %v3860_v5  ;;  %v3870_v14 = vsub.f32 %v3783_v45, %v3860_v5 }
0x2c51   :  { %v3873_v46 = vsub.f32 %v3788_v10, %v3860_v5  ;;  %v3876_v18 = vsub.f32 %v3793_v26, %v3860_v5  ;;  %v3879_v59 = vsub.f32 %v3798_v32, %v3860_v5  ;;  %v3882_v2 = vsub.f32 %v3803_v63, %v3860_v5 }
0x2c52   :  { %v3862_v24 = vmul.f32 1.442695, %v3861_v38  ;;  %v3865_v43 = vmul.f32 1.442695, %v3864_v54  ;;  %v3885_v36 = vsub.f32 %v3808_v15, %v3860_v5  ;;  %v3868_v61 = vmul.f32 1.442695, %v3867_v12 }
0x2c53   :  { %v3888_v4 = vsub.f32 %v3813_v9, %v3860_v5  ;;  %v3871_v60 = vmul.f32 1.442695, %v3870_v14  ;;  %v3891_v35 = vsub.f32 %v3818_v40, %v3860_v5  ;;  %v3894_v22 = vsub.f32 %v3823_v3, %v3860_v5 }
0x2c54   :  { %6509 = vpow2.f32 %v3862_v24  ;;  %v3897_v6 = vsub.f32 %v3828_v11, %v3860_v5  ;;  %v3900_v39 = vsub.f32 %v3833_v20, %v3860_v5  ;;  %v3903_v44 = vsub.f32 %v3838_v53, %v3860_v5 }
0x2c55   :  { %6511 = vpow2.f32 %v3865_v43  ;;  %v3874_v56 = vmul.f32 1.442695, %v3873_v46  ;;  %v3906_v7 = vsub.f32 %v7535_v50, %v3860_v5  ;;  %v3877_v45 = vmul.f32 1.442695, %v3876_v18 }
0x2c56   :  { %6513 = vpow2.f32 %v3868_v61  ;;  %v3880_v10 = vmul.f32 1.442695, %v3879_v59  ;;  %v3883_v26 = vmul.f32 1.442695, %v3882_v2  ;;  %v3886_v15 = vmul.f32 1.442695, %v3885_v36 }
0x2c57   :  { %6515 = vpow2.f32 %v3871_v60  ;;  %v3889_v3 = vmul.f32 1.442695, %v3888_v4  ;;  %v3892_v29 = vmul.f32 1.442695, %v3891_v35  ;;  %v3895_v41 = vmul.f32 1.442695, %v3894_v22 }
0x2c58   :  { %6517 = vpow2.f32 %v3874_v56  ;;  %v3898_v53 = vmul.f32 1.442695, %v3897_v6  ;;  %v3901_v5 = vmul.f32 1.442695, %v3900_v39  ;;  %v3904_v12 = vmul.f32 1.442695, %v3903_v44 }
0x2c59   :  { %6519 = vpow2.f32 %v3877_v45  ;;  %v3907_v18 = vmul.f32 1.442695, %v3906_v7 }
0x2c5a   :  { %6521 = vpow2.f32 %v3880_v10 }
0x2c5b   :  { %6523 = vpow2.f32 %v3883_v26 }
0x2c5c   :  { %6525 = vpow2.f32 %v3886_v15 }
0x2c5d   :  { %6527 = vpow2.f32 %v3889_v3 }
0x2c5e   :  { %v6510_v32 = vpop.eup %6509  ;;  %6529 = vpow2.f32 %v3892_v29 }
0x2c5f   :  { %v6512_v63 = vpop.eup %6511  ;;  %6531 = vpow2.f32 %v3895_v41 }
0x2c60   :  { %v3909_v9 = vadd.f32 %v6512_v63, %v6510_v32  ;;  %v6514_v40 = vpop.eup %6513  ;;  %6533 = vpow2.f32 %v3898_v53 }
0x2c61   :  { %v6516_v11 = vpop.eup %6515  ;;  %6535 = vpow2.f32 %v3901_v5 }
0x2c62   :  { %v3910_v31 = vadd.f32 %v6514_v40, %v3909_v9  ;;  %v6518_v8 = vpop.eup %6517  ;;  %6537 = vpow2.f32 %v3904_v12 }
0x2c63   :  { %v6520_v55 = vpop.eup %6519  ;;  %6539 = vpow2.f32 %v3907_v18 }
0x2c64   :  { %v3911_v20 = vadd.f32 %v6516_v11, %v3910_v31  ;;  %v6522_v42 = vpop.eup %6521 }
0x2c65   :  { %v6524_v54 = vpop.eup %6523 }
0x2c66   :  { %v3912_v57 = vadd.f32 %v6518_v8, %v3911_v20  ;;  %v6526_v46 = vpop.eup %6525 }
0x2c67   :  { %v6528_v2 = vpop.eup %6527 }
0x2c68   :  { %v3913_v50 = vadd.f32 %v6520_v55, %v3912_v57  ;;  %v6530_v43 = vpop.eup %6529 }
0x2c69   :  { %v6532_v61 = vpop.eup %6531 }
0x2c6a   :  { %v3914_v38 = vadd.f32 %v6522_v42, %v3913_v50  ;;  %v6534_v60 = vpop.eup %6533 }
0x2c6b   :  { %v6536_v22 = vpop.eup %6535 }
0x2c6c   :  { %v3915_v14 = vadd.f32 %v6524_v54, %v3914_v38  ;;  %v6538_v39 = vpop.eup %6537 }
0x2c6d   :  { %v6540_v44 = vpop.eup %6539 }
0x2c6e   :  { %v3916_v59 = vadd.f32 %v6526_v46, %v3915_v14 }
0x2c70   :  { %v3917_v24 = vadd.f32 %v6528_v2, %v3916_v59 }
0x2c72   :  { %v3918_v36 = vadd.f32 %v6530_v43, %v3917_v24 }
0x2c74   :  { %v3919_v4 = vadd.f32 %v6532_v61, %v3918_v36 }
0x2c76   :  { %v3920_v35 = vadd.f32 %v6534_v60, %v3919_v4  ;;  %v4053_v4 = vld [vmem:[#allocation4 + $0x110] sm:$0xff] }
0x2c78   :  { %v3921_v6 = vadd.f32 %v6536_v22, %v3920_v35 }
0x2c7a   :  { %v3922_v56 = vadd.f32 %v6538_v39, %v3921_v6  ;;  %v4056_v6 = vld [vmem:[#allocation4 + $0x140] sm:$0xff] }
0x2c7c   :  { %v3923_v45 = vadd.f32 %v6540_v44, %v3922_v56  ;;  %v4057_v56 = vld [vmem:[#allocation4 + $0x150] sm:$0xff] }
0x2c7e   :  { %6541 = vrcp.f32 %v3923_v45  ;;  %v4059_v45 = vld [vmem:[#allocation4 + $0x170] sm:$0xff] }
0x2c88   :  { %v6542_v10 = vpop.eup %6541 }
0x2c89   :  { %v3934_v7 = vmul.f32 %v6542_v10, %v6512_v63  ;;  %v3926_v26 = vmul.f32 %v6542_v10, %v6510_v32  ;;  %v3942_v15 = vmul.f32 %v6542_v10, %v6514_v40  ;;  %v3950_v9 = vmul.f32 %v6542_v10, %v6516_v11 }
0x2c8a   :  { %v3958_v3 = vmul.f32 %v6542_v10, %v6518_v8  ;;  %v3966_v31 = vmul.f32 %v6542_v10, %v6520_v55  ;;  %v3974_v29 = vmul.f32 %v6542_v10, %v6522_v42  ;;  %v3982_v20 = vmul.f32 %v6542_v10, %v6524_v54 }
0x2c8b   :  { %v3935_v41 = vsel %vm3652_vm5, %v3934_v7, 0.0  ;;  %v3927_v57 = vsel %vm3652_vm5, %v3926_v26, 0.0  ;;  %v3990_v53 = vmul.f32 %v6542_v10, %v6526_v46  ;;  %v3998_v50 = vmul.f32 %v6542_v10, %v6528_v2  ;;  %v4060_v7 = vld [vmem:[#allocation4 + $0x180] sm:$0xff]  ;;  %v4136_v26 = vld [vmem:[#allocation4 + $0x198] sm:$0xff] }
0x2c8c   :  { %3936 = vadd.xlane.f32.xlu0 %v3935_v41  ;;  %3928 = vadd.xlane.f32.xlu1 %v3927_v57  ;;  %v4006_v5 = vmul.f32 %v6542_v10, %v6530_v43  ;;  %v4014_v38 = vmul.f32 %v6542_v10, %v6532_v61  ;;  %v4022_v12 = vmul.f32 %v6542_v10, %v6534_v60  ;;  %v3943_v40 = vsel %vm3652_vm5, %v3942_v15, 0.0  ;;  %v4054_v60 = vld [vmem:[#allocation4 + $0x120] sm:$0xff]  ;;  %v4138_v15 = vld [vmem:[#allocation4 + $0x1a8] sm:$0xff]  ;;  %v4140_v41 = vld [vmem:[#allocation4 + $0x1b8] sm:$0xff] }
0x2c8d   :  { %v4030_v14 = vmul.f32 %v6542_v10, %v6536_v22  ;;  %v4038_v63 = vmul.f32 %v6542_v10, %v6538_v39  ;;  %v4046_v32 = vmul.f32 %v6542_v10, %v6540_v44  ;;  %v3951_v11 = vsel %vm3652_vm5, %v3950_v9, 0.0  ;;  %v4055_v22 = vld [vmem:[#allocation4 + $0x130] sm:$0xff]  ;;  %v4058_v44 = vld [vmem:[#allocation4 + $0x160] sm:$0xff]  ;;  %v4142_v57 = vld [vmem:[#allocation4 + $0x1c8] sm:$0xff] }
0x2c8e   :  { %v3959_v8 = vsel %vm3652_vm5, %v3958_v3, 0.0  ;;  %v3967_v55 = vsel %vm3652_vm5, %v3966_v31, 0.0  ;;  %v3975_v42 = vsel %vm3652_vm5, %v3974_v29, 0.0  ;;  %v3983_v54 = vsel %vm3652_vm5, %v3982_v20, 0.0  ;;  %v4135_v3 = vld [vmem:[#allocation4 + $0x190] sm:$0xff]  ;;  %v4137_v31 = vld [vmem:[#allocation4 + $0x1a0] sm:$0xff] }
0x2c8f   :  { %v3991_v46 = vsel %vm3652_vm5, %v3990_v53, 0.0  ;;  %v3999_v18 = vsel %vm3652_vm5, %v3998_v50, 0.0  ;;  %v4007_v59 = vsel %vm3652_vm5, %v4006_v5, 0.0  ;;  %v4015_v2 = vsel %vm3652_vm5, %v4014_v38, 0.0  ;;  %v4139_v50 = vld [vmem:[#allocation4 + $0x1b0] sm:$0xff]  ;;  %v4141_v5 = vld [vmem:[#allocation4 + $0x1c0] sm:$0xff] }
0x2c90   :  { %3944 = vadd.xlane.f32.xlu0 %v3943_v40  ;;  %3952 = vadd.xlane.f32.xlu1 %v3951_v11  ;;  %v4023_v24 = vsel %vm3652_vm5, %v4022_v12, 0.0  ;;  %v4031_v43 = vsel %vm3652_vm5, %v4030_v14, 0.0  ;;  %v4039_v36 = vsel %vm3652_vm5, %v4038_v63, 0.0  ;;  %v4047_v61 = vsel %vm3652_vm5, %v4046_v32, 0.0 }
0x2c91   :  { %v6240_v35 = vpack.c.bf16 %v4054_v60, %v4053_v4  ;;  %v6243_v39 = vpack.c.bf16 %v4056_v6, %v4055_v22  ;;  %v6246_v10 = vpack.c.bf16 %v4058_v44, %v4057_v56  ;;  %v7559_v9 = vpack.c.bf16 %v4138_v15, %v4136_v26 }
0x2c92   :  { %v6249_v29 = vpack.c.bf16 %v4060_v7, %v4059_v45  ;;  %v7561_v20 = vpack.c.bf16 %v4137_v31, %v4135_v3  ;;  %v7564_v53 = vpack.c.bf16 %v4142_v57, %v4140_v41  ;;  %v7569_v38 = vpack.c.bf16 %v4141_v5, %v4139_v50 }
0x2c93   :  { %6241 = vmatpush3.bf16.msra.mxu1 %v6240_v35  ;;  %6276 = vmatprep.subr.bf16.mxu0 %v7559_v9 }
0x2c94   :  { %3960 = vadd.xlane.f32.xlu0 %v3959_v8  ;;  %3968 = vadd.xlane.f32.xlu1 %v3967_v55 }
0x2c95   :  { %6242 = vmatprep.subr.bf16.mxu1 %v6610_v0  ;;  %6278 = vmatpush1.bf16.msra.mxu0 %v7561_v20 }
0x2c96   :  { %6280 = vmatprep.subr.bf16.mxu0 %v7564_v53 }
0x2c97   :  { %6244 = vmatpush3.bf16.msra.mxu1 %v6243_v39 }
0x2c98   :  { %3976 = vadd.xlane.f32.xlu0 %v3975_v42  ;;  %3984 = vadd.xlane.f32.xlu1 %v3983_v54 }
0x2c99   :  { %6245 = vmatprep.subr.bf16.mxu1 %v6610_v0  ;;  %6282 = vmatpush1.bf16.msra.mxu0 %v7569_v38 }
0x2c9a   :  { %6292 = vmatprep.subr.bf16.mxu0 %v7559_v9 }
0x2c9b   :  { %6247 = vmatpush3.bf16.msra.mxu1 %v6246_v10 }
0x2c9c   :  { %3992 = vadd.xlane.f32.xlu0 %v3991_v46  ;;  %4000 = vadd.xlane.f32.xlu1 %v3999_v18 }
0x2c9d   :  { %6248 = vmatprep.subr.bf16.mxu1 %v6610_v0 }
0x2c9f   :  { %6250 = vmatpush3.bf16.msra.mxu1 %v6249_v29 }
0x2ca0   :  { %4008 = vadd.xlane.f32.xlu0 %v4007_v59  ;;  %4016 = vadd.xlane.f32.xlu1 %v4015_v2 }
0x2ca1   :  { %6252 = vmatprep.subr.bf16.mxu1 %v7559_v9 }
0x2ca4   :  { %4024 = vadd.xlane.f32.xlu0 %v4023_v24  ;;  %4032 = vadd.xlane.f32.xlu1 %v4031_v43 }
0x2ca8   :  { %4040 = vadd.xlane.f32.xlu0 %v4039_v36  ;;  %4048 = vadd.xlane.f32.xlu1 %v4047_v61 }
0x2cbe   :  { %4158 = vrot.lane.b32.xlu0 %v7467_v27, %s6614_s29 }
0x2d19   :  { %v3937_v0 = vpop.xlane.xlu0 %3936  ;;  %v3929_v12 = vpop.xlane.xlu1 %3928 }
0x2d1a   :  { %v3938_v14 = vmul.f32 0.015625, %v3937_v0  ;;  %v3930_v63 = vmul.f32 0.015625, %v3929_v12 }
0x2d1c   :  { %v3940_v32 = vmul.f32 %v3938_v14, %v7473_v25  ;;  %v3932_v40 = vmul.f32 %v3930_v63, %v7469_v62 }
0x2d1d   :  { %v3945_v11 = vpop.xlane.xlu0 %3944  ;;  %v3953_v8 = vpop.xlane.xlu1 %3952 }
0x2d1e   :  { %v3946_v55 = vmul.f32 0.015625, %v3945_v11  ;;  %v3954_v42 = vmul.f32 0.015625, %v3953_v8  ;;  %v3941_v54 = vadd.f32 %v3940_v32, %v3932_v40 }
0x2d20   :  { %v3948_v46 = vmul.f32 %v3946_v55, %v7477_v16  ;;  %v3956_v24 = vmul.f32 %v3954_v42, %v7481_v47 }
0x2d21   :  { %v3961_v18 = vpop.xlane.xlu0 %3960  ;;  %v3969_v59 = vpop.xlane.xlu1 %3968 }
0x2d22   :  { %v3949_v2 = vadd.f32 %v3948_v46, %v3941_v54  ;;  %v3962_v43 = vmul.f32 0.015625, %v3961_v18  ;;  %v3970_v36 = vmul.f32 0.015625, %v3969_v59 }
0x2d24   :  { %v3957_v61 = vadd.f32 %v3956_v24, %v3949_v2  ;;  %v3964_v4 = vmul.f32 %v3962_v43, %v7485_v21  ;;  %v3972_v35 = vmul.f32 %v3970_v36, %v7489_v13  ;;  %v4061_v43 = vld [vmem:[#allocation4 + $0x1d4] ss:$0 sm:$0xff] }
0x2d25   :  { %v3977_v25 = vpop.xlane.xlu0 %3976  ;;  %v3985_v60 = vpop.xlane.xlu1 %3984 }
0x2d26   :  { %v3965_v62 = vadd.f32 %v3964_v4, %v3957_v61  ;;  %v3978_v22 = vmul.f32 0.015625, %v3977_v25  ;;  %v3986_v6 = vmul.f32 0.015625, %v3985_v60 }
0x2d28   :  { %v3973_v39 = vadd.f32 %v3972_v35, %v3965_v62  ;;  %v3980_v16 = vmul.f32 %v3978_v22, %v7493_v23  ;;  %v3988_v47 = vmul.f32 %v3986_v6, %v7497_v19 }
0x2d29   :  { %v3993_v56 = vpop.xlane.xlu0 %3992  ;;  %v4001_v44 = vpop.xlane.xlu1 %4000 }
0x2d2a   :  { %v3981_v45 = vadd.f32 %v3980_v16, %v3973_v39  ;;  %v3994_v10 = vmul.f32 0.015625, %v3993_v56  ;;  %v4002_v7 = vmul.f32 0.015625, %v4001_v44 }
0x2d2c   :  { %v3989_v26 = vadd.f32 %v3988_v47, %v3981_v45  ;;  %v3996_v21 = vmul.f32 %v3994_v10, %v7501_v30  ;;  %v4004_v13 = vmul.f32 %v4002_v7, %v7505_v49 }
0x2d2d   :  { %v4009_v15 = vpop.xlane.xlu0 %4008  ;;  %v4017_v3 = vpop.xlane.xlu1 %4016 }
0x2d2e   :  { %v3997_v31 = vadd.f32 %v3996_v21, %v3989_v26  ;;  %v4010_v29 = vmul.f32 0.015625, %v4009_v15  ;;  %v4018_v41 = vmul.f32 0.015625, %v4017_v3 }
0x2d30   :  { %v4005_v57 = vadd.f32 %v4004_v13, %v3997_v31  ;;  %v4012_v23 = vmul.f32 %v4010_v29, %v7509_v51  ;;  %v4020_v19 = vmul.f32 %v4018_v41, %v7513_v28 }
0x2d31   :  { %v4025_v50 = vpop.xlane.xlu0 %4024  ;;  %v4033_v5 = vpop.xlane.xlu1 %4032 }
0x2d32   :  { %v4013_v0 = vadd.f32 %v4012_v23, %v4005_v57  ;;  %v4026_v12 = vmul.f32 0.015625, %v4025_v50  ;;  %v4034_v14 = vmul.f32 0.015625, %v4033_v5 }
0x2d34   :  { %v4021_v63 = vadd.f32 %v4020_v19, %v4013_v0  ;;  %v4028_v30 = vmul.f32 %v4026_v12, %v7517_v52  ;;  %v4036_v49 = vmul.f32 %v4034_v14, %v7521_v58 }
0x2d35   :  { %v4041_v32 = vpop.xlane.xlu0 %4040  ;;  %v4049_v40 = vpop.xlane.xlu1 %4048 }
0x2d36   :  { %v4029_v11 = vadd.f32 %v4028_v30, %v4021_v63  ;;  %v4042_v8 = vmul.f32 0.015625, %v4041_v32  ;;  %v4050_v55 = vmul.f32 0.015625, %v4049_v40 }
0x2d38   :  { %v4037_v42 = vadd.f32 %v4036_v49, %v4029_v11  ;;  %v4044_v51 = vmul.f32 %v4042_v8, %v7525_v17  ;;  %v4051_v46 = vmul.f32 %v4050_v55, %v7530_v48  ;;  %v4144_v17 = vld [vmem:[#allocation4 + $0x1d5] ss:$8 sm:$0x3] }
0x2d39   :  { %v4159_v28 = vpop.permute.xlu0 %4158  ;;  %v7603_v48 = vrot.slane %v4144_v17, %v6773_v37  ;;  %v7631_v15 = vrot.slane %v4144_v17, %v54_v34 }
0x2d3a   :  { %v4045_v54 = vadd.f32 %v4044_v51, %v4037_v42 }
0x2d3c   :  { %v4052_v18 = vadd.f32 %v4051_v46, %v4045_v54 }
0x2d3e   :  { %6029 = vmatmul.mubr.msk.f32.vlgmr.msra.gmra.mrb[40].mxu1 %vm3652_vm5, %v4052_v18 }
0x2d3f   :  { %6254 = vmatpush1.bf16.msra.mxu1 %v7561_v20  ;;  %4226 = vmatprep.mubr.f32.mxu1 %v6611_v1 }
0x2d40   :  { %6256 = vmatprep.subr.bf16.mxu1 %v7564_v53 }
0x2d43   :  { %6258 = vmatpush1.bf16.msra.mxu1 %v7569_v38 }
0x2d44   :  { %6260 = vmatprep.subr.bf16.mxu1 %v7559_v9 }
0x2d46   :  { %5414 = vmatmul.mubr.msk.f32.vlgmr.msra.gmra.mrb[42].mxu1 %vm319_vm4, %v4159_v28 }
0x2d47   :  { %6262 = vmatpush1.bf16.msra.mxu1 %v7561_v20  ;;  %4328 = vmatprep.mubr.f32.mxu1 %v6611_v1 }
0x2d48   :  { %6264 = vmatprep.subr.bf16.mxu1 %v7564_v53 }
0x2d4b   :  { %6266 = vmatpush1.bf16.msra.mxu1 %v7569_v38 }
0x2d4c   :  { %6268 = vmatprep.subr.bf16.mxu1 %v7559_v9 }
0x2e11   :  { %v4131_v52 = vpop.f32.mrb[40].mxu1 }
0x2e12   :  { %v6030_v58 = vpop.f32.mrb[41].mxu1  ;;  %v7607_v36 = vadd.f32 %v4131_v52, %v4061_v43 }
0x2e19   :  { %v4228_v59 = vpop.f32.mrb[42].mxu1 }
0x2e1a   :  { %v4229_v2 = vadd.f32 %v4228_v59, %v7603_v48  ;;  %v4230_v24 = vpop.f32.mrb[43].mxu1 }
0x2e1c   :  { %4241 = vrot.lane.b32.xlu1 %v4229_v2, %s6613_s0  ;;  %v4233_v61 = vadd.f32 %v4229_v2, %v7607_v36 }
0x2e1e   :  { %v5415_v4 = vmul.f32 -1.442695, %v4233_v61 }
0x2e20   :  { %6543 = vpow2.f32 %v5415_v4 }
0x2e2a   :  { %v6544_v25 = vpop.eup %6543 }
0x2e2b   :  { %v4237_v60 = vadd.f32 1.0, %v6544_v25 }
0x2e2d   :  { %6545 = vrcp.f32 %v4237_v60 }
0x2e37   :  { %v6546_v62 = vpop.eup %6545 }
0x2e38   :  { %v4251_v56 = vsub.f32 1.0, %v6546_v62  ;;  %v4257_v45 = vmul.f32 %v6546_v62, %v7467_v27 }
0x2e8e   :  { %v4242_v35 = vpop.permute.xlu1 %4241 }
0x2e8f   :  { %v4244_v22 = vmul.f32 %v6546_v62, %v4242_v35 }
0x2e91   :  { %4246 = vrot.lane.b32.xlu1 %v4244_v22, %s6613_s0 }
0x2f03   :  { %v4247_v6 = vpop.permute.xlu1 %4246 }
0x2f04   :  { %v4249_v39 = vadd.f32 %v4247_v6, %v7607_v36 }
0x2f06   :  { %6547 = vtanh.f32 %v4249_v39 }
0x2f10   :  { %v6548_v16 = vpop.eup %6547 }
0x2f11   :  { %4253 = vrot.lane.b32.xlu0 %v6548_v16, %s6614_s29 }
0x2f83   :  { %v4254_v44 = vpop.permute.xlu0 %4253 }
0x2f84   :  { %v4256_v47 = vmul.f32 %v4254_v44, %v4251_v56 }
0x2f86   :  { %v7614_v10 = vadd.f32 %v4257_v45, %v4256_v47 }
0x2f88   :  { %4260 = vrot.lane.b32.xlu1 %v7614_v10, %s6614_s29 }
0x2ffa   :  { %v4261_v7 = vpop.permute.xlu1 %4260 }
0x2ffb   :  { %5416 = vmatmul.mubr.msk.f32.vlgmr.msra.gmra.mrb[44].mxu1 %vm319_vm4, %v4261_v7 }
0x2ffc   :  { %6270 = vmatpush1.bf16.msra.mxu1 %v7561_v20  ;;  %4509 = vmatprep.mubr.f32.mxu1 %v6611_v1 }
0x2ffd   :  { %6272 = vmatprep.subr.bf16.mxu1 %v7564_v53 }
0x3000   :  { %6274 = vmatpush1.bf16.msra.mxu1 %v7569_v38 }
0x3001   :  { %6284 = vmatprep.subr.bf16.mxu1 %v7559_v9 }
0x30ce   :  { %v4330_v27 = vpop.f32.mrb[44].mxu1 }
0x30cf   :  { %v7625_v26 = vadd.f32 %v4330_v27, %v7603_v48  ;;  %v4332_v21 = vpop.f32.mrb[45].mxu1 }
0x30d0   :  { %v4333_v3 = vadd.f32 %v4332_v21, %v7631_v15 }
0x30d1   :  { %4422 = vrot.lane.b32.xlu0 %v7625_v26, %s6613_s0 }
0x30d2   :  { %v4414_v31 = vadd.f32 %v4333_v3, %v7607_v36 }
0x30d4   :  { %v4415_v13 = vadd.f32 %v4414_v31, %v7625_v26 }
0x30d6   :  { %v5417_v29 = vmul.f32 -1.442695, %v4415_v13 }
0x30d8   :  { %6549 = vpow2.f32 %v5417_v29 }
0x30e2   :  { %v6550_v41 = vpop.eup %6549 }
0x30e3   :  { %v4419_v57 = vadd.f32 1.0, %v6550_v41 }
0x30e5   :  { %6551 = vrcp.f32 %v4419_v57 }
0x30ef   :  { %v6552_v23 = vpop.eup %6551 }
0x30f0   :  { %v4432_v12 = vsub.f32 1.0, %v6552_v23  ;;  %v4438_v63 = vmul.f32 %v6552_v23, %v7614_v10 }
0x3143   :  { %v4423_v50 = vpop.permute.xlu0 %4422 }
0x3144   :  { %v4425_v5 = vmul.f32 %v6552_v23, %v4423_v50 }
0x3146   :  { %4427 = vrot.lane.b32.xlu1 %v4425_v5, %s6613_s0 }
0x31b8   :  { %v4428_v0 = vpop.permute.xlu1 %4427 }
0x31b9   :  { %v4430_v19 = vadd.f32 %v4428_v0, %v4414_v31 }
0x31bb   :  { %6553 = vtanh.f32 %v4430_v19 }
0x31c5   :  { %v6554_v34 = vpop.eup %6553 }
0x31c6   :  { %4434 = vrot.lane.b32.xlu0 %v6554_v34, %s6614_s29 }
0x3238   :  { %v4435_v14 = vpop.permute.xlu0 %4434 }
0x3239   :  { %v4437_v30 = vmul.f32 %v4435_v14, %v4432_v12 }
0x323b   :  { %v7639_v32 = vadd.f32 %v4438_v63, %v4437_v30 }
0x323d   :  { %4441 = vrot.lane.b32.xlu1 %v7639_v32, %s6614_s29 }
0x32af   :  { %v4442_v40 = vpop.permute.xlu1 %4441 }
0x32b0   :  { %5418 = vmatmul.mubr.msk.f32.vlgmr.msra.gmra.mrb[46].mxu1 %vm319_vm4, %v4442_v40 }
0x32b1   :  { %6286 = vmatpush1.bf16.msra.mxu1 %v7561_v20  ;;  %4867 = vmatprep.mubr.f32.mxu1 %v6611_v1 }
0x32b2   :  { %6288 = vmatprep.subr.bf16.mxu1 %v7564_v53 }
0x32b5   :  { %6290 = vmatpush1.bf16.msra.mxu1 %v7569_v38 }
0x32b6   :  { %6300 = vmatprep.subr.bf16.mxu1 %v7559_v9 }
0x3383   :  { %v4511_v11 = vpop.f32.mrb[46].mxu1 }
0x3384   :  { %v7650_v49 = vadd.f32 %v4511_v11, %v7603_v48  ;;  %v4513_v8 = vpop.f32.mrb[47].mxu1 }
0x3385   :  { %v4514_v55 = vadd.f32 %v4513_v8, %v7631_v15 }
0x3386   :  { %4601 = vrot.lane.b32.xlu0 %v7650_v49, %s6613_s0 }
0x3387   :  { %v4593_v42 = vadd.f32 %v4514_v55, %v7607_v36 }
0x3389   :  { %v4594_v51 = vadd.f32 %v4593_v42, %v7650_v49 }
0x338b   :  { %v5419_v54 = vmul.f32 -1.442695, %v4594_v51 }
0x338d   :  { %6555 = vpow2.f32 %v5419_v54 }
0x3397   :  { %v6556_v46 = vpop.eup %6555 }
0x3398   :  { %v4598_v18 = vadd.f32 1.0, %v6556_v46 }
0x339a   :  { %6557 = vrcp.f32 %v4598_v18 }
0x33a4   :  { %v6558_v9 = vpop.eup %6557 }
0x33a5   :  { %v4611_v2 = vsub.f32 1.0, %v6558_v9  ;;  %v4617_v43 = vmul.f32 %v6558_v9, %v7639_v32 }
0x33f8   :  { %v4602_v28 = vpop.permute.xlu0 %4601 }
0x33f9   :  { %v4604_v52 = vmul.f32 %v6558_v9, %v4602_v28 }
0x33fb   :  { %4606 = vrot.lane.b32.xlu1 %v4604_v52, %s6613_s0 }
0x346d   :  { %v4607_v58 = vpop.permute.xlu1 %4606 }
0x346e   :  { %v4609_v17 = vadd.f32 %v4607_v58, %v4593_v42 }
0x3470   :  { %6559 = vtanh.f32 %v4609_v17 }
0x347a   :  { %v6560_v59 = vpop.eup %6559 }
0x347b   :  { %4613 = vrot.lane.b32.xlu0 %v6560_v59, %s6614_s29 }
0x34ed   :  { %v4614_v24 = vpop.permute.xlu0 %4613 }
0x34ee   :  { %v4616_v61 = vmul.f32 %v4614_v24, %v4611_v2 }
0x34f0   :  { %v7660_v4 = vadd.f32 %v4617_v43, %v4616_v61 }
0x34f2   :  { %4620 = vrot.lane.b32.xlu1 %v7660_v4, %s6614_s29 }
0x3564   :  { %v4621_v25 = vpop.permute.xlu1 %4620 }
0x3565   :  { %5420 = vmatmul.mubr.msk.f32.vlgmr.msra.gmra.mrb[72].mxu0 %vm319_vm4, %v4621_v25 }
0x3566   :  { %6294 = vmatpush1.bf16.msra.mxu0 %v7561_v20  ;;  %5046 = vmatprep.mubr.f32.mxu0 %v6611_v1 }
0x3567   :  { %6296 = vmatprep.subr.bf16.mxu0 %v7564_v53 }
0x356a   :  { %6298 = vmatpush1.bf16.msra.mxu0 %v7569_v38 }
0x3638   :  { %v4690_v60 = vpop.f32.mrb[72].mxu0 }
0x3639   :  { %v7670_v62 = vadd.f32 %v4690_v60, %v7603_v48  ;;  %v4692_v35 = vpop.f32.mrb[73].mxu0  ;;  %v6615_v60 = vmov 1966171168  }
0x363a   :  { %v4693_v22 = vadd.f32 %v4692_v35, %v7631_v15  ;;  %v4336_v35 = vunpack.c.l.s4 %v6615_v60 }
0x363b   :  { %4780 = vrot.lane.b32.xlu0 %v7670_v62, %s6613_s0 }
0x363c   :  { %v4772_v6 = vadd.f32 %v4693_v22, %v7607_v36  ;;  %v4337_v22 = vunpack.c.0.s8 %v4336_v35 }
0x363e   :  { %v4773_v39 = vadd.f32 %v4772_v6, %v7670_v62 }
0x3640   :  { %v5421_v16 = vmul.f32 -1.442695, %v4773_v39 }
0x3642   :  { %6561 = vpow2.f32 %v5421_v16 }
0x364c   :  { %v6562_v56 = vpop.eup %6561 }
0x364d   :  { %v4777_v44 = vadd.f32 1.0, %v6562_v56 }
0x364f   :  { %6563 = vrcp.f32 %v4777_v44 }
0x3659   :  { %v6564_v45 = vpop.eup %6563 }
0x365a   :  { %v4790_v31 = vsub.f32 1.0, %v6564_v45  ;;  %v4796_v29 = vmul.f32 %v6564_v45, %v7660_v4 }
0x36ad   :  { %v4781_v47 = vpop.permute.xlu0 %4780 }
0x36ae   :  { %v4783_v7 = vmul.f32 %v6564_v45, %v4781_v47 }
0x36b0   :  { %4785 = vrot.lane.b32.xlu1 %v4783_v7, %s6613_s0 }
0x3722   :  { %v4786_v27 = vpop.permute.xlu1 %4785 }
0x3723   :  { %v4788_v21 = vadd.f32 %v4786_v27, %v4772_v6 }
0x3725   :  { %6565 = vtanh.f32 %v4788_v21 }
0x372f   :  { %v6566_v3 = vpop.eup %6565 }
0x3730   :  { %4792 = vrot.lane.b32.xlu0 %v6566_v3, %s6614_s29 }
0x37a2   :  { %v4793_v13 = vpop.permute.xlu0 %4792 }
0x37a3   :  { %v4795_v41 = vmul.f32 %v4793_v13, %v4790_v31 }
0x37a5   :  { %v7680_v57 = vadd.f32 %v4796_v29, %v4795_v41 }
0x37a7   :  { %4799 = vrot.lane.b32.xlu1 %v7680_v57, %s6614_s29 }
0x3819   :  { %v4800_v23 = vpop.permute.xlu1 %4799 }
0x381a   :  { %5422 = vmatmul.mubr.msk.f32.vlgmr.msra.gmra.mrb[48].mxu1 %vm319_vm4, %v4800_v23 }
0x381b   :  { %6302 = vmatpush1.bf16.msra.mxu1 %v7561_v20  ;;  %5225 = vmatprep.mubr.f32.mxu1 %v6611_v1 }
0x381c   :  { %6304 = vmatprep.subr.bf16.mxu1 %v7564_v53 }
0x381f   :  { %6306 = vmatpush1.bf16.msra.mxu1 %v7569_v38 }
0x38ed   :  { %v4869_v50 = vpop.f32.mrb[48].mxu1 }
0x38ee   :  { %v7690_v5 = vadd.f32 %v4869_v50, %v7603_v48  ;;  %v4871_v0 = vpop.f32.mrb[49].mxu1 }
0x38ef   :  { %v4872_v19 = vadd.f32 %v4871_v0, %v7631_v15 }
0x38f0   :  { %4959 = vrot.lane.b32.xlu0 %v7690_v5, %s6613_s0 }
0x38f1   :  { %v4951_v34 = vadd.f32 %v4872_v19, %v7607_v36 }
0x38f3   :  { %v4952_v20 = vadd.f32 %v4951_v34, %v7690_v5 }
0x38f5   :  { %v5423_v12 = vmul.f32 -1.442695, %v4952_v20 }
0x38f7   :  { %6567 = vpow2.f32 %v5423_v12 }
0x3901   :  { %v6568_v1 = vpop.eup %6567 }
0x3902   :  { %v4956_v53 = vadd.f32 1.0, %v6568_v1 }
0x3904   :  { %6569 = vrcp.f32 %v4956_v53 }
0x390e   :  { %v6570_v38 = vpop.eup %6569 }
0x390f   :  { %v4969_v8 = vsub.f32 1.0, %v6570_v38  ;;  %v4975_v42 = vmul.f32 %v6570_v38, %v7680_v57 }
0x3962   :  { %v4960_v14 = vpop.permute.xlu0 %4959 }
0x3963   :  { %v4962_v63 = vmul.f32 %v6570_v38, %v4960_v14 }
0x3965   :  { %4964 = vrot.lane.b32.xlu1 %v4962_v63, %s6613_s0 }
0x39d7   :  { %v4965_v30 = vpop.permute.xlu1 %4964 }
0x39d8   :  { %v4967_v40 = vadd.f32 %v4965_v30, %v4951_v34 }
0x39da   :  { %6571 = vtanh.f32 %v4967_v40 }
0x39e4   :  { %v6572_v11 = vpop.eup %6571 }
0x39e5   :  { %4971 = vrot.lane.b32.xlu0 %v6572_v11, %s6614_s29 }
0x3a57   :  { %v4972_v55 = vpop.permute.xlu0 %4971 }
0x3a58   :  { %v4974_v51 = vmul.f32 %v4972_v55, %v4969_v8 }
0x3a5a   :  { %v7700_v54 = vadd.f32 %v4975_v42, %v4974_v51 }
0x3a5c   :  { %4978 = vrot.lane.b32.xlu1 %v7700_v54, %s6614_s29 }
0x3ace   :  { %v4979_v46 = vpop.permute.xlu1 %4978 }
0x3acf   :  { %5424 = vmatmul.mubr.msk.f32.vlgmr.msra.gmra.mrb[74].mxu0 %vm319_vm4, %v4979_v46 }
0x3ba2   :  { %v5048_v18 = vpop.f32.mrb[74].mxu0 }
0x3ba3   :  { %v5049_v9 = vadd.f32 %v5048_v18, %v7603_v48  ;;  %v5050_v28 = vpop.f32.mrb[75].mxu0 }
0x3ba4   :  { %v5051_v52 = vadd.f32 %v5050_v28, %v7631_v15  ;;  %v7711_v15 = vsub.s32 %v4337_v22, %v6765_v33 }
0x3ba5   :  { %5138 = vrot.lane.b32.xlu0 %v5049_v9, %s6613_s0 }
0x3ba6   :  { %v5130_v58 = vadd.f32 %v5051_v52, %v7607_v36  ;;  %v4341_v36 = vrot.slane %v7614_v10, %v7711_v15  ;;  %v4381_v56 = vrot.slane %v7625_v26, %v7711_v15  ;;  %v7722_v47 = vrot.slane %v7639_v32, %v7711_v15 }
0x3ba7   :  { %v7730_v7 = vrot.slane %v7650_v49, %v7711_v15  ;;  %v7738_v27 = vrot.slane %v7660_v4, %v7711_v15  ;;  %v7746_v3 = vrot.slane %v7670_v62, %v7711_v15  ;;  %v7754_v4 = vrot.slane %v7680_v57, %v7711_v15 }
0x3ba8   :  { %v5131_v17 = vadd.f32 %v5130_v58, %v5049_v9  ;;  %v4349_v16 = vrot.slane %v4341_v36, %v7711_v15  ;;  %v4389_v45 = vrot.slane %v4381_v56, %v7711_v15  ;;  %v4530_v10 = vrot.slane %v7722_v47, %v7711_v15 }
0x3ba9   :  { %v4569_v32 = vrot.slane %v7730_v7, %v7711_v15  ;;  %v4709_v49 = vrot.slane %v7738_v27, %v7711_v15  ;;  %v4748_v13 = vrot.slane %v7746_v3, %v7711_v15  ;;  %v4888_v41 = vrot.slane %v7754_v4, %v7711_v15 }
0x3baa   :  { %v5425_v59 = vmul.f32 -1.442695, %v5131_v17  ;;  %v4360_v33 = vrot.slane %v4349_v16, %v6773_v37  ;;  %v4400_v26 = vrot.slane %v4389_v45, %v6773_v37  ;;  %v4541_v21 = vrot.slane %v4530_v10, %v6773_v37 }
0x3bab   :  { %v4580_v31 = vrot.slane %v4569_v32, %v6773_v37  ;;  %v4720_v29 = vrot.slane %v4709_v49, %v6773_v37  ;;  %v7762_v62 = vrot.slane %v7690_v5, %v7711_v15  ;;  %v4759_v23 = vrot.slane %v4748_v13, %v6773_v37 }
0x3bac   :  { %6573 = vpow2.f32 %v5425_v59  ;;  %v7770_v57 = vrot.slane %v7700_v54, %v7711_v15  ;;  %v4899_v0 = vrot.slane %v4888_v41, %v6773_v37  ;;  %v7777_v5 = vrot.slane %v5049_v9, %v7711_v15 }
0x3bad   :  { %v4927_v50 = vrot.slane %v7762_v62, %v7711_v15  ;;  %v4342_v53 = vcombine.high %v4341_v36, %v4341_v36  ;;  %v4382_v40 = vcombine.high %v4381_v56, %v4381_v56  ;;  %v4562_v52 = vcombine.high %v7730_v7, %v7730_v7 }
0x3bae   :  { %v5067_v19 = vrot.slane %v7770_v57, %v7711_v15  ;;  %v5106_v20 = vrot.slane %v7777_v5, %v7711_v15  ;;  %v4920_v56 = vcombine.high %v7762_v62, %v7762_v62  ;;  %v5060_v10 = vcombine.high %v7770_v57, %v7770_v57 }
0x3baf   :  { %v4938_v34 = vrot.slane %v4927_v50, %v6773_v37  ;;  %v4356_v8 = vrot.slane %v4342_v53, %v7711_v15  ;;  %v4396_v51 = vrot.slane %v4382_v40, %v7711_v15  ;;  %v5099_v32 = vcombine.high %v7777_v5, %v7777_v5 }
0x3bb0   :  { %v5078_v12 = vrot.slane %v5067_v19, %v6773_v37  ;;  %v5117_v1 = vrot.slane %v5106_v20, %v6773_v37 }
0x3bb1   :  { %v4364_v18 = vrot.slane %v4356_v8, %v6773_v37 }
0x3bb6   :  { %v6574_v2 = vpop.eup %6573 }
0x3bb7   :  { %v5135_v24 = vadd.f32 1.0, %v6574_v2  ;;  %v4576_v2 = vrot.slane %v4562_v52, %v7711_v15 }
0x3bb9   :  { %6575 = vrcp.f32 %v5135_v24  ;;  %v4702_v24 = vcombine.high %v7738_v27, %v7738_v27  ;;  %v4584_v60 = vrot.slane %v4576_v2, %v6773_v37 }
0x3bbb   :  { %v4716_v35 = vrot.slane %v4702_v24, %v7711_v15 }
0x3bbd   :  { %v4724_v36 = vrot.slane %v4716_v35, %v6773_v37 }
0x3bc3   :  { %v6576_v43 = vpop.eup %6575 }
0x3bc4   :  { %v5148_v38 = vsub.f32 1.0, %v6576_v43  ;;  %v5154_v63 = vmul.f32 %v6576_v43, %v7700_v54  ;;  %v4523_v54 = vcombine.high %v7722_v47, %v7722_v47 }
0x3bc6   :  { %v4537_v17 = vrot.slane %v4523_v54, %v7711_v15 }
0x3c17   :  { %v5139_v61 = vpop.permute.xlu0 %5138 }
0x3c18   :  { %v5141_v25 = vmul.f32 %v6576_v43, %v5139_v61  ;;  %v4545_v43 = vrot.slane %v4537_v17, %v6773_v37 }
0x3c1a   :  { %5143 = vrot.lane.b32.xlu1 %v5141_v25, %s6613_s0  ;;  %v4741_v25 = vcombine.high %v7746_v3, %v7746_v3  ;;  %v5113_v3 = vrot.slane %v5099_v32, %v7711_v15 }
0x3c1c   :  { %v5121_v41 = vrot.slane %v5113_v3, %v6773_v37 }
0x3c8c   :  { %v5144_v6 = vpop.permute.xlu1 %5143 }
0x3c8d   :  { %v5146_v39 = vadd.f32 %v5144_v6, %v5130_v58  ;;  %v4404_v58 = vrot.slane %v4396_v51, %v6773_v37  ;;  %v4755_v6 = vrot.slane %v4741_v25, %v7711_v15 }
0x3c8f   :  { %6577 = vtanh.f32 %v5146_v39  ;;  %v4881_v39 = vcombine.high %v7754_v4, %v7754_v4 }
0x3c91   :  { %v4895_v45 = vrot.slane %v4881_v39, %v7711_v15 }
0x3c93   :  { %v4903_v7 = vrot.slane %v4895_v45, %v6773_v37 }
0x3c99   :  { %v6578_v44 = vpop.eup %6577 }
0x3c9a   :  { %5150 = vrot.lane.b32.xlu0 %v6578_v44, %s6614_s29  ;;  %v4763_v44 = vrot.slane %v4755_v6, %v6773_v37 }
0x3c9e   :  { %4365 = vrot.lane.b32.xlu0 %v4360_v33, %s6614_s29  ;;  %v4934_v33 = vrot.slane %v4920_v56, %v7711_v15 }
0x3ca0   :  { %v4942_v27 = vrot.slane %v4934_v33, %v6773_v37 }
0x3ca2   :  { %4405 = vrot.lane.b32.xlu0 %v4400_v26, %s6616_s30 }
0x3ca6   :  { %4546 = vrot.lane.b32.xlu0 %v4541_v21, %s6614_s29  ;;  %v5074_v21 = vrot.slane %v5060_v10, %v7711_v15 }
0x3ca8   :  { %v5082_v13 = vrot.slane %v5074_v21, %v6773_v37 }
0x3caa   :  { %4585 = vrot.lane.b32.xlu0 %v4580_v31, %s6616_s30 }
0x3cae   :  { %4725 = vrot.lane.b32.xlu0 %v4720_v29, %s6614_s29 }
0x3cb2   :  { %4764 = vrot.lane.b32.xlu0 %v4759_v23, %s6616_s30 }
0x3cb6   :  { %4904 = vrot.lane.b32.xlu0 %v4899_v0, %s6614_s29 }
0x3cba   :  { %4943 = vrot.lane.b32.xlu0 %v4938_v34, %s6616_s30 }
0x3cbe   :  { %5083 = vrot.lane.b32.xlu0 %v5078_v12, %s6614_s29 }
0x3cc2   :  { %5122 = vrot.lane.b32.xlu0 %v5117_v1, %s6616_s30 }
0x3d0c   :  { %v5151_v14 = vpop.permute.xlu0 %5150 }
0x3d0d   :  { %v5153_v30 = vmul.f32 %v5151_v14, %v5148_v38 }
0x3d0f   :  { %v5155_v11 = vadd.f32 %v5154_v63, %v5153_v30 }
0x3d10   :  { %v4366_v55 = vpop.permute.xlu0 %4365 }
0x3d11   :  { %v5237_v42 = vrot.slane %v5155_v11, %v7711_v15  ;;  %4372 = vst.msk [vmem:[%s7950_s3] sm:$0x1] %vm4371_vm6, %v4366_v55  ;;  %5157 = vrot.lane.b32.xlu1 %v5155_v11, %s6614_s29 }
0x3d13   :  { %v5245_v46 = vrot.slane %v5237_v42, %v7711_v15  ;;  %v5238_v31 = vcombine.high %v5237_v42, %v5237_v42 }
0x3d14   :  { %v4406_v9 = vpop.permute.xlu0 %4405 }
0x3d15   :  { %4412 = vst.msk [vmem:[%s7949_s2] sm:$0x1] %vm4411_vm7, %v4406_v9  ;;  %4367 = vrot.lane.b32.xlu1 %v4364_v18, %s6614_s29  ;;  %v5256_v28 = vrot.slane %v5245_v46, %v6773_v37  ;;  %v5252_v29 = vrot.slane %v5238_v31, %v7711_v15 }
0x3d17   :  { %5261 = vrot.lane.b32.xlu0 %v5256_v28, %s6614_s29  ;;  %v5260_v62 = vrot.slane %v5252_v29, %v6773_v37 }
0x3d18   :  { %v4547_v59 = vpop.permute.xlu0 %4546 }
0x3d19   :  { %4552 = vst.msk [vmem:[%s7950_s3 + $0x1] sm:$0x1] %vm4371_vm6, %v4547_v59  ;;  %4407 = vrot.lane.b32.xlu1 %v4404_v58, %s6616_s30 }
0x3d1c   :  { %v4586_v61 = vpop.permute.xlu0 %4585 }
0x3d1d   :  { %4591 = vst.msk [vmem:[%s7949_s2 + $0x1] sm:$0x1] %vm4411_vm7, %v4586_v61  ;;  %4548 = vrot.lane.b32.xlu1 %v4545_v43, %s6614_s29 }
0x3d20   :  { %v4726_v22 = vpop.permute.xlu0 %4725 }
0x3d21   :  { %4731 = vst.msk [vmem:[%s7950_s3 + $0x2] sm:$0x1] %vm4371_vm6, %v4726_v22  ;;  %4587 = vrot.lane.b32.xlu1 %v4584_v60, %s6616_s30 }
0x3d24   :  { %v4765_v16 = vpop.permute.xlu0 %4764 }
0x3d25   :  { %4770 = vst.msk [vmem:[%s7949_s2 + $0x2] sm:$0x1] %vm4411_vm7, %v4765_v16  ;;  %4727 = vrot.lane.b32.xlu1 %v4724_v36, %s6614_s29 }
0x3d28   :  { %v4905_v47 = vpop.permute.xlu0 %4904 }
0x3d29   :  { %4910 = vst.msk [vmem:[%s7950_s3 + $0x3] sm:$0x1] %vm4371_vm6, %v4905_v47  ;;  %4766 = vrot.lane.b32.xlu1 %v4763_v44, %s6616_s30 }
0x3d2c   :  { %v4944_v26 = vpop.permute.xlu0 %4943 }
0x3d2d   :  { %4949 = vst.msk [vmem:[%s7949_s2 + $0x3] sm:$0x1] %vm4411_vm7, %v4944_v26  ;;  %4906 = vrot.lane.b32.xlu1 %v4903_v7, %s6614_s29 }
0x3d30   :  { %v5084_v49 = vpop.permute.xlu0 %5083 }
0x3d31   :  { %5089 = vst.msk [vmem:[%s7950_s3 + $0x4] sm:$0x1] %vm4371_vm6, %v5084_v49  ;;  %4945 = vrot.lane.b32.xlu1 %v4942_v27, %s6616_s30 }
0x3d34   :  { %v5123_v4 = vpop.permute.xlu0 %5122 }
0x3d35   :  { %5128 = vst.msk [vmem:[%s7949_s2 + $0x4] sm:$0x1] %vm4411_vm7, %v5123_v4  ;;  %5085 = vrot.lane.b32.xlu1 %v5082_v13, %s6614_s29 }
0x3d39   :  { %5124 = vrot.lane.b32.xlu1 %v5121_v41, %s6616_s30 }
0x3d3d   :  { %5263 = vrot.lane.b32.xlu1 %v5260_v62, %s6614_s29 }
0x3d83   :  { %v5158_v23 = vpop.permute.xlu1 %5157 }
0x3d84   :  { %5426 = vmatmul.mubr.msk.f32.vlgmr.msra.gmra.mrb[50].mxu1 %vm319_vm4, %v5158_v23 }
0x3d87   :  { %v4368_v50 = vpop.permute.xlu1 %4367 }
0x3d88   :  { %4373 = vst.msk [vmem:[%s7950_s3 + $0x8] sm:$0x1] %vm4371_vm6, %v4368_v50 }
0x3d89   :  { %v5262_v57 = vpop.permute.xlu0 %5261 }
0x3d8a   :  { %5267 = vst.msk [vmem:[%s7950_s3 + $0x5] sm:$0x1] %vm4371_vm6, %v5262_v57 }
0x3d8b   :  { %v4408_v0 = vpop.permute.xlu1 %4407 }
0x3d8c   :  { %4413 = vst.msk [vmem:[%s7949_s2 + $0x8] sm:$0x1] %vm4411_vm7, %v4408_v0 }
0x3d8f   :  { %v4549_v19 = vpop.permute.xlu1 %4548 }
0x3d90   :  { %4553 = vst.msk [vmem:[%s7950_s3 + $0x9] sm:$0x1] %vm4371_vm6, %v4549_v19 }
0x3d93   :  { %v4588_v5 = vpop.permute.xlu1 %4587 }
0x3d94   :  { %4592 = vst.msk [vmem:[%s7949_s2 + $0x9] sm:$0x1] %vm4411_vm7, %v4588_v5 }
0x3d97   :  { %v4728_v34 = vpop.permute.xlu1 %4727 }
0x3d98   :  { %4732 = vst.msk [vmem:[%s7950_s3 + $0xa] sm:$0x1] %vm4371_vm6, %v4728_v34 }
0x3d9b   :  { %v4767_v20 = vpop.permute.xlu1 %4766 }
0x3d9c   :  { %4771 = vst.msk [vmem:[%s7949_s2 + $0xa] sm:$0x1] %vm4411_vm7, %v4767_v20 }
0x3d9f   :  { %v4907_v12 = vpop.permute.xlu1 %4906 }
0x3da0   :  { %4911 = vst.msk [vmem:[%s7950_s3 + $0xb] sm:$0x1] %vm4371_vm6, %v4907_v12 }
0x3da3   :  { %v4946_v1 = vpop.permute.xlu1 %4945 }
0x3da4   :  { %4950 = vst.msk [vmem:[%s7949_s2 + $0xb] sm:$0x1] %vm4411_vm7, %v4946_v1 }
0x3da7   :  { %v5086_v53 = vpop.permute.xlu1 %5085 }
0x3da8   :  { %5090 = vst.msk [vmem:[%s7950_s3 + $0xc] sm:$0x1] %vm4371_vm6, %v5086_v53 }
0x3dab   :  { %v5125_v38 = vpop.permute.xlu1 %5124 }
0x3dac   :  { %5129 = vst.msk [vmem:[%s7949_s2 + $0xc] sm:$0x1] %vm4411_vm7, %v5125_v38 }
0x3daf   :  { %v5264_v14 = vpop.permute.xlu1 %5263 }
0x3db0   :  { %5268 = vst.msk [vmem:[%s7950_s3 + $0xd] sm:$0x1] %vm4371_vm6, %v5264_v14 }
0x3e57   :  { %v5227_v63 = vpop.f32.mrb[50].mxu1 }
0x3e58   :  { %v5228_v30 = vadd.f32 %v5227_v63, %v7603_v48  ;;  %v5229_v40 = vpop.f32.mrb[51].mxu1 }
0x3e5a   :  { %v5276_v11 = vrot.slane %v5228_v30, %v7711_v15 }
0x3e5c   :  { %v5277_v8 = vcombine.high %v5276_v11, %v5276_v11  ;;  %v5284_v55 = vrot.slane %v5276_v11, %v7711_v15 }
0x3e5e   :  { %v5291_v42 = vrot.slane %v5277_v8, %v7711_v15  ;;  %v5295_v51 = vrot.slane %v5284_v55, %v6773_v37 }
0x3e60   :  { %5300 = vrot.lane.b32.xlu0 %v5295_v51, %s6616_s30  ;;  %v5299_v54 = vrot.slane %v5291_v42, %v6773_v37 }
0x3e62   :  { %5302 = vrot.lane.b32.xlu1 %v5299_v54, %s6616_s30 }
0x3ed2   :  { %v5301_v46 = vpop.permute.xlu0 %5300 }
0x3ed3   :  { %5306 = vst.msk [vmem:[%s7949_s2 + $0x5] sm:$0x1] %vm4411_vm7, %v5301_v46 }
0x3ed4   :  { %v5303_v48 = vpop.permute.xlu1 %5302 }
0x3ed5   :  { %5307 = vst.msk [vmem:[%s7949_s2 + $0xd] sm:$0x1] %vm4411_vm7, %v5303_v48 }
0x3ed6   :  { %5316 = vsyncpa [#allocation5], 1 }

</bundles_post_ra>
